<compile_context>
chip_gen: v7x
topology: tpu7x:2x2x1
jax: 0.10.0
libtpu: 0.0.40
codegen_flags: <defaults>
</compile_context>

<pallas_src>
import functools
import math

import jax
import jax.numpy as jnp
from jax.experimental import pallas as pl
from jax.experimental.pallas import tpu as pltpu


# ----------------------------------------------------------------------------
# Fused decoder kernel
# ----------------------------------------------------------------------------

def _decoder_kernel(tgt_ref, enc_ref, tbias_ref, sbias_ref,
                    wqkv_s_ref, bqkv_s_ref, wo_s_ref, bo_s_ref, ln1g_ref, ln1b_ref,
                    wq_c_ref, bq_c_ref, wkv_c_ref, bkv_c_ref, wo_c_ref, bo_c_ref,
                    ln2g_ref, ln2b_ref,
                    w1_ref, b1_ref, w2_ref, b2_ref, ln3g_ref, ln3b_ref,
                    lnf_g_ref, lnf_b_ref,
                    o_ref, x_scr, *, num_heads, eps):
    layer = pl.program_id(0)
    bidx = pl.program_id(1)
    num_layers = pl.num_programs(0)

    # Load this batch element's (T, D) activation into the VMEM carry at layer 0.
    @pl.when(layer == 0)
    def _():
        x_scr[bidx] = tgt_ref[0].astype(jnp.float32)

    x = x_scr[bidx]                                   # (T, D) float32 residual carry
    D = x.shape[1]
    d_k = D // num_heads
    enc_bf = enc_ref[0].astype(jnp.bfloat16)          # (S, D) bf16 MXU operand

    def layer_norm(y, g_ref, b_ref):
        mu = jnp.mean(y, axis=-1, keepdims=True)
        var = jnp.mean((y - mu) * (y - mu), axis=-1, keepdims=True)
        return (y - mu) * jax.lax.rsqrt(var + eps) * g_ref[0] + b_ref[0]

    def mha(q_full, k_full, v_full, bias):
        # q_full (Tq, D), k_full/v_full (Tk, D) f32 lane-dense; bias (Tq|1, Tk) additive.
        # Per-head matmuls have the same MXU shapes as a head-batched einsum; the scale
        # is already folded into Wq and the mask is an additive bias (no compare/select).
        ctx_heads = []
        for hh in range(num_heads):
            sl = slice(hh * d_k, (hh + 1) * d_k)
            qh = q_full[:, sl].astype(jnp.bfloat16)
            kh = k_full[:, sl].astype(jnp.bfloat16)
            vh = v_full[:, sl].astype(jnp.bfloat16)
            s = jax.lax.dot_general(qh, kh, (((1,), (1,)), ((), ())),
                                    preferred_element_type=jnp.float32)
            s = s + bias
            s = s - jnp.max(s, axis=-1, keepdims=True)
            p = jnp.exp(s)
            p = p * pl.reciprocal(jnp.sum(p, axis=-1, keepdims=True), approx=True)
            ctx_heads.append(jnp.dot(p.astype(jnp.bfloat16), vh,
                                     preferred_element_type=jnp.float32))
        return jnp.concatenate(ctx_heads, axis=-1)    # (Tq, D) f32 lane-dense

    # ---- masked self-attention: ONE packed (T,D)x(D,3D) projection -----------------
    x_bf = x.astype(jnp.bfloat16)
    qkv = jnp.dot(x_bf, wqkv_s_ref[0],
                  preferred_element_type=jnp.float32) + bqkv_s_ref[0]   # (T, 3D)
    q = qkv[:, :D]
    k = qkv[:, D:2 * D]
    v = qkv[:, 2 * D:]
    ctx = mha(q, k, v, tbias_ref[0])                  # tgt additive bias (T, T)
    attn = jnp.dot(ctx.astype(jnp.bfloat16), wo_s_ref[0],
                   preferred_element_type=jnp.float32) + bo_s_ref[0]    # one (D,D) matmul
    x = layer_norm(x + attn, ln1g_ref, ln1b_ref)

    # ---- encoder-decoder (cross) attention ------------------------------------------
    x_bf = x.astype(jnp.bfloat16)
    qc = jnp.dot(x_bf, wq_c_ref[0],
                 preferred_element_type=jnp.float32) + bq_c_ref[0]      # (T, D)
    kv = jnp.dot(enc_bf, wkv_c_ref[0],
                 preferred_element_type=jnp.float32) + bkv_c_ref[0]     # (S, 2D)
    kc = kv[:, :D]
    vc = kv[:, D:]
    ctx_c = mha(qc, kc, vc, sbias_ref[0])             # src additive bias (1, S)
    attn_c = jnp.dot(ctx_c.astype(jnp.bfloat16), wo_c_ref[0],
                     preferred_element_type=jnp.float32) + bo_c_ref[0]
    x = layer_norm(x + attn_c, ln2g_ref, ln2b_ref)

    # ---- position-wise feed-forward --------------------------------------------------
    hid = jnp.dot(x.astype(jnp.bfloat16), w1_ref[0],
                  preferred_element_type=jnp.float32) + b1_ref[0]
    hid = jnp.maximum(hid, 0.0)
    ff = jnp.dot(hid.astype(jnp.bfloat16), w2_ref[0],
                 preferred_element_type=jnp.float32) + b2_ref[0]
    x = layer_norm(x + ff, ln3g_ref, ln3b_ref)

    x_scr[bidx] = x    # carry this batch element to the next layer step

    # ---- final LayerNorm, valid output store only on the last layer step ------------
    @pl.when(layer == num_layers - 1)
    def _():
        mu = jnp.mean(x, axis=-1, keepdims=True)
        var = jnp.mean((x - mu) * (x - mu), axis=-1, keepdims=True)
        y = (x - mu) * jax.lax.rsqrt(var + eps) * lnf_g_ref[...] + lnf_b_ref[...]
        o_ref[0] = y.astype(o_ref.dtype)


# ----------------------------------------------------------------------------
# Wrapper
# ----------------------------------------------------------------------------

_WEIGHT_KEYS = ["wqkv_s", "bqkv_s", "wo_s", "bo_s", "ln1_g", "ln1_b",
                "wq_c", "bq_c", "wkv_c", "bkv_c", "wo_c", "bo_c", "ln2_g", "ln2_b",
                "w1", "b1", "w2", "b2", "ln3_g", "ln3_b"]


def _batch_block(shape):
    nd = len(shape)
    return pl.BlockSpec((1,) + tuple(shape[1:]),
                        lambda l, b: (b,) + (0,) * (nd - 1))


def _layer_block(shape):
    nd = len(shape)
    return pl.BlockSpec((1,) + tuple(shape[1:]),
                        lambda l, b: (l,) + (0,) * (nd - 1))


def _const_block(shape):
    nd = len(shape)
    return pl.BlockSpec(tuple(shape), lambda l, b: (0,) * nd)


def decoder_forward(kparams, tgt, enc_output, src_mask, tgt_mask):
    """
    tgt:        (B, T, D)
    enc_output: (B, S, D)
    src_mask:   (B, 1, 1, S)   -- 1 = keep, 0 = mask
    tgt_mask:   (B, 1, T, T)
    """
    B, T, D = tgt.shape
    L = kparams["wqkv_s"].shape[0]
    h = kparams["num_heads"]
    eps = kparams["eps"]

    # Additive attention bias: 0 where mask==1, -1e9 where mask==0 (one add in-kernel).
    tbias = (tgt_mask[:, 0].astype(jnp.float32) - 1.0) * 1e9     # (B, T, T)
    sbias = (src_mask[:, 0].astype(jnp.float32) - 1.0) * 1e9     # (B, 1, S)

    weight_arrays = [kparams[k] for k in _WEIGHT_KEYS]

    in_specs = ([_batch_block(tgt.shape), _batch_block(enc_output.shape),
                 _batch_block(tbias.shape), _batch_block(sbias.shape)]
                + [_layer_block(w.shape) for w in weight_arrays]
                + [_const_block(kparams["lnf_g"].shape),
                   _const_block(kparams["lnf_b"].shape)])

    args = [tgt, enc_output, tbias, sbias] + weight_arrays \
        + [kparams["lnf_g"], kparams["lnf_b"]]

    kernel = functools.partial(_decoder_kernel, num_heads=h, eps=eps)

    # Layer-major grid: weights (indexed by l only) are DMA'd once per layer, not once
    # per batch element; the (B, T, D) f32 scratch carries all batch activations.
    return pl.pallas_call(
        kernel,
        out_shape=jax.ShapeDtypeStruct((B, T, D), tgt.dtype),
        grid=(L, B),
        in_specs=in_specs,
        out_specs=_batch_block((B, T, D)),
        scratch_shapes=[pltpu.VMEM((B, T, D), jnp.float32)],
        compiler_params=pltpu.CompilerParams(
            dimension_semantics=("arbitrary", "arbitrary"),
            # Generous but safe on v5e/v6e/v7x for these shapes; re-derive for large
            # d_model/d_ff (esp. v7x, 64 MiB physical VMEM) per the budgeting notes.
            vmem_limit_bytes=48 * 1024 * 1024),
    )(*args)


# ----------------------------------------------------------------------------
# Parameter construction (deterministic, synthetic) and lane-dense packing
# ----------------------------------------------------------------------------

def init_decoder_params(key, num_layers, d_model, h, d_ff):
    def dense(k, din, dout):
        kw, kb = jax.random.split(k)
        w = 0.02 * jax.random.normal(kw, (din, dout), jnp.float32)
        b = 0.02 * jax.random.normal(kb, (dout,), jnp.float32)
        return w, b

    def ln():
        return jnp.ones((d_model,), jnp.float32), jnp.zeros((d_model,), jnp.float32)

    layers = []
    for lk in jax.random.split(key, num_layers):
        ks = jax.random.split(lk, 10)
        layers.append({
            "self": {"q": dense(ks[0], d_model, d_model), "k": dense(ks[1], d_model, d_model),
                     "v": dense(ks[2], d_model, d_model), "o": dense(ks[3], d_model, d_model)},
            "cross": {"q": dense(ks[4], d_model, d_model), "k": dense(ks[5], d_model, d_model),
                      "v": dense(ks[6], d_model, d_model), "o": dense(ks[7], d_model, d_model)},
            "ffn": {"w1": dense(ks[8], d_model, d_ff), "w2": dense(ks[9], d_ff, d_model)},
            "ln1": ln(), "ln2": ln(), "ln3": ln(),
        })
    return {"layers": layers, "norm": ln(), "h": h, "eps": 1e-5}


def pack_decoder_params(params, d_model, h):
    """Pack per-layer weights into stacked lane-dense arrays for the fused kernel.

    Wq (and bq) absorb the 1/sqrt(d_k) score scale.  Q/K/V (self) and K/V (cross) are
    concatenated along the output (lane) dim so each projection is one full-width matmul.
    Matmul weights are stored in bf16; biases and LayerNorm params stay f32.
    """
    d_k = d_model // h
    scale = 1.0 / math.sqrt(d_k)

    acc = {k: [] for k in _WEIGHT_KEYS}
    for layer in params["layers"]:
        s = layer["self"]
        acc["wqkv_s"].append(jnp.concatenate(
            [s["q"][0] * scale, s["k"][0], s["v"][0]], axis=1))            # (D, 3D)
        acc["bqkv_s"].append(jnp.concatenate(
            [s["q"][1] * scale, s["k"][1], s["v"][1]], axis=0).reshape(1, -1))  # (1, 3D)
        acc["wo_s"].append(s["o"][0])                                      # (D, D)
        acc["bo_s"].append(s["o"][1].reshape(1, -1))
        acc["ln1_g"].append(layer["ln1"][0].reshape(1, -1))
        acc["ln1_b"].append(layer["ln1"][1].reshape(1, -1))

        c = layer["cross"]
        acc["wq_c"].append(c["q"][0] * scale)                              # (D, D)
        acc["bq_c"].append((c["q"][1] * scale).reshape(1, -1))
        acc["wkv_c"].append(jnp.concatenate([c["k"][0], c["v"][0]], axis=1))   # (D, 2D)
        acc["bkv_c"].append(jnp.concatenate([c["k"][1], c["v"][1]], axis=0).reshape(1, -1))
        acc["wo_c"].append(c["o"][0])
        acc["bo_c"].append(c["o"][1].reshape(1, -1))
        acc["ln2_g"].append(layer["ln2"][0].reshape(1, -1))
        acc["ln2_b"].append(layer["ln2"][1].reshape(1, -1))

        f = layer["ffn"]
        acc["w1"].append(f["w1"][0])
        acc["b1"].append(f["w1"][1].reshape(1, -1))
        acc["w2"].append(f["w2"][0])
        acc["b2"].append(f["w2"][1].reshape(1, -1))
        acc["ln3_g"].append(layer["ln3"][0].reshape(1, -1))
        acc["ln3_b"].append(layer["ln3"][1].reshape(1, -1))

    packed = {k: jnp.stack(v, axis=0) for k, v in acc.items()}
    for k in ("wqkv_s", "wo_s", "wq_c", "wkv_c", "wo_c", "w1", "w2"):
        packed[k] = packed[k].astype(jnp.bfloat16)   # halve HBM streaming + VMEM footprint
    packed["lnf_g"] = params["norm"][0].reshape(1, d_model)
    packed["lnf_b"] = params["norm"][1].reshape(1, d_model)
    packed["num_heads"] = h
    packed["eps"] = params["eps"]
    return packed


# ----------------------------------------------------------------------------
# Pure-JAX reference (mirrors PyTorch Decoder.forward, eval mode)
# ----------------------------------------------------------------------------

def _ref_mha(q_in, kv_in, mask, wq, bq, wk, bk, wv, bv, wo, bo, h):
    B, Tq, D = q_in.shape
    Tk = kv_in.shape[1]
    d_k = D // h

    def split(x, t):
        return x.reshape(B, t, h, d_k).transpose(0, 2, 1, 3)

    q = split(q_in @ wq + bq, Tq)
    k = split(kv_in @ wk + bk, Tk)
    v = split(kv_in @ wv + bv, Tk)
    s = jnp.einsum("bhqd,bhkd->bhqk", q, k) / math.sqrt(d_k)
    s = jnp.where(mask == 0, -1e9, s)
    p = jax.nn.softmax(s, axis=-1)
    ctx = jnp.einsum("bhqk,bhkd->bhqd", p, v).transpose(0, 2, 1, 3).reshape(B, Tq, D)
    return ctx @ wo + bo


def decoder_forward_reference(params, tgt, enc_output, src_mask, tgt_mask):
    h, eps = params["h"], params["eps"]

    def ln(y, g, b):
        mu = y.mean(-1, keepdims=True)
        var = ((y - mu) ** 2).mean(-1, keepdims=True)
        return (y - mu) / jnp.sqrt(var + eps) * g + b

    x = tgt
    for layer in params["layers"]:
        s = layer["self"]
        a = _ref_mha(x, x, tgt_mask, s["q"][0], s["q"][1], s["k"][0], s["k"][1],
                     s["v"][0], s["v"][1], s["o"][0], s["o"][1], h)
        x = ln(x + a, *layer["ln1"])
        c = layer["cross"]
        a = _ref_mha(x, enc_output, src_mask, c["q"][0], c["q"][1], c["k"][0], c["k"][1],
                     c["v"][0], c["v"][1], c["o"][0], c["o"][1], h)
        x = ln(x + a, *layer["ln2"])
        f = layer["ffn"]
        hid = jnp.maximum(x @ f["w1"][0] + f["w1"][1], 0.0)
        x = ln(x + hid @ f["w2"][0] + f["w2"][1], *layer["ln3"])
    return ln(x, *params["norm"])


# ----------------------------------------------------------------------------
# Main
# ----------------------------------------------------------------------------

if __name__ == "__main__":
    # NOTE: toy shapes — at these sizes runtime is pure per-grid-step overhead; tune at
    # D/d_ff multiples of 128 and longer sequences to see the MXU/DMA behavior.
    num_layers, d_model, h, d_ff, dropout_rate = 2, 32, 4, 64, 0.1
    B, T, S = 2, 8, 8

    key = jax.random.PRNGKey(0)
    k_params, k_tgt, k_enc = jax.random.split(key, 3)

    params = init_decoder_params(k_params, num_layers, d_model, h, d_ff)
    kparams = pack_decoder_params(params, d_model, h)

    tgt = jax.random.normal(k_tgt, (B, T, d_model), jnp.float32)
    enc_output = jax.random.normal(k_enc, (B, S, d_model), jnp.float32)

    # src padding mask: all positions valid; tgt mask: causal (look-ahead).
    src_mask = jnp.ones((B, 1, 1, S), jnp.float32)
    causal = jnp.tril(jnp.ones((T, T), jnp.float32))
    tgt_mask = jnp.broadcast_to(causal[None, None, :, :], (B, 1, T, T))

    out = decoder_forward(kparams, tgt, enc_output, src_mask, tgt_mask)
    out = jax.block_until_ready(out)

    assert out.shape == (B, T, d_model), out.shape
    assert bool(jnp.all(jnp.isfinite(out)))

    ref = decoder_forward_reference(params, tgt, enc_output, src_mask, tgt_mask)
    max_err = float(jnp.max(jnp.abs(out - ref)))
    assert max_err < 5e-2, f"max abs error vs reference: {max_err}"

    print("KERNEL_OK")
</pallas_src>

<mosaic_0001>
module attributes {stable_mosaic.version = 11 : i64} {
  func.func @_decoder_kernel(%arg0: i32, %arg1: i32, %arg2: memref<1x8x32xf32, #tpu.memory_space<vmem>>, %arg3: memref<1x8x32xf32, #tpu.memory_space<vmem>>, %arg4: memref<1x8x8xf32, #tpu.memory_space<vmem>>, %arg5: memref<1x1x8xf32, #tpu.memory_space<vmem>>, %arg6: memref<1x32x96xbf16, #tpu.memory_space<vmem>>, %arg7: memref<1x1x96xf32, #tpu.memory_space<vmem>>, %arg8: memref<1x32x32xbf16, #tpu.memory_space<vmem>>, %arg9: memref<1x1x32xf32, #tpu.memory_space<vmem>>, %arg10: memref<1x1x32xf32, #tpu.memory_space<vmem>>, %arg11: memref<1x1x32xf32, #tpu.memory_space<vmem>>, %arg12: memref<1x32x32xbf16, #tpu.memory_space<vmem>>, %arg13: memref<1x1x32xf32, #tpu.memory_space<vmem>>, %arg14: memref<1x32x64xbf16, #tpu.memory_space<vmem>>, %arg15: memref<1x1x64xf32, #tpu.memory_space<vmem>>, %arg16: memref<1x32x32xbf16, #tpu.memory_space<vmem>>, %arg17: memref<1x1x32xf32, #tpu.memory_space<vmem>>, %arg18: memref<1x1x32xf32, #tpu.memory_space<vmem>>, %arg19: memref<1x1x32xf32, #tpu.memory_space<vmem>>, %arg20: memref<1x32x64xbf16, #tpu.memory_space<vmem>>, %arg21: memref<1x1x64xf32, #tpu.memory_space<vmem>>, %arg22: memref<1x64x32xbf16, #tpu.memory_space<vmem>>, %arg23: memref<1x1x32xf32, #tpu.memory_space<vmem>>, %arg24: memref<1x1x32xf32, #tpu.memory_space<vmem>>, %arg25: memref<1x1x32xf32, #tpu.memory_space<vmem>>, %arg26: memref<1x32xf32, #tpu.memory_space<vmem>>, %arg27: memref<1x32xf32, #tpu.memory_space<vmem>>, %arg28: memref<1x8x32xf32, #tpu.memory_space<vmem>>, %arg29: memref<2x8x32xf32, #tpu.memory_space<vmem>>) attributes {dimension_semantics = [#tpu.dimension_semantics<arbitrary>, #tpu.dimension_semantics<arbitrary>], iteration_bounds = array<i64: 2, 2>, scalar_prefetch = 0 : i64, scratch_operands = 1 : i64, tpu.core_type = #tpu.core_type<tc>, window_params = [{transform_indices = @transform_0, window_bounds = array<i64: 1, 8, 32>}, {transform_indices = @transform_1, window_bounds = array<i64: 1, 8, 32>}, {transform_indices = @transform_2, window_bounds = array<i64: 1, 8, 8>}, {transform_indices = @transform_3, window_bounds = array<i64: 1, 1, 8>}, {transform_indices = @transform_4, window_bounds = array<i64: 1, 32, 96>}, {transform_indices = @transform_5, window_bounds = array<i64: 1, 1, 96>}, {transform_indices = @transform_6, window_bounds = array<i64: 1, 32, 32>}, {transform_indices = @transform_7, window_bounds = array<i64: 1, 1, 32>}, {transform_indices = @transform_8, window_bounds = array<i64: 1, 1, 32>}, {transform_indices = @transform_9, window_bounds = array<i64: 1, 1, 32>}, {transform_indices = @transform_10, window_bounds = array<i64: 1, 32, 32>}, {transform_indices = @transform_11, window_bounds = array<i64: 1, 1, 32>}, {transform_indices = @transform_12, window_bounds = array<i64: 1, 32, 64>}, {transform_indices = @transform_13, window_bounds = array<i64: 1, 1, 64>}, {transform_indices = @transform_14, window_bounds = array<i64: 1, 32, 32>}, {transform_indices = @transform_15, window_bounds = array<i64: 1, 1, 32>}, {transform_indices = @transform_16, window_bounds = array<i64: 1, 1, 32>}, {transform_indices = @transform_17, window_bounds = array<i64: 1, 1, 32>}, {transform_indices = @transform_18, window_bounds = array<i64: 1, 32, 64>}, {transform_indices = @transform_19, window_bounds = array<i64: 1, 1, 64>}, {transform_indices = @transform_20, window_bounds = array<i64: 1, 64, 32>}, {transform_indices = @transform_21, window_bounds = array<i64: 1, 1, 32>}, {transform_indices = @transform_22, window_bounds = array<i64: 1, 1, 32>}, {transform_indices = @transform_23, window_bounds = array<i64: 1, 1, 32>}, {pipeline_mode = #tpu.pipeline_mode<synchronous>, transform_indices = @transform_24, window_bounds = array<i64: 1, 32>}, {pipeline_mode = #tpu.pipeline_mode<synchronous>, transform_indices = @transform_25, window_bounds = array<i64: 1, 32>}, {transform_indices = @transform_26, window_bounds = array<i64: 1, 8, 32>}]} {
    %c0_i32 = arith.constant 0 : i32
    %0 = arith.cmpi eq, %arg0, %c0_i32 : i32
    %1 = arith.extui %0 : i1 to i32
    %c0_i32_0 = arith.constant 0 : i32
    %2 = arith.cmpi ne, %1, %c0_i32_0 : i32
    scf.if %2 {
      %c0_128 = arith.constant 0 : index
      %c0_129 = arith.constant 0 : index
      %c0_130 = arith.constant 0 : index
      %335 = vector.load %arg2[%c0_128, %c0_129, %c0_130] : memref<1x8x32xf32, #tpu.memory_space<vmem>>, vector<1x8x32xf32>
      %336 = vector.shape_cast %335 : vector<1x8x32xf32> to vector<8x32xf32>
      %337 = arith.index_cast %arg1 : i32 to index
      %c0_131 = arith.constant 0 : index
      %c0_132 = arith.constant 0 : index
      %338 = vector.load %arg29[%337, %c0_131, %c0_132] : memref<2x8x32xf32, #tpu.memory_space<vmem>>, vector<1x8x32xf32>
      %339 = vector.shape_cast %338 : vector<1x8x32xf32> to vector<8x32xf32>
      %340 = vector.shape_cast %336 : vector<8x32xf32> to vector<1x8x32xf32>
      tpu.vector_store %arg29[%337, %c0_131, %c0_132], %340 {strides = array<i32>} : memref<2x8x32xf32, #tpu.memory_space<vmem>>, vector<1x8x32xf32>,
    } else {
    }
    %3 = arith.index_cast %arg1 : i32 to index
    %c0 = arith.constant 0 : index
    %c0_1 = arith.constant 0 : index
    %4 = vector.load %arg29[%3, %c0, %c0_1] : memref<2x8x32xf32, #tpu.memory_space<vmem>>, vector<1x8x32xf32>
    %5 = vector.shape_cast %4 : vector<1x8x32xf32> to vector<8x32xf32>
    %c0_2 = arith.constant 0 : index
    %c0_3 = arith.constant 0 : index
    %c0_4 = arith.constant 0 : index
    %6 = vector.load %arg3[%c0_2, %c0_3, %c0_4] : memref<1x8x32xf32, #tpu.memory_space<vmem>>, vector<1x8x32xf32>
    %7 = vector.shape_cast %6 : vector<1x8x32xf32> to vector<8x32xf32>
    %8 = arith.truncf %7 : vector<8x32xf32> to vector<8x32xbf16>
    %9 = arith.truncf %5 : vector<8x32xf32> to vector<8x32xbf16>
    %c0_5 = arith.constant 0 : index
    %c0_6 = arith.constant 0 : index
    %c0_7 = arith.constant 0 : index
    %10 = vector.load %arg6[%c0_5, %c0_6, %c0_7] : memref<1x32x96xbf16, #tpu.memory_space<vmem>>, vector<1x32x96xbf16>
    %11 = vector.shape_cast %10 : vector<1x32x96xbf16> to vector<32x96xbf16>
    %cst = arith.constant dense<0.000000e+00> : vector<8x96xf32>
    %12 = tpu.matmul %9, %11, %cst {dimension_numbers = #tpu.dot_dimension_numbers<[1], [0], [0], [1], [0, 0, 1, 1], [], []>} : vector<8x32xbf16>, vector<32x96xbf16>, vector<8x96xf32> -> vector<8x96xf32>
    %c0_8 = arith.constant 0 : index
    %c0_9 = arith.constant 0 : index
    %c0_10 = arith.constant 0 : index
    %13 = vector.load %arg7[%c0_8, %c0_9, %c0_10] : memref<1x1x96xf32, #tpu.memory_space<vmem>>, vector<1x1x96xf32>
    %14 = vector.shape_cast %13 : vector<1x1x96xf32> to vector<1x96xf32>
    %15 = vector.broadcast %14 : vector<1x96xf32> to vector<8x96xf32>
    %16 = arith.addf %12, %15 : vector<8x96xf32>
    %17 = vector.extract_strided_slice %16 {offsets = [0, 0], sizes = [8, 32], strides = [1, 1]} : vector<8x96xf32> to vector<8x32xf32>
    %18 = vector.extract_strided_slice %16 {offsets = [0, 32], sizes = [8, 32], strides = [1, 1]} : vector<8x96xf32> to vector<8x32xf32>
    %19 = vector.extract_strided_slice %16 {offsets = [0, 64], sizes = [8, 32], strides = [1, 1]} : vector<8x96xf32> to vector<8x32xf32>
    %c0_11 = arith.constant 0 : index
    %c0_12 = arith.constant 0 : index
    %c0_13 = arith.constant 0 : index
    %20 = vector.load %arg4[%c0_11, %c0_12, %c0_13] : memref<1x8x8xf32, #tpu.memory_space<vmem>>, vector<1x8x8xf32>
    %21 = vector.shape_cast %20 : vector<1x8x8xf32> to vector<8x8xf32>
    %22 = vector.extract_strided_slice %17 {offsets = [0, 0], sizes = [8, 8], strides = [1, 1]} : vector<8x32xf32> to vector<8x8xf32>
    %23 = arith.truncf %22 : vector<8x8xf32> to vector<8x8xbf16>
    %24 = vector.extract_strided_slice %18 {offsets = [0, 0], sizes = [8, 8], strides = [1, 1]} : vector<8x32xf32> to vector<8x8xf32>
    %25 = arith.truncf %24 : vector<8x8xf32> to vector<8x8xbf16>
    %26 = vector.extract_strided_slice %19 {offsets = [0, 0], sizes = [8, 8], strides = [1, 1]} : vector<8x32xf32> to vector<8x8xf32>
    %27 = arith.truncf %26 : vector<8x8xf32> to vector<8x8xbf16>
    %cst_14 = arith.constant dense<0.000000e+00> : vector<8x8xf32>
    %28 = tpu.matmul %23, %25, %cst_14 {dimension_numbers = #tpu.dot_dimension_numbers<[1], [1], [0], [0], [0, 0, 1, 0], [], []>} : vector<8x8xbf16>, vector<8x8xbf16>, vector<8x8xf32> -> vector<8x8xf32>
    %29 = arith.addf %28, %21 : vector<8x8xf32>
    %cst_15 = arith.constant dense<0xFF800000> : vector<8xf32>
    %30 = vector.multi_reduction <maximumf>, %29, %cst_15 [1] : vector<8x8xf32> to vector<8xf32>
    %31 = vector.shape_cast %30 : vector<8xf32> to vector<8x1xf32>
    %32 = vector.broadcast %31 : vector<8x1xf32> to vector<8x8xf32>
    %33 = arith.subf %29, %32 : vector<8x8xf32>
    %34 = math.exp %33 : vector<8x8xf32>
    %cst_16 = arith.constant dense<0.000000e+00> : vector<8xf32>
    %35 = vector.multi_reduction <add>, %34, %cst_16 [1] : vector<8x8xf32> to vector<8xf32>
    %36 = vector.shape_cast %35 : vector<8xf32> to vector<8x1xf32>
    %37 = tpu.reciprocal %36 {approx = true} : vector<8x1xf32> -> vector<8x1xf32>
    %38 = vector.broadcast %37 : vector<8x1xf32> to vector<8x8xf32>
    %39 = arith.mulf %34, %38 : vector<8x8xf32>
    %40 = arith.truncf %39 : vector<8x8xf32> to vector<8x8xbf16>
    %cst_17 = arith.constant dense<0.000000e+00> : vector<8x8xf32>
    %41 = tpu.matmul %40, %27, %cst_17 {dimension_numbers = #tpu.dot_dimension_numbers<[1], [0], [0], [1], [0, 0, 1, 1], [], []>} : vector<8x8xbf16>, vector<8x8xbf16>, vector<8x8xf32> -> vector<8x8xf32>
    %42 = vector.extract_strided_slice %17 {offsets = [0, 8], sizes = [8, 8], strides = [1, 1]} : vector<8x32xf32> to vector<8x8xf32>
    %43 = arith.truncf %42 : vector<8x8xf32> to vector<8x8xbf16>
    %44 = vector.extract_strided_slice %18 {offsets = [0, 8], sizes = [8, 8], strides = [1, 1]} : vector<8x32xf32> to vector<8x8xf32>
    %45 = arith.truncf %44 : vector<8x8xf32> to vector<8x8xbf16>
    %46 = vector.extract_strided_slice %19 {offsets = [0, 8], sizes = [8, 8], strides = [1, 1]} : vector<8x32xf32> to vector<8x8xf32>
    %47 = arith.truncf %46 : vector<8x8xf32> to vector<8x8xbf16>
    %cst_18 = arith.constant dense<0.000000e+00> : vector<8x8xf32>
    %48 = tpu.matmul %43, %45, %cst_18 {dimension_numbers = #tpu.dot_dimension_numbers<[1], [1], [0], [0], [0, 0, 1, 0], [], []>} : vector<8x8xbf16>, vector<8x8xbf16>, vector<8x8xf32> -> vector<8x8xf32>
    %49 = arith.addf %48, %21 : vector<8x8xf32>
    %cst_19 = arith.constant dense<0xFF800000> : vector<8xf32>
    %50 = vector.multi_reduction <maximumf>, %49, %cst_19 [1] : vector<8x8xf32> to vector<8xf32>
    %51 = vector.shape_cast %50 : vector<8xf32> to vector<8x1xf32>
    %52 = vector.broadcast %51 : vector<8x1xf32> to vector<8x8xf32>
    %53 = arith.subf %49, %52 : vector<8x8xf32>
    %54 = math.exp %53 : vector<8x8xf32>
    %cst_20 = arith.constant dense<0.000000e+00> : vector<8xf32>
    %55 = vector.multi_reduction <add>, %54, %cst_20 [1] : vector<8x8xf32> to vector<8xf32>
    %56 = vector.shape_cast %55 : vector<8xf32> to vector<8x1xf32>
    %57 = tpu.reciprocal %56 {approx = true} : vector<8x1xf32> -> vector<8x1xf32>
    %58 = vector.broadcast %57 : vector<8x1xf32> to vector<8x8xf32>
    %59 = arith.mulf %54, %58 : vector<8x8xf32>
    %60 = arith.truncf %59 : vector<8x8xf32> to vector<8x8xbf16>
    %cst_21 = arith.constant dense<0.000000e+00> : vector<8x8xf32>
    %61 = tpu.matmul %60, %47, %cst_21 {dimension_numbers = #tpu.dot_dimension_numbers<[1], [0], [0], [1], [0, 0, 1, 1], [], []>} : vector<8x8xbf16>, vector<8x8xbf16>, vector<8x8xf32> -> vector<8x8xf32>
    %62 = vector.extract_strided_slice %17 {offsets = [0, 16], sizes = [8, 8], strides = [1, 1]} : vector<8x32xf32> to vector<8x8xf32>
    %63 = arith.truncf %62 : vector<8x8xf32> to vector<8x8xbf16>
    %64 = vector.extract_strided_slice %18 {offsets = [0, 16], sizes = [8, 8], strides = [1, 1]} : vector<8x32xf32> to vector<8x8xf32>
    %65 = arith.truncf %64 : vector<8x8xf32> to vector<8x8xbf16>
    %66 = vector.extract_strided_slice %19 {offsets = [0, 16], sizes = [8, 8], strides = [1, 1]} : vector<8x32xf32> to vector<8x8xf32>
    %67 = arith.truncf %66 : vector<8x8xf32> to vector<8x8xbf16>
    %cst_22 = arith.constant dense<0.000000e+00> : vector<8x8xf32>
    %68 = tpu.matmul %63, %65, %cst_22 {dimension_numbers = #tpu.dot_dimension_numbers<[1], [1], [0], [0], [0, 0, 1, 0], [], []>} : vector<8x8xbf16>, vector<8x8xbf16>, vector<8x8xf32> -> vector<8x8xf32>
    %69 = arith.addf %68, %21 : vector<8x8xf32>
    %cst_23 = arith.constant dense<0xFF800000> : vector<8xf32>
    %70 = vector.multi_reduction <maximumf>, %69, %cst_23 [1] : vector<8x8xf32> to vector<8xf32>
    %71 = vector.shape_cast %70 : vector<8xf32> to vector<8x1xf32>
    %72 = vector.broadcast %71 : vector<8x1xf32> to vector<8x8xf32>
    %73 = arith.subf %69, %72 : vector<8x8xf32>
    %74 = math.exp %73 : vector<8x8xf32>
    %cst_24 = arith.constant dense<0.000000e+00> : vector<8xf32>
    %75 = vector.multi_reduction <add>, %74, %cst_24 [1] : vector<8x8xf32> to vector<8xf32>
    %76 = vector.shape_cast %75 : vector<8xf32> to vector<8x1xf32>
    %77 = tpu.reciprocal %76 {approx = true} : vector<8x1xf32> -> vector<8x1xf32>
    %78 = vector.broadcast %77 : vector<8x1xf32> to vector<8x8xf32>
    %79 = arith.mulf %74, %78 : vector<8x8xf32>
    %80 = arith.truncf %79 : vector<8x8xf32> to vector<8x8xbf16>
    %cst_25 = arith.constant dense<0.000000e+00> : vector<8x8xf32>
    %81 = tpu.matmul %80, %67, %cst_25 {dimension_numbers = #tpu.dot_dimension_numbers<[1], [0], [0], [1], [0, 0, 1, 1], [], []>} : vector<8x8xbf16>, vector<8x8xbf16>, vector<8x8xf32> -> vector<8x8xf32>
    %82 = vector.extract_strided_slice %17 {offsets = [0, 24], sizes = [8, 8], strides = [1, 1]} : vector<8x32xf32> to vector<8x8xf32>
    %83 = arith.truncf %82 : vector<8x8xf32> to vector<8x8xbf16>
    %84 = vector.extract_strided_slice %18 {offsets = [0, 24], sizes = [8, 8], strides = [1, 1]} : vector<8x32xf32> to vector<8x8xf32>
    %85 = arith.truncf %84 : vector<8x8xf32> to vector<8x8xbf16>
    %86 = vector.extract_strided_slice %19 {offsets = [0, 24], sizes = [8, 8], strides = [1, 1]} : vector<8x32xf32> to vector<8x8xf32>
    %87 = arith.truncf %86 : vector<8x8xf32> to vector<8x8xbf16>
    %cst_26 = arith.constant dense<0.000000e+00> : vector<8x8xf32>
    %88 = tpu.matmul %83, %85, %cst_26 {dimension_numbers = #tpu.dot_dimension_numbers<[1], [1], [0], [0], [0, 0, 1, 0], [], []>} : vector<8x8xbf16>, vector<8x8xbf16>, vector<8x8xf32> -> vector<8x8xf32>
    %89 = arith.addf %88, %21 : vector<8x8xf32>
    %cst_27 = arith.constant dense<0xFF800000> : vector<8xf32>
    %90 = vector.multi_reduction <maximumf>, %89, %cst_27 [1] : vector<8x8xf32> to vector<8xf32>
    %91 = vector.shape_cast %90 : vector<8xf32> to vector<8x1xf32>
    %92 = vector.broadcast %91 : vector<8x1xf32> to vector<8x8xf32>
    %93 = arith.subf %89, %92 : vector<8x8xf32>
    %94 = math.exp %93 : vector<8x8xf32>
    %cst_28 = arith.constant dense<0.000000e+00> : vector<8xf32>
    %95 = vector.multi_reduction <add>, %94, %cst_28 [1] : vector<8x8xf32> to vector<8xf32>
    %96 = vector.shape_cast %95 : vector<8xf32> to vector<8x1xf32>
    %97 = tpu.reciprocal %96 {approx = true} : vector<8x1xf32> -> vector<8x1xf32>
    %98 = vector.broadcast %97 : vector<8x1xf32> to vector<8x8xf32>
    %99 = arith.mulf %94, %98 : vector<8x8xf32>
    %100 = arith.truncf %99 : vector<8x8xf32> to vector<8x8xbf16>
    %cst_29 = arith.constant dense<0.000000e+00> : vector<8x8xf32>
    %101 = tpu.matmul %100, %87, %cst_29 {dimension_numbers = #tpu.dot_dimension_numbers<[1], [0], [0], [1], [0, 0, 1, 1], [], []>} : vector<8x8xbf16>, vector<8x8xbf16>, vector<8x8xf32> -> vector<8x8xf32>
    %102 = tpu.concatenate %41, %61, %81, %101 in 1 : vector<8x8xf32>, vector<8x8xf32>, vector<8x8xf32>, vector<8x8xf32> -> vector<8x32xf32>
    %103 = arith.truncf %102 : vector<8x32xf32> to vector<8x32xbf16>
    %c0_30 = arith.constant 0 : index
    %c0_31 = arith.constant 0 : index
    %c0_32 = arith.constant 0 : index
    %104 = vector.load %arg8[%c0_30, %c0_31, %c0_32] : memref<1x32x32xbf16, #tpu.memory_space<vmem>>, vector<1x32x32xbf16>
    %105 = vector.shape_cast %104 : vector<1x32x32xbf16> to vector<32x32xbf16>
    %cst_33 = arith.constant dense<0.000000e+00> : vector<8x32xf32>
    %106 = tpu.matmul %103, %105, %cst_33 {dimension_numbers = #tpu.dot_dimension_numbers<[1], [0], [0], [1], [0, 0, 1, 1], [], []>} : vector<8x32xbf16>, vector<32x32xbf16>, vector<8x32xf32> -> vector<8x32xf32>
    %c0_34 = arith.constant 0 : index
    %c0_35 = arith.constant 0 : index
    %c0_36 = arith.constant 0 : index
    %107 = vector.load %arg9[%c0_34, %c0_35, %c0_36] : memref<1x1x32xf32, #tpu.memory_space<vmem>>, vector<1x1x32xf32>
    %108 = vector.shape_cast %107 : vector<1x1x32xf32> to vector<1x32xf32>
    %109 = vector.broadcast %108 : vector<1x32xf32> to vector<8x32xf32>
    %110 = arith.addf %106, %109 : vector<8x32xf32>
    %111 = arith.addf %5, %110 : vector<8x32xf32>
    %cst_37 = arith.constant dense<0.000000e+00> : vector<8xf32>
    %112 = vector.multi_reduction <add>, %111, %cst_37 [1] : vector<8x32xf32> to vector<8xf32>
    %113 = vector.shape_cast %112 : vector<8xf32> to vector<8x1xf32>
    %cst_38 = arith.constant 3.200000e+01 : f32
    %114 = vector.broadcast %cst_38 : f32 to vector<8x1xf32>
    %115 = arith.divf %113, %114 : vector<8x1xf32>
    %116 = vector.broadcast %115 : vector<8x1xf32> to vector<8x32xf32>
    %117 = arith.subf %111, %116 : vector<8x32xf32>
    %118 = vector.broadcast %115 : vector<8x1xf32> to vector<8x32xf32>
    %119 = arith.subf %111, %118 : vector<8x32xf32>
    %120 = arith.mulf %117, %119 : vector<8x32xf32>
    %cst_39 = arith.constant dense<0.000000e+00> : vector<8xf32>
    %121 = vector.multi_reduction <add>, %120, %cst_39 [1] : vector<8x32xf32> to vector<8xf32>
    %122 = vector.shape_cast %121 : vector<8xf32> to vector<8x1xf32>
    %cst_40 = arith.constant 3.200000e+01 : f32
    %123 = vector.broadcast %cst_40 : f32 to vector<8x1xf32>
    %124 = arith.divf %122, %123 : vector<8x1xf32>
    %125 = vector.broadcast %115 : vector<8x1xf32> to vector<8x32xf32>
    %126 = arith.subf %111, %125 : vector<8x32xf32>
    %cst_41 = arith.constant 9.99999974E-6 : f32
    %127 = vector.broadcast %cst_41 : f32 to vector<8x1xf32>
    %128 = arith.addf %124, %127 : vector<8x1xf32>
    %129 = math.rsqrt %128 : vector<8x1xf32>
    %130 = vector.broadcast %129 : vector<8x1xf32> to vector<8x32xf32>
    %131 = arith.mulf %126, %130 : vector<8x32xf32>
    %c0_42 = arith.constant 0 : index
    %c0_43 = arith.constant 0 : index
    %c0_44 = arith.constant 0 : index
    %132 = vector.load %arg10[%c0_42, %c0_43, %c0_44] : memref<1x1x32xf32, #tpu.memory_space<vmem>>, vector<1x1x32xf32>
    %133 = vector.shape_cast %132 : vector<1x1x32xf32> to vector<1x32xf32>
    %134 = vector.broadcast %133 : vector<1x32xf32> to vector<8x32xf32>
    %135 = arith.mulf %131, %134 : vector<8x32xf32>
    %c0_45 = arith.constant 0 : index
    %c0_46 = arith.constant 0 : index
    %c0_47 = arith.constant 0 : index
    %136 = vector.load %arg11[%c0_45, %c0_46, %c0_47] : memref<1x1x32xf32, #tpu.memory_space<vmem>>, vector<1x1x32xf32>
    %137 = vector.shape_cast %136 : vector<1x1x32xf32> to vector<1x32xf32>
    %138 = vector.broadcast %137 : vector<1x32xf32> to vector<8x32xf32>
    %139 = arith.addf %135, %138 : vector<8x32xf32>
    %140 = arith.truncf %139 : vector<8x32xf32> to vector<8x32xbf16>
    %c0_48 = arith.constant 0 : index
    %c0_49 = arith.constant 0 : index
    %c0_50 = arith.constant 0 : index
    %141 = vector.load %arg12[%c0_48, %c0_49, %c0_50] : memref<1x32x32xbf16, #tpu.memory_space<vmem>>, vector<1x32x32xbf16>
    %142 = vector.shape_cast %141 : vector<1x32x32xbf16> to vector<32x32xbf16>
    %cst_51 = arith.constant dense<0.000000e+00> : vector<8x32xf32>
    %143 = tpu.matmul %140, %142, %cst_51 {dimension_numbers = #tpu.dot_dimension_numbers<[1], [0], [0], [1], [0, 0, 1, 1], [], []>} : vector<8x32xbf16>, vector<32x32xbf16>, vector<8x32xf32> -> vector<8x32xf32>
    %c0_52 = arith.constant 0 : index
    %c0_53 = arith.constant 0 : index
    %c0_54 = arith.constant 0 : index
    %144 = vector.load %arg13[%c0_52, %c0_53, %c0_54] : memref<1x1x32xf32, #tpu.memory_space<vmem>>, vector<1x1x32xf32>
    %145 = vector.shape_cast %144 : vector<1x1x32xf32> to vector<1x32xf32>
    %146 = vector.broadcast %145 : vector<1x32xf32> to vector<8x32xf32>
    %147 = arith.addf %143, %146 : vector<8x32xf32>
    %c0_55 = arith.constant 0 : index
    %c0_56 = arith.constant 0 : index
    %c0_57 = arith.constant 0 : index
    %148 = vector.load %arg14[%c0_55, %c0_56, %c0_57] : memref<1x32x64xbf16, #tpu.memory_space<vmem>>, vector<1x32x64xbf16>
    %149 = vector.shape_cast %148 : vector<1x32x64xbf16> to vector<32x64xbf16>
    %cst_58 = arith.constant dense<0.000000e+00> : vector<8x64xf32>
    %150 = tpu.matmul %8, %149, %cst_58 {dimension_numbers = #tpu.dot_dimension_numbers<[1], [0], [0], [1], [0, 0, 1, 1], [], []>} : vector<8x32xbf16>, vector<32x64xbf16>, vector<8x64xf32> -> vector<8x64xf32>
    %c0_59 = arith.constant 0 : index
    %c0_60 = arith.constant 0 : index
    %c0_61 = arith.constant 0 : index
    %151 = vector.load %arg15[%c0_59, %c0_60, %c0_61] : memref<1x1x64xf32, #tpu.memory_space<vmem>>, vector<1x1x64xf32>
    %152 = vector.shape_cast %151 : vector<1x1x64xf32> to vector<1x64xf32>
    %153 = vector.broadcast %152 : vector<1x64xf32> to vector<8x64xf32>
    %154 = arith.addf %150, %153 : vector<8x64xf32>
    %155 = vector.extract_strided_slice %154 {offsets = [0, 0], sizes = [8, 32], strides = [1, 1]} : vector<8x64xf32> to vector<8x32xf32>
    %156 = vector.extract_strided_slice %154 {offsets = [0, 32], sizes = [8, 32], strides = [1, 1]} : vector<8x64xf32> to vector<8x32xf32>
    %c0_62 = arith.constant 0 : index
    %c0_63 = arith.constant 0 : index
    %c0_64 = arith.constant 0 : index
    %157 = vector.load %arg5[%c0_62, %c0_63, %c0_64] : memref<1x1x8xf32, #tpu.memory_space<vmem>>, vector<1x1x8xf32>
    %158 = vector.shape_cast %157 : vector<1x1x8xf32> to vector<1x8xf32>
    %159 = vector.extract_strided_slice %147 {offsets = [0, 0], sizes = [8, 8], strides = [1, 1]} : vector<8x32xf32> to vector<8x8xf32>
    %160 = arith.truncf %159 : vector<8x8xf32> to vector<8x8xbf16>
    %161 = vector.extract_strided_slice %155 {offsets = [0, 0], sizes = [8, 8], strides = [1, 1]} : vector<8x32xf32> to vector<8x8xf32>
    %162 = arith.truncf %161 : vector<8x8xf32> to vector<8x8xbf16>
    %163 = vector.extract_strided_slice %156 {offsets = [0, 0], sizes = [8, 8], strides = [1, 1]} : vector<8x32xf32> to vector<8x8xf32>
    %164 = arith.truncf %163 : vector<8x8xf32> to vector<8x8xbf16>
    %cst_65 = arith.constant dense<0.000000e+00> : vector<8x8xf32>
    %165 = tpu.matmul %160, %162, %cst_65 {dimension_numbers = #tpu.dot_dimension_numbers<[1], [1], [0], [0], [0, 0, 1, 0], [], []>} : vector<8x8xbf16>, vector<8x8xbf16>, vector<8x8xf32> -> vector<8x8xf32>
    %166 = vector.broadcast %158 : vector<1x8xf32> to vector<8x8xf32>
    %167 = arith.addf %165, %166 : vector<8x8xf32>
    %cst_66 = arith.constant dense<0xFF800000> : vector<8xf32>
    %168 = vector.multi_reduction <maximumf>, %167, %cst_66 [1] : vector<8x8xf32> to vector<8xf32>
    %169 = vector.shape_cast %168 : vector<8xf32> to vector<8x1xf32>
    %170 = vector.broadcast %169 : vector<8x1xf32> to vector<8x8xf32>
    %171 = arith.subf %167, %170 : vector<8x8xf32>
    %172 = math.exp %171 : vector<8x8xf32>
    %cst_67 = arith.constant dense<0.000000e+00> : vector<8xf32>
    %173 = vector.multi_reduction <add>, %172, %cst_67 [1] : vector<8x8xf32> to vector<8xf32>
    %174 = vector.shape_cast %173 : vector<8xf32> to vector<8x1xf32>
    %175 = tpu.reciprocal %174 {approx = true} : vector<8x1xf32> -> vector<8x1xf32>
    %176 = vector.broadcast %175 : vector<8x1xf32> to vector<8x8xf32>
    %177 = arith.mulf %172, %176 : vector<8x8xf32>
    %178 = arith.truncf %177 : vector<8x8xf32> to vector<8x8xbf16>
    %cst_68 = arith.constant dense<0.000000e+00> : vector<8x8xf32>
    %179 = tpu.matmul %178, %164, %cst_68 {dimension_numbers = #tpu.dot_dimension_numbers<[1], [0], [0], [1], [0, 0, 1, 1], [], []>} : vector<8x8xbf16>, vector<8x8xbf16>, vector<8x8xf32> -> vector<8x8xf32>
    %180 = vector.extract_strided_slice %147 {offsets = [0, 8], sizes = [8, 8], strides = [1, 1]} : vector<8x32xf32> to vector<8x8xf32>
    %181 = arith.truncf %180 : vector<8x8xf32> to vector<8x8xbf16>
    %182 = vector.extract_strided_slice %155 {offsets = [0, 8], sizes = [8, 8], strides = [1, 1]} : vector<8x32xf32> to vector<8x8xf32>
    %183 = arith.truncf %182 : vector<8x8xf32> to vector<8x8xbf16>
    %184 = vector.extract_strided_slice %156 {offsets = [0, 8], sizes = [8, 8], strides = [1, 1]} : vector<8x32xf32> to vector<8x8xf32>
    %185 = arith.truncf %184 : vector<8x8xf32> to vector<8x8xbf16>
    %cst_69 = arith.constant dense<0.000000e+00> : vector<8x8xf32>
    %186 = tpu.matmul %181, %183, %cst_69 {dimension_numbers = #tpu.dot_dimension_numbers<[1], [1], [0], [0], [0, 0, 1, 0], [], []>} : vector<8x8xbf16>, vector<8x8xbf16>, vector<8x8xf32> -> vector<8x8xf32>
    %187 = vector.broadcast %158 : vector<1x8xf32> to vector<8x8xf32>
    %188 = arith.addf %186, %187 : vector<8x8xf32>
    %cst_70 = arith.constant dense<0xFF800000> : vector<8xf32>
    %189 = vector.multi_reduction <maximumf>, %188, %cst_70 [1] : vector<8x8xf32> to vector<8xf32>
    %190 = vector.shape_cast %189 : vector<8xf32> to vector<8x1xf32>
    %191 = vector.broadcast %190 : vector<8x1xf32> to vector<8x8xf32>
    %192 = arith.subf %188, %191 : vector<8x8xf32>
    %193 = math.exp %192 : vector<8x8xf32>
    %cst_71 = arith.constant dense<0.000000e+00> : vector<8xf32>
    %194 = vector.multi_reduction <add>, %193, %cst_71 [1] : vector<8x8xf32> to vector<8xf32>
    %195 = vector.shape_cast %194 : vector<8xf32> to vector<8x1xf32>
    %196 = tpu.reciprocal %195 {approx = true} : vector<8x1xf32> -> vector<8x1xf32>
    %197 = vector.broadcast %196 : vector<8x1xf32> to vector<8x8xf32>
    %198 = arith.mulf %193, %197 : vector<8x8xf32>
    %199 = arith.truncf %198 : vector<8x8xf32> to vector<8x8xbf16>
    %cst_72 = arith.constant dense<0.000000e+00> : vector<8x8xf32>
    %200 = tpu.matmul %199, %185, %cst_72 {dimension_numbers = #tpu.dot_dimension_numbers<[1], [0], [0], [1], [0, 0, 1, 1], [], []>} : vector<8x8xbf16>, vector<8x8xbf16>, vector<8x8xf32> -> vector<8x8xf32>
    %201 = vector.extract_strided_slice %147 {offsets = [0, 16], sizes = [8, 8], strides = [1, 1]} : vector<8x32xf32> to vector<8x8xf32>
    %202 = arith.truncf %201 : vector<8x8xf32> to vector<8x8xbf16>
    %203 = vector.extract_strided_slice %155 {offsets = [0, 16], sizes = [8, 8], strides = [1, 1]} : vector<8x32xf32> to vector<8x8xf32>
    %204 = arith.truncf %203 : vector<8x8xf32> to vector<8x8xbf16>
    %205 = vector.extract_strided_slice %156 {offsets = [0, 16], sizes = [8, 8], strides = [1, 1]} : vector<8x32xf32> to vector<8x8xf32>
    %206 = arith.truncf %205 : vector<8x8xf32> to vector<8x8xbf16>
    %cst_73 = arith.constant dense<0.000000e+00> : vector<8x8xf32>
    %207 = tpu.matmul %202, %204, %cst_73 {dimension_numbers = #tpu.dot_dimension_numbers<[1], [1], [0], [0], [0, 0, 1, 0], [], []>} : vector<8x8xbf16>, vector<8x8xbf16>, vector<8x8xf32> -> vector<8x8xf32>
    %208 = vector.broadcast %158 : vector<1x8xf32> to vector<8x8xf32>
    %209 = arith.addf %207, %208 : vector<8x8xf32>
    %cst_74 = arith.constant dense<0xFF800000> : vector<8xf32>
    %210 = vector.multi_reduction <maximumf>, %209, %cst_74 [1] : vector<8x8xf32> to vector<8xf32>
    %211 = vector.shape_cast %210 : vector<8xf32> to vector<8x1xf32>
    %212 = vector.broadcast %211 : vector<8x1xf32> to vector<8x8xf32>
    %213 = arith.subf %209, %212 : vector<8x8xf32>
    %214 = math.exp %213 : vector<8x8xf32>
    %cst_75 = arith.constant dense<0.000000e+00> : vector<8xf32>
    %215 = vector.multi_reduction <add>, %214, %cst_75 [1] : vector<8x8xf32> to vector<8xf32>
    %216 = vector.shape_cast %215 : vector<8xf32> to vector<8x1xf32>
    %217 = tpu.reciprocal %216 {approx = true} : vector<8x1xf32> -> vector<8x1xf32>
    %218 = vector.broadcast %217 : vector<8x1xf32> to vector<8x8xf32>
    %219 = arith.mulf %214, %218 : vector<8x8xf32>
    %220 = arith.truncf %219 : vector<8x8xf32> to vector<8x8xbf16>
    %cst_76 = arith.constant dense<0.000000e+00> : vector<8x8xf32>
    %221 = tpu.matmul %220, %206, %cst_76 {dimension_numbers = #tpu.dot_dimension_numbers<[1], [0], [0], [1], [0, 0, 1, 1], [], []>} : vector<8x8xbf16>, vector<8x8xbf16>, vector<8x8xf32> -> vector<8x8xf32>
    %222 = vector.extract_strided_slice %147 {offsets = [0, 24], sizes = [8, 8], strides = [1, 1]} : vector<8x32xf32> to vector<8x8xf32>
    %223 = arith.truncf %222 : vector<8x8xf32> to vector<8x8xbf16>
    %224 = vector.extract_strided_slice %155 {offsets = [0, 24], sizes = [8, 8], strides = [1, 1]} : vector<8x32xf32> to vector<8x8xf32>
    %225 = arith.truncf %224 : vector<8x8xf32> to vector<8x8xbf16>
    %226 = vector.extract_strided_slice %156 {offsets = [0, 24], sizes = [8, 8], strides = [1, 1]} : vector<8x32xf32> to vector<8x8xf32>
    %227 = arith.truncf %226 : vector<8x8xf32> to vector<8x8xbf16>
    %cst_77 = arith.constant dense<0.000000e+00> : vector<8x8xf32>
    %228 = tpu.matmul %223, %225, %cst_77 {dimension_numbers = #tpu.dot_dimension_numbers<[1], [1], [0], [0], [0, 0, 1, 0], [], []>} : vector<8x8xbf16>, vector<8x8xbf16>, vector<8x8xf32> -> vector<8x8xf32>
    %229 = vector.broadcast %158 : vector<1x8xf32> to vector<8x8xf32>
    %230 = arith.addf %228, %229 : vector<8x8xf32>
    %cst_78 = arith.constant dense<0xFF800000> : vector<8xf32>
    %231 = vector.multi_reduction <maximumf>, %230, %cst_78 [1] : vector<8x8xf32> to vector<8xf32>
    %232 = vector.shape_cast %231 : vector<8xf32> to vector<8x1xf32>
    %233 = vector.broadcast %232 : vector<8x1xf32> to vector<8x8xf32>
    %234 = arith.subf %230, %233 : vector<8x8xf32>
    %235 = math.exp %234 : vector<8x8xf32>
    %cst_79 = arith.constant dense<0.000000e+00> : vector<8xf32>
    %236 = vector.multi_reduction <add>, %235, %cst_79 [1] : vector<8x8xf32> to vector<8xf32>
    %237 = vector.shape_cast %236 : vector<8xf32> to vector<8x1xf32>
    %238 = tpu.reciprocal %237 {approx = true} : vector<8x1xf32> -> vector<8x1xf32>
    %239 = vector.broadcast %238 : vector<8x1xf32> to vector<8x8xf32>
    %240 = arith.mulf %235, %239 : vector<8x8xf32>
    %241 = arith.truncf %240 : vector<8x8xf32> to vector<8x8xbf16>
    %cst_80 = arith.constant dense<0.000000e+00> : vector<8x8xf32>
    %242 = tpu.matmul %241, %227, %cst_80 {dimension_numbers = #tpu.dot_dimension_numbers<[1], [0], [0], [1], [0, 0, 1, 1], [], []>} : vector<8x8xbf16>, vector<8x8xbf16>, vector<8x8xf32> -> vector<8x8xf32>
    %243 = tpu.concatenate %179, %200, %221, %242 in 1 : vector<8x8xf32>, vector<8x8xf32>, vector<8x8xf32>, vector<8x8xf32> -> vector<8x32xf32>
    %244 = arith.truncf %243 : vector<8x32xf32> to vector<8x32xbf16>
    %c0_81 = arith.constant 0 : index
    %c0_82 = arith.constant 0 : index
    %c0_83 = arith.constant 0 : index
    %245 = vector.load %arg16[%c0_81, %c0_82, %c0_83] : memref<1x32x32xbf16, #tpu.memory_space<vmem>>, vector<1x32x32xbf16>
    %246 = vector.shape_cast %245 : vector<1x32x32xbf16> to vector<32x32xbf16>
    %cst_84 = arith.constant dense<0.000000e+00> : vector<8x32xf32>
    %247 = tpu.matmul %244, %246, %cst_84 {dimension_numbers = #tpu.dot_dimension_numbers<[1], [0], [0], [1], [0, 0, 1, 1], [], []>} : vector<8x32xbf16>, vector<32x32xbf16>, vector<8x32xf32> -> vector<8x32xf32>
    %c0_85 = arith.constant 0 : index
    %c0_86 = arith.constant 0 : index
    %c0_87 = arith.constant 0 : index
    %248 = vector.load %arg17[%c0_85, %c0_86, %c0_87] : memref<1x1x32xf32, #tpu.memory_space<vmem>>, vector<1x1x32xf32>
    %249 = vector.shape_cast %248 : vector<1x1x32xf32> to vector<1x32xf32>
    %250 = vector.broadcast %249 : vector<1x32xf32> to vector<8x32xf32>
    %251 = arith.addf %247, %250 : vector<8x32xf32>
    %252 = arith.addf %139, %251 : vector<8x32xf32>
    %cst_88 = arith.constant dense<0.000000e+00> : vector<8xf32>
    %253 = vector.multi_reduction <add>, %252, %cst_88 [1] : vector<8x32xf32> to vector<8xf32>
    %254 = vector.shape_cast %253 : vector<8xf32> to vector<8x1xf32>
    %cst_89 = arith.constant 3.200000e+01 : f32
    %255 = vector.broadcast %cst_89 : f32 to vector<8x1xf32>
    %256 = arith.divf %254, %255 : vector<8x1xf32>
    %257 = vector.broadcast %256 : vector<8x1xf32> to vector<8x32xf32>
    %258 = arith.subf %252, %257 : vector<8x32xf32>
    %259 = vector.broadcast %256 : vector<8x1xf32> to vector<8x32xf32>
    %260 = arith.subf %252, %259 : vector<8x32xf32>
    %261 = arith.mulf %258, %260 : vector<8x32xf32>
    %cst_90 = arith.constant dense<0.000000e+00> : vector<8xf32>
    %262 = vector.multi_reduction <add>, %261, %cst_90 [1] : vector<8x32xf32> to vector<8xf32>
    %263 = vector.shape_cast %262 : vector<8xf32> to vector<8x1xf32>
    %cst_91 = arith.constant 3.200000e+01 : f32
    %264 = vector.broadcast %cst_91 : f32 to vector<8x1xf32>
    %265 = arith.divf %263, %264 : vector<8x1xf32>
    %266 = vector.broadcast %256 : vector<8x1xf32> to vector<8x32xf32>
    %267 = arith.subf %252, %266 : vector<8x32xf32>
    %cst_92 = arith.constant 9.99999974E-6 : f32
    %268 = vector.broadcast %cst_92 : f32 to vector<8x1xf32>
    %269 = arith.addf %265, %268 : vector<8x1xf32>
    %270 = math.rsqrt %269 : vector<8x1xf32>
    %271 = vector.broadcast %270 : vector<8x1xf32> to vector<8x32xf32>
    %272 = arith.mulf %267, %271 : vector<8x32xf32>
    %c0_93 = arith.constant 0 : index
    %c0_94 = arith.constant 0 : index
    %c0_95 = arith.constant 0 : index
    %273 = vector.load %arg18[%c0_93, %c0_94, %c0_95] : memref<1x1x32xf32, #tpu.memory_space<vmem>>, vector<1x1x32xf32>
    %274 = vector.shape_cast %273 : vector<1x1x32xf32> to vector<1x32xf32>
    %275 = vector.broadcast %274 : vector<1x32xf32> to vector<8x32xf32>
    %276 = arith.mulf %272, %275 : vector<8x32xf32>
    %c0_96 = arith.constant 0 : index
    %c0_97 = arith.constant 0 : index
    %c0_98 = arith.constant 0 : index
    %277 = vector.load %arg19[%c0_96, %c0_97, %c0_98] : memref<1x1x32xf32, #tpu.memory_space<vmem>>, vector<1x1x32xf32>
    %278 = vector.shape_cast %277 : vector<1x1x32xf32> to vector<1x32xf32>
    %279 = vector.broadcast %278 : vector<1x32xf32> to vector<8x32xf32>
    %280 = arith.addf %276, %279 : vector<8x32xf32>
    %281 = arith.truncf %280 : vector<8x32xf32> to vector<8x32xbf16>
    %c0_99 = arith.constant 0 : index
    %c0_100 = arith.constant 0 : index
    %c0_101 = arith.constant 0 : index
    %282 = vector.load %arg20[%c0_99, %c0_100, %c0_101] : memref<1x32x64xbf16, #tpu.memory_space<vmem>>, vector<1x32x64xbf16>
    %283 = vector.shape_cast %282 : vector<1x32x64xbf16> to vector<32x64xbf16>
    %cst_102 = arith.constant dense<0.000000e+00> : vector<8x64xf32>
    %284 = tpu.matmul %281, %283, %cst_102 {dimension_numbers = #tpu.dot_dimension_numbers<[1], [0], [0], [1], [0, 0, 1, 1], [], []>} : vector<8x32xbf16>, vector<32x64xbf16>, vector<8x64xf32> -> vector<8x64xf32>
    %c0_103 = arith.constant 0 : index
    %c0_104 = arith.constant 0 : index
    %c0_105 = arith.constant 0 : index
    %285 = vector.load %arg21[%c0_103, %c0_104, %c0_105] : memref<1x1x64xf32, #tpu.memory_space<vmem>>, vector<1x1x64xf32>
    %286 = vector.shape_cast %285 : vector<1x1x64xf32> to vector<1x64xf32>
    %287 = vector.broadcast %286 : vector<1x64xf32> to vector<8x64xf32>
    %288 = arith.addf %284, %287 : vector<8x64xf32>
    %cst_106 = arith.constant 0.000000e+00 : f32
    %289 = vector.broadcast %cst_106 : f32 to vector<8x64xf32>
    %290 = arith.maximumf %288, %289 : vector<8x64xf32>
    %291 = arith.truncf %290 : vector<8x64xf32> to vector<8x64xbf16>
    %c0_107 = arith.constant 0 : index
    %c0_108 = arith.constant 0 : index
    %c0_109 = arith.constant 0 : index
    %292 = vector.load %arg22[%c0_107, %c0_108, %c0_109] : memref<1x64x32xbf16, #tpu.memory_space<vmem>>, vector<1x64x32xbf16>
    %293 = vector.shape_cast %292 : vector<1x64x32xbf16> to vector<64x32xbf16>
    %cst_110 = arith.constant dense<0.000000e+00> : vector<8x32xf32>
    %294 = tpu.matmul %291, %293, %cst_110 {dimension_numbers = #tpu.dot_dimension_numbers<[1], [0], [0], [1], [0, 0, 1, 1], [], []>} : vector<8x64xbf16>, vector<64x32xbf16>, vector<8x32xf32> -> vector<8x32xf32>
    %c0_111 = arith.constant 0 : index
    %c0_112 = arith.constant 0 : index
    %c0_113 = arith.constant 0 : index
    %295 = vector.load %arg23[%c0_111, %c0_112, %c0_113] : memref<1x1x32xf32, #tpu.memory_space<vmem>>, vector<1x1x32xf32>
    %296 = vector.shape_cast %295 : vector<1x1x32xf32> to vector<1x32xf32>
    %297 = vector.broadcast %296 : vector<1x32xf32> to vector<8x32xf32>
    %298 = arith.addf %294, %297 : vector<8x32xf32>
    %299 = arith.addf %280, %298 : vector<8x32xf32>
    %cst_114 = arith.constant dense<0.000000e+00> : vector<8xf32>
    %300 = vector.multi_reduction <add>, %299, %cst_114 [1] : vector<8x32xf32> to vector<8xf32>
    %301 = vector.shape_cast %300 : vector<8xf32> to vector<8x1xf32>
    %cst_115 = arith.constant 3.200000e+01 : f32
    %302 = vector.broadcast %cst_115 : f32 to vector<8x1xf32>
    %303 = arith.divf %301, %302 : vector<8x1xf32>
    %304 = vector.broadcast %303 : vector<8x1xf32> to vector<8x32xf32>
    %305 = arith.subf %299, %304 : vector<8x32xf32>
    %306 = vector.broadcast %303 : vector<8x1xf32> to vector<8x32xf32>
    %307 = arith.subf %299, %306 : vector<8x32xf32>
    %308 = arith.mulf %305, %307 : vector<8x32xf32>
    %cst_116 = arith.constant dense<0.000000e+00> : vector<8xf32>
    %309 = vector.multi_reduction <add>, %308, %cst_116 [1] : vector<8x32xf32> to vector<8xf32>
    %310 = vector.shape_cast %309 : vector<8xf32> to vector<8x1xf32>
    %cst_117 = arith.constant 3.200000e+01 : f32
    %311 = vector.broadcast %cst_117 : f32 to vector<8x1xf32>
    %312 = arith.divf %310, %311 : vector<8x1xf32>
    %313 = vector.broadcast %303 : vector<8x1xf32> to vector<8x32xf32>
    %314 = arith.subf %299, %313 : vector<8x32xf32>
    %cst_118 = arith.constant 9.99999974E-6 : f32
    %315 = vector.broadcast %cst_118 : f32 to vector<8x1xf32>
    %316 = arith.addf %312, %315 : vector<8x1xf32>
    %317 = math.rsqrt %316 : vector<8x1xf32>
    %318 = vector.broadcast %317 : vector<8x1xf32> to vector<8x32xf32>
    %319 = arith.mulf %314, %318 : vector<8x32xf32>
    %c0_119 = arith.constant 0 : index
    %c0_120 = arith.constant 0 : index
    %c0_121 = arith.constant 0 : index
    %320 = vector.load %arg24[%c0_119, %c0_120, %c0_121] : memref<1x1x32xf32, #tpu.memory_space<vmem>>, vector<1x1x32xf32>
    %321 = vector.shape_cast %320 : vector<1x1x32xf32> to vector<1x32xf32>
    %322 = vector.broadcast %321 : vector<1x32xf32> to vector<8x32xf32>
    %323 = arith.mulf %319, %322 : vector<8x32xf32>
    %c0_122 = arith.constant 0 : index
    %c0_123 = arith.constant 0 : index
    %c0_124 = arith.constant 0 : index
    %324 = vector.load %arg25[%c0_122, %c0_123, %c0_124] : memref<1x1x32xf32, #tpu.memory_space<vmem>>, vector<1x1x32xf32>
    %325 = vector.shape_cast %324 : vector<1x1x32xf32> to vector<1x32xf32>
    %326 = vector.broadcast %325 : vector<1x32xf32> to vector<8x32xf32>
    %327 = arith.addf %323, %326 : vector<8x32xf32>
    %328 = arith.index_cast %arg1 : i32 to index
    %c0_125 = arith.constant 0 : index
    %c0_126 = arith.constant 0 : index
    %329 = vector.load %arg29[%328, %c0_125, %c0_126] : memref<2x8x32xf32, #tpu.memory_space<vmem>>, vector<1x8x32xf32>
    %330 = vector.shape_cast %329 : vector<1x8x32xf32> to vector<8x32xf32>
    %331 = vector.shape_cast %327 : vector<8x32xf32> to vector<1x8x32xf32>
    tpu.vector_store %arg29[%328, %c0_125, %c0_126], %331 {strides = array<i32>} : memref<2x8x32xf32, #tpu.memory_space<vmem>>, vector<1x8x32xf32>,
    %c1_i32 = arith.constant 1 : i32
    %332 = arith.cmpi eq, %arg0, %c1_i32 : i32
    %333 = arith.extui %332 : i1 to i32
    %c0_i32_127 = arith.constant 0 : i32
    %334 = arith.cmpi ne, %333, %c0_i32_127 : i32
    scf.if %334 {
      %cst_128 = arith.constant dense<0.000000e+00> : vector<8xf32>
      %335 = vector.multi_reduction <add>, %327, %cst_128 [1] : vector<8x32xf32> to vector<8xf32>
      %336 = vector.shape_cast %335 : vector<8xf32> to vector<8x1xf32>
      %cst_129 = arith.constant 3.200000e+01 : f32
      %337 = vector.broadcast %cst_129 : f32 to vector<8x1xf32>
      %338 = arith.divf %336, %337 : vector<8x1xf32>
      %339 = vector.broadcast %338 : vector<8x1xf32> to vector<8x32xf32>
      %340 = arith.subf %327, %339 : vector<8x32xf32>
      %341 = vector.broadcast %338 : vector<8x1xf32> to vector<8x32xf32>
      %342 = arith.subf %327, %341 : vector<8x32xf32>
      %343 = arith.mulf %340, %342 : vector<8x32xf32>
      %cst_130 = arith.constant dense<0.000000e+00> : vector<8xf32>
      %344 = vector.multi_reduction <add>, %343, %cst_130 [1] : vector<8x32xf32> to vector<8xf32>
      %345 = vector.shape_cast %344 : vector<8xf32> to vector<8x1xf32>
      %cst_131 = arith.constant 3.200000e+01 : f32
      %346 = vector.broadcast %cst_131 : f32 to vector<8x1xf32>
      %347 = arith.divf %345, %346 : vector<8x1xf32>
      %348 = vector.broadcast %338 : vector<8x1xf32> to vector<8x32xf32>
      %349 = arith.subf %327, %348 : vector<8x32xf32>
      %cst_132 = arith.constant 9.99999974E-6 : f32
      %350 = vector.broadcast %cst_132 : f32 to vector<8x1xf32>
      %351 = arith.addf %347, %350 : vector<8x1xf32>
      %352 = math.rsqrt %351 : vector<8x1xf32>
      %353 = vector.broadcast %352 : vector<8x1xf32> to vector<8x32xf32>
      %354 = arith.mulf %349, %353 : vector<8x32xf32>
      %c0_133 = arith.constant 0 : index
      %c0_134 = arith.constant 0 : index
      %355 = vector.load %arg26[%c0_133, %c0_134] : memref<1x32xf32, #tpu.memory_space<vmem>>, vector<1x32xf32>
      %356 = vector.broadcast %355 : vector<1x32xf32> to vector<8x32xf32>
      %357 = arith.mulf %354, %356 : vector<8x32xf32>
      %c0_135 = arith.constant 0 : index
      %c0_136 = arith.constant 0 : index
      %358 = vector.load %arg27[%c0_135, %c0_136] : memref<1x32xf32, #tpu.memory_space<vmem>>, vector<1x32xf32>
      %359 = vector.broadcast %358 : vector<1x32xf32> to vector<8x32xf32>
      %360 = arith.addf %357, %359 : vector<8x32xf32>
      %c0_137 = arith.constant 0 : index
      %c0_138 = arith.constant 0 : index
      %c0_139 = arith.constant 0 : index
      %361 = vector.load %arg28[%c0_137, %c0_138, %c0_139] : memref<1x8x32xf32, #tpu.memory_space<vmem>>, vector<1x8x32xf32>
      %362 = vector.shape_cast %361 : vector<1x8x32xf32> to vector<8x32xf32>
      %363 = vector.shape_cast %360 : vector<8x32xf32> to vector<1x8x32xf32>
      tpu.vector_store %arg28[%c0_137, %c0_138, %c0_139], %363 {strides = array<i32>} : memref<1x8x32xf32, #tpu.memory_space<vmem>>, vector<1x8x32xf32>,
    } else {
    }
    return
  }
  func.func @transform_0(%arg0: i32, %arg1: i32) -> (i32, i32, i32) {
    %c0_i32 = arith.constant 0 : i32
    %c0_i32_0 = arith.constant 0 : i32
    %c0_i32_1 = arith.constant 0 : i32
    return %arg1, %c0_i32, %c0_i32_0 : i32, i32, i32
  }
  func.func @transform_1(%arg0: i32, %arg1: i32) -> (i32, i32, i32) {
    %c0_i32 = arith.constant 0 : i32
    %c0_i32_0 = arith.constant 0 : i32
    %c0_i32_1 = arith.constant 0 : i32
    return %arg1, %c0_i32, %c0_i32_0 : i32, i32, i32
  }
  func.func @transform_2(%arg0: i32, %arg1: i32) -> (i32, i32, i32) {
    %c0_i32 = arith.constant 0 : i32
    %c0_i32_0 = arith.constant 0 : i32
    %c0_i32_1 = arith.constant 0 : i32
    return %arg1, %c0_i32, %c0_i32_0 : i32, i32, i32
  }
  func.func @transform_3(%arg0: i32, %arg1: i32) -> (i32, i32, i32) {
    %c0_i32 = arith.constant 0 : i32
    %c0_i32_0 = arith.constant 0 : i32
    %c0_i32_1 = arith.constant 0 : i32
    return %arg1, %c0_i32, %c0_i32_0 : i32, i32, i32
  }
  func.func @transform_4(%arg0: i32, %arg1: i32) -> (i32, i32, i32) {
    %c0_i32 = arith.constant 0 : i32
    %c0_i32_0 = arith.constant 0 : i32
    %c0_i32_1 = arith.constant 0 : i32
    return %arg0, %c0_i32, %c0_i32_0 : i32, i32, i32
  }
  func.func @transform_5(%arg0: i32, %arg1: i32) -> (i32, i32, i32) {
    %c0_i32 = arith.constant 0 : i32
    %c0_i32_0 = arith.constant 0 : i32
    %c0_i32_1 = arith.constant 0 : i32
    return %arg0, %c0_i32, %c0_i32_0 : i32, i32, i32
  }
  func.func @transform_6(%arg0: i32, %arg1: i32) -> (i32, i32, i32) {
    %c0_i32 = arith.constant 0 : i32
    %c0_i32_0 = arith.constant 0 : i32
    %c0_i32_1 = arith.constant 0 : i32
    return %arg0, %c0_i32, %c0_i32_0 : i32, i32, i32
  }
  func.func @transform_7(%arg0: i32, %arg1: i32) -> (i32, i32, i32) {
    %c0_i32 = arith.constant 0 : i32
    %c0_i32_0 = arith.constant 0 : i32
    %c0_i32_1 = arith.constant 0 : i32
    return %arg0, %c0_i32, %c0_i32_0 : i32, i32, i32
  }
  func.func @transform_8(%arg0: i32, %arg1: i32) -> (i32, i32, i32) {
    %c0_i32 = arith.constant 0 : i32
    %c0_i32_0 = arith.constant 0 : i32
    %c0_i32_1 = arith.constant 0 : i32
    return %arg0, %c0_i32, %c0_i32_0 : i32, i32, i32
  }
  func.func @transform_9(%arg0: i32, %arg1: i32) -> (i32, i32, i32) {
    %c0_i32 = arith.constant 0 : i32
    %c0_i32_0 = arith.constant 0 : i32
    %c0_i32_1 = arith.constant 0 : i32
    return %arg0, %c0_i32, %c0_i32_0 : i32, i32, i32
  }
  func.func @transform_10(%arg0: i32, %arg1: i32) -> (i32, i32, i32) {
    %c0_i32 = arith.constant 0 : i32
    %c0_i32_0 = arith.constant 0 : i32
    %c0_i32_1 = arith.constant 0 : i32
    return %arg0, %c0_i32, %c0_i32_0 : i32, i32, i32
  }
  func.func @transform_11(%arg0: i32, %arg1: i32) -> (i32, i32, i32) {
    %c0_i32 = arith.constant 0 : i32
    %c0_i32_0 = arith.constant 0 : i32
    %c0_i32_1 = arith.constant 0 : i32
    return %arg0, %c0_i32, %c0_i32_0 : i32, i32, i32
  }
  func.func @transform_12(%arg0: i32, %arg1: i32) -> (i32, i32, i32) {
    %c0_i32 = arith.constant 0 : i32
    %c0_i32_0 = arith.constant 0 : i32
    %c0_i32_1 = arith.constant 0 : i32
    return %arg0, %c0_i32, %c0_i32_0 : i32, i32, i32
  }
  func.func @transform_13(%arg0: i32, %arg1: i32) -> (i32, i32, i32) {
    %c0_i32 = arith.constant 0 : i32
    %c0_i32_0 = arith.constant 0 : i32
    %c0_i32_1 = arith.constant 0 : i32
    return %arg0, %c0_i32, %c0_i32_0 : i32, i32, i32
  }
  func.func @transform_14(%arg0: i32, %arg1: i32) -> (i32, i32, i32) {
    %c0_i32 = arith.constant 0 : i32
    %c0_i32_0 = arith.constant 0 : i32
    %c0_i32_1 = arith.constant 0 : i32
    return %arg0, %c0_i32, %c0_i32_0 : i32, i32, i32
  }
  func.func @transform_15(%arg0: i32, %arg1: i32) -> (i32, i32, i32) {
    %c0_i32 = arith.constant 0 : i32
    %c0_i32_0 = arith.constant 0 : i32
    %c0_i32_1 = arith.constant 0 : i32
    return %arg0, %c0_i32, %c0_i32_0 : i32, i32, i32
  }
  func.func @transform_16(%arg0: i32, %arg1: i32) -> (i32, i32, i32) {
    %c0_i32 = arith.constant 0 : i32
    %c0_i32_0 = arith.constant 0 : i32
    %c0_i32_1 = arith.constant 0 : i32
    return %arg0, %c0_i32, %c0_i32_0 : i32, i32, i32
  }
  func.func @transform_17(%arg0: i32, %arg1: i32) -> (i32, i32, i32) {
    %c0_i32 = arith.constant 0 : i32
    %c0_i32_0 = arith.constant 0 : i32
    %c0_i32_1 = arith.constant 0 : i32
    return %arg0, %c0_i32, %c0_i32_0 : i32, i32, i32
  }
  func.func @transform_18(%arg0: i32, %arg1: i32) -> (i32, i32, i32) {
    %c0_i32 = arith.constant 0 : i32
    %c0_i32_0 = arith.constant 0 : i32
    %c0_i32_1 = arith.constant 0 : i32
    return %arg0, %c0_i32, %c0_i32_0 : i32, i32, i32
  }
  func.func @transform_19(%arg0: i32, %arg1: i32) -> (i32, i32, i32) {
    %c0_i32 = arith.constant 0 : i32
    %c0_i32_0 = arith.constant 0 : i32
    %c0_i32_1 = arith.constant 0 : i32
    return %arg0, %c0_i32, %c0_i32_0 : i32, i32, i32
  }
  func.func @transform_20(%arg0: i32, %arg1: i32) -> (i32, i32, i32) {
    %c0_i32 = arith.constant 0 : i32
    %c0_i32_0 = arith.constant 0 : i32
    %c0_i32_1 = arith.constant 0 : i32
    return %arg0, %c0_i32, %c0_i32_0 : i32, i32, i32
  }
  func.func @transform_21(%arg0: i32, %arg1: i32) -> (i32, i32, i32) {
    %c0_i32 = arith.constant 0 : i32
    %c0_i32_0 = arith.constant 0 : i32
    %c0_i32_1 = arith.constant 0 : i32
    return %arg0, %c0_i32, %c0_i32_0 : i32, i32, i32
  }
  func.func @transform_22(%arg0: i32, %arg1: i32) -> (i32, i32, i32) {
    %c0_i32 = arith.constant 0 : i32
    %c0_i32_0 = arith.constant 0 : i32
    %c0_i32_1 = arith.constant 0 : i32
    return %arg0, %c0_i32, %c0_i32_0 : i32, i32, i32
  }
  func.func @transform_23(%arg0: i32, %arg1: i32) -> (i32, i32, i32) {
    %c0_i32 = arith.constant 0 : i32
    %c0_i32_0 = arith.constant 0 : i32
    %c0_i32_1 = arith.constant 0 : i32
    return %arg0, %c0_i32, %c0_i32_0 : i32, i32, i32
  }
  func.func @transform_24(%arg0: i32, %arg1: i32) -> (i32, i32) {
    %c0_i32 = arith.constant 0 : i32
    %c0_i32_0 = arith.constant 0 : i32
    %c0_i32_1 = arith.constant 0 : i32
    return %c0_i32, %c0_i32_0 : i32, i32
  }
  func.func @transform_25(%arg0: i32, %arg1: i32) -> (i32, i32) {
    %c0_i32 = arith.constant 0 : i32
    %c0_i32_0 = arith.constant 0 : i32
    %c0_i32_1 = arith.constant 0 : i32
    return %c0_i32, %c0_i32_0 : i32, i32
  }
  func.func @transform_26(%arg0: i32, %arg1: i32) -> (i32, i32, i32) {
    %c0_i32 = arith.constant 0 : i32
    %c0_i32_0 = arith.constant 0 : i32
    %c0_i32_1 = arith.constant 0 : i32
    return %arg1, %c0_i32, %c0_i32_0 : i32, i32, i32
  }
}

</mosaic_0001>

<bundles_post_ra>
// kernel: tpu_custom_call.1
= control target key start
LH: loop header
LB: loop body
LE: loop exit
PB: predicated region body
PF: predicated region fallthrough
CT: control target
= control target key end

     0   :  { %s5772_s0 = inlined_call_operand.hbm [shape: f32[2,8,32], index: 0, kind: input, shape index: {}]   ;;  %s5773_s1 = inlined_call_operand.hbm [shape: f32[2,8,32], index: 1, kind: input, shape index: {}]   ;;  %s5774_s2 = inlined_call_operand.hbm [shape: f32[2,8,8], index: 2, kind: input, shape index: {}]   ;;  %s5775_s3 = inlined_call_operand.hbm [shape: f32[2,1,8], index: 3, kind: input, shape index: {}]   ;;  %s5776_s4 = inlined_call_operand.vmem [shape: bf16[2,32,96], index: 4, kind: input, shape index: {}]   ;;  %s5777_s5 = inlined_call_operand.hbm [shape: f32[2,1,96], index: 5, kind: input, shape index: {}]   ;;  %s5778_s6 = inlined_call_operand.vmem [shape: bf16[2,32,32], index: 6, kind: input, shape index: {}]   ;;  %s5779_s7 = inlined_call_operand.hbm [shape: f32[2,1,32], index: 7, kind: input, shape index: {}]   ;;  %s5780_s8 = inlined_call_operand.hbm [shape: f32[2,1,32], index: 8, kind: input, shape index: {}]   ;;  %s5781_s9 = inlined_call_operand.hbm [shape: f32[2,1,32], index: 9, kind: input, shape index: {}]   ;;  %s5782_s10 = inlined_call_operand.vmem [shape: bf16[2,32,32], index: 10, kind: input, shape index: {}]   ;;  %s5783_s11 = inlined_call_operand.hbm [shape: f32[2,1,32], index: 11, kind: input, shape index: {}]   ;;  %s5784_s12 = inlined_call_operand.vmem [shape: bf16[2,32,64], index: 12, kind: input, shape index: {}]   ;;  %s5785_s13 = inlined_call_operand.hbm [shape: f32[2,1,64], index: 13, kind: input, shape index: {}]   ;;  %s5786_s14 = inlined_call_operand.hbm [shape: bf16[2,32,32], index: 14, kind: input, shape index: {}]   ;;  %s5787_s15 = inlined_call_operand.hbm [shape: f32[2,1,32], index: 15, kind: input, shape index: {}]   ;;  %s5788_s16 = inlined_call_operand.hbm [shape: f32[2,1,32], index: 16, kind: input, shape index: {}]   ;;  %s5789_s17 = inlined_call_operand.hbm [shape: f32[2,1,32], index: 17, kind: input, shape index: {}]   ;;  %s5790_s18 = inlined_call_operand.hbm [shape: bf16[2,32,64], index: 18, kind: input, shape index: {}]   ;;  %s5791_s19 = inlined_call_operand.vmem [shape: f32[2,1,64], index: 19, kind: input, shape index: {}]   ;;  %s5792_s20 = inlined_call_operand.vmem [shape: bf16[2,64,32], index: 20, kind: input, shape index: {}]   ;;  %s5793_s21 = inlined_call_operand.vmem [shape: f32[2,1,32], index: 21, kind: input, shape index: {}]   ;;  %s5794_s22 = inlined_call_operand.vmem [shape: f32[2,1,32], index: 22, kind: input, shape index: {}]   ;;  %s5795_s23 = inlined_call_operand.vmem [shape: f32[2,1,32], index: 23, kind: input, shape index: {}]   ;;  %s5796_s24 = inlined_call_operand.vmem [shape: f32[1,32], index: 24, kind: input, shape index: {}]   ;;  %s5797_s25 = inlined_call_operand.vmem [shape: f32[1,32], index: 25, kind: input, shape index: {}]   ;;  %s5798_s26 = inlined_call_operand.hbm [shape: f32[2,8,32], index: 26, kind: output, shape index: {}]  }
   0x1   :  { %5846 = sst [smem:[#allocation57_spill]] %s5772_s0 }
   0x2   :  { %5847 = sst [smem:[#allocation58_spill]] %s5773_s1 }
   0x3   :  { %5848 = sst [smem:[#allocation59_spill]] %s5774_s2 }
   0x4   :  { %5849 = sst [smem:[#allocation60_spill]] %s5775_s3 }
   0x5   :  { %5850 = sst [smem:[#allocation61_spill]] %s5776_s4 }
   0x6   :  { %5851 = sst [smem:[#allocation62_spill]] %s5777_s5 }
   0x7   :  { %5852 = sst [smem:[#allocation63_spill]] %s5778_s6 }
   0x8   :  { %5853 = sst [smem:[#allocation64_spill]] %s5779_s7 }
   0x9   :  { %5854 = sst [smem:[#allocation65_spill]] %s5780_s8 }
   0xa   :  { %5855 = sst [smem:[#allocation66_spill]] %s5781_s9 }
   0xb   :  { %5856 = sst [smem:[#allocation67_spill]] %s5782_s10 }
   0xc   :  { %5857 = sst [smem:[#allocation68_spill]] %s5783_s11 }
   0xd   :  { %5858 = sst [smem:[#allocation69_spill]] %s5784_s12 }
   0xe   :  { %5859 = sst [smem:[#allocation70_spill]] %s5785_s13 }
   0xf   :  { %5860 = sst [smem:[#allocation71_spill]] %s5786_s14 }
  0x10   :  { %5861 = sst [smem:[#allocation72_spill]] %s5787_s15 }
  0x11   :  { %5862 = sst [smem:[#allocation73_spill]] %s5788_s16 }
  0x12   :  { %5863 = sst [smem:[#allocation74_spill]] %s5789_s17 }
  0x13   :  { %5864 = sst [smem:[#allocation75_spill]] %s5790_s18 }
  0x14   :  { %5865 = sst [smem:[#allocation76_spill]] %s5791_s19 }
  0x15   :  { %5866 = sst [smem:[#allocation77_spill]] %s5792_s20 }
  0x16   :  { %5867 = sst [smem:[#allocation78_spill]] %s5793_s21 }
  0x17   :  { %5868 = sst [smem:[#allocation79_spill]] %s5794_s22 }
  0x18   :  { %5869 = sst [smem:[#allocation80_spill]] %s5795_s23 }
  0x19   :  { %5870 = sst [smem:[#allocation81_spill]] %s5796_s24 }
  0x1a   :  { %5871 = sst [smem:[#allocation82_spill]] %s5797_s25 }
  0x1b   :  { %5872 = sst [smem:[#allocation83_spill]] %s5798_s26 }
  0x1c   :  { %31 = vsyncpa [#allocation4], 0 }
  0x1d   :  { %33 = vsyncpa [#allocation4 + $0x1], 0 }
  0x1e   :  { %34 = vsyncpa [#allocation7], 0 }
  0x1f   :  { %36 = vsyncpa [#allocation7 + $0x1], 0 }
  0x20   :  { %37 = vsyncpa [#allocation10], 0 }
  0x21   :  { %39 = vsyncpa [#allocation10 + $0x1], 0 }
  0x22   :  { %40 = vsyncpa [#allocation13], 0 }
  0x23   :  { %42 = vsyncpa [#allocation13 + $0x1], 0 }
  0x24   :  { %43 = vsyncpa [#allocation16], 0 }
  0x25   :  { %45 = vsyncpa [#allocation16 + $0x1], 0 }
  0x26   :  { %46 = vsyncpa [#allocation19], 0 }
  0x27   :  { %48 = vsyncpa [#allocation19 + $0x1], 0 }
  0x28   :  { %49 = vsyncpa [#allocation22], 0 }
  0x29   :  { %51 = vsyncpa [#allocation22 + $0x1], 0 }
  0x2a   :  { %52 = vsyncpa [#allocation25], 0 }
  0x2b   :  { %54 = vsyncpa [#allocation25 + $0x1], 0 }
  0x2c   :  { %55 = vsyncpa [#allocation5], 0 }
  0x2d   :  { %57 = vsyncpa [#allocation5 + $0x1], 0  ;;  %s4732_s27 = smov 0   ;;  %s4734_s3 = smov 0  }
  0x2e   :  { %s4736_s7 = smov 0   ;;  %s4738_s28 = smov 0  }
  0x2f   :  { %s4740_s8 = smov 0   ;;  %s4742_s4 = smov 0  }
  0x30   :  { %s4744_s29 = smov 0   ;;  %s4746_s0 = smov 0  }
  0x31   :  { %s4748_s9 = smov 0   ;;  %s4750_s30 = smov 0  }
  0x32   :  { %s4752_s2 = smov 0  }
  0x33 LB: > { %5873 = sst [smem:[#allocation38_spill]] %s4525_s3  ;;  %s4788_s5 = sadd.s32 4294967295, %s4561_s2   ;;  %s4561_s2 = sphi %s4752_s2, %s63_s2   ;;  %s4557_s30 = sphi %s4750_s30, %s5992_s30   ;;  %s4553_s9 = sphi %s4748_s9, %s5991_s9   ;;  %s4549_s0 = sphi %s4746_s0, %s5990_s0   ;;  %s4545_s29 = sphi %s4744_s29, %s5989_s29   ;;  %s4541_s4 = sphi %s4742_s4, %s5988_s4   ;;  %s4537_s8 = sphi %s4740_s8, %s5987_s8   ;;  %s4533_s28 = sphi %s4738_s28, %s5986_s28   ;;  %s4529_s7 = sphi %s4736_s7, %s5985_s7   ;;  %s4525_s3 = sphi %s4734_s3, %s5984_s3   ;;  %s4521_s27 = sphi %s4732_s27, %s5983_s27  }
  0x34   : > { %5874 = sst [smem:[#allocation39_spill]] %s4529_s7  ;;  %s3465_s10 = sadd.s32 4294967294, %s4561_s2  }
  0x35   : > { %5875 = sst [smem:[#allocation40_spill]] %s4533_s28  ;;  %s72_s6 = sadd.s32 1, %s4553_s9 }
  0x36   : > { %5876 = sst [smem:[#allocation41_spill]] %s4537_s8  ;;  %s75_s1 = sadd.s32 1, %s4557_s30 }
  0x37   : > { %5877 = sst [smem:[#allocation42_spill]] %s4541_s4  ;;  %p73_p0 = scmp.ge.s32.totalorder %s72_s6, 2 }
  0x38   : > { %5878 = sst [smem:[#allocation43_spill]] %s4545_s29  ;;  %s82_s26 = sadd.s32 1, %s4541_s4 }
  0x39   : > { %5879 = sst [smem:[#allocation44_spill]] %s4549_s0  ;;  %p89_p1 = scmp.ne.s32.totalorder %s4541_s4, %s4537_s8 }
  0x3a   : > { %5880 = sst [smem:[#allocation45_spill]] %s4553_s9  ;;  %p90_p2 = scmp.eq.s32.totalorder %s4561_s2, 0 }
  0x3b   : > { %5881 = sst [smem:[#allocation46_spill]] %s4557_s30  ;;  %s5994_s6 = smov (%p73_p0, %s72_s6), 0 }
  0x3c   : > { %5882 = sst [smem:[#allocation47_spill]] %s4561_s2  ;;  %s5996_s1 = smov (!%p73_p0, %s75_s1), %s4557_s30 }
  0x3d   : > { %5883 = sst [smem:[#allocation48_spill]] %s4788_s5  ;;  %s79_s25 = ssub.s32 %s4553_s9, %s5994_s6 }
  0x3e   : > { %5884 = sst [smem:[#allocation49_spill]] %s5994_s6  ;;  %p4807_p3 = por %p90_p2, %p89_p1 }
  0x3f   : > { %p77_p4 = scmp.ge.s32.totalorder %s5996_s1, 2  ;;  %p80_p5 = scmp.eq.s32.totalorder %s79_s25, 0 }
  0x40   : > { %s5885_s24 = scalar_select %p4807_p3, 1, 0 }
  0x41   : > { %p95_p6 = scmp.ne.s32.totalorder %s4537_s8, %s4533_s28  ;;  %p96_p7 = scmp.eq.s32.totalorder %s4788_s5, 0 }
  0x42   : > { %s5998_s1 = smov (%p77_p4, %s5996_s1), 0  ;;  %s212_s22 = sadd.s32 1, %s4529_s7 }
  0x43   : > { %5886 = sst [smem:[#allocation50_spill]] %s5998_s1  ;;  %p4822_p8 = por %p96_p7, %p95_p6 }
  0x44   : > { %s4817_s29 = scalar_select %p80_p5, %s4541_s4, %s82_s26  }
  0x45   : > { %s5888_s6 = scalar_select %p4822_p8, 1, 0 }
  0x46   : > { %5887 = sst [smem:[#allocation51_spill]] %s4817_s29  ;;  %s209_s23 = ssub.s32 %s4557_s30, %s5998_s1 }
  0x47   : > { %5889 = sst [smem:[#allocation52_spill]] %s5888_s6  ;;  %p210_p9 = scmp.eq.s32.totalorder %s209_s23, 0 }
  0x48   : > { %p219_p10 = scmp.ne.s32.totalorder %s4529_s7, %s4525_s3  ;;  %p225_p11 = scmp.ne.s32.totalorder %s4525_s3, %s4521_s27 }
  0x49   : > { %s4834_s25 = scalar_select %p210_p9, %s4529_s7, %s212_s22  }
  0x4a   : > { %p4838_p12 = por %p219_p10, %p90_p2  ;;  %p4842_p13 = por %p225_p11, %p96_p7 }
  0x4b   : > { %5890 = sst [smem:[#allocation53_spill]] %s4834_s25  ;;  %p759_p0 = scmp.eq.s32.totalorder %s4788_s5, 3 }
  0x4c   : > { %s5891_s20 = scalar_select %p4838_p12, 1, 0 }
  0x4d   : > { %s5892_s26 = scalar_select %p4842_p13, 1, 0 }
  0x4e   : > { %p765_p4 = scmp.eq.s32.totalorder %s3465_s10, 3  ;;  %p4850_p5 = por %p759_p0, %p89_p1 }
  0x4f   : > { %5893 = sst [smem:[#allocation54_spill]] %s5892_s26  ;;  %p3467_p2 = scmp.ge.s32.totalorder %s4561_s2, 4 }
  0x50   : > { %s5894_s1 = scalar_select %p4850_p5, 1, 0 }
  0x51   : > { %p4857_p8 = por %p765_p4, %p95_p6  ;;  %787 = sbr.rel (%p3467_p2) target bundleno = 507 (0x1fb), region = 24 }
  0x52   : > { %5895 = sst [smem:[#allocation55_spill]] %s5894_s1  ;;  %s4863_s23 = sand.u32 (!%p3467_p2), 1, %s4541_s4  }
  0x53   : > { %s5896_s22 = scalar_select %p4857_p8, 1, 0 }
  0x54   : > { %s4866_s27 = sshll.u32 (!%p3467_p2), %s4553_s9, 7  ;;  %s4869_s10 = sshll.u32 (!%p3467_p2), %s4863_s23, 3 }
  0x55   : > { %5897 = sst [smem:[#allocation56_spill]] %s5896_s22  ;;  %s4872_s29 = sand.u32 (!%p3467_p2), 1, %s4561_s2  }
  0x56   : > { %s5898_s28 = sld [smem:[#allocation58_spill]] (!%p3467_p2)  ;;  %s813_s4 = scalar_lea.vmem (!%p3467_p2), [#allocation6], %s4869_s10 }
  0x57   : > { %s820_s12 = sshll.u32 (!%p3467_p2), %s813_s4, 4  ;;  %s821_s12 = int_to_ptr.vmem [resolvable:$true] %s820_s12 }
  0x5c   : > { %s5899_s1 = smov %s5898_s28  ;;  %s4878_s21 = scalar_lea.hbm %s5898_s28, %s4866_s27 }
  0x5d   : > { %s3987_s0 = scalar_lea.hbm %s4878_s21, 128  ;;  %s3991_s25 = scalar_lea.hbm %s5899_s1, 256 }
  0x5e   : > { %p3988_p1 = scmp.ne.s32.totalorder %s4878_s21, %s3987_s0  ;;  %p3992_p9 = scmp.lt.u32.totalorder %s4878_s21, %s5899_s1 }
  0x5f   : > { %p3993_p10 = scmp.lt.u32.totalorder %s3991_s25, %s3987_s0  ;;  %p3995_p0 = scmp.lt.u32.totalorder %s3987_s0, %s4878_s21 }
  0x60   : > { %p3989_p6 = pnand %p3988_p1, %p4807_p3 }
  0x61   : > { %p3994_p11 = por %p3993_p10, %p3992_p9 }
  0x62   : > { %p3990_p7 = pneg %p3989_p6 }
  0x63   : > { %p3996_p4 = por %p3995_p0, %p3994_p11 }
  0x65   : > { %p3997_p2 = pnand %p3996_p4, %p3990_p7 }
  0x67   : > { %4000 = shalt.err (!%p3997_p2)
}
  0x68   : > { %s4001_s4 = scalar_lea.vmem %s821_s12, 128  ;;  %s4563_s19 = smov [#allocation6]  }
  0x69   : > { %p4002_p8 = scmp.ne.s32.totalorder %s821_s12, %s4001_s4  ;;  %s4005_s5 = sshll.u32 %s4563_s19, 4  ;;  %s4006_s5 = int_to_ptr.vmem [resolvable:$false] %s4005_s5 }
  0x6a   : > { %s4007_s3 = scalar_lea.vmem %s4006_s5, 256  ;;  %p4008_p5 = scmp.lt.s32.totalorder %s821_s12, %s4006_s5 }
  0x6b   : > { %p4003_p1 = pnand %p4002_p8, %p4807_p3  ;;  %p4009_p13 = scmp.lt.s32.totalorder %s4007_s3, %s4001_s4 }
  0x6d   : > { %p4004_p6 = pneg %p4003_p1  ;;  %p4010_p12 = por %p4009_p13, %p4008_p5 }
  0x6f   : > { %p4011_p9 = pnand %p4010_p12, %p4004_p6 }
  0x71   : > { %4014 = shalt.err (!%p4011_p9)
}
  0x72   : > { %s5900_s0 = scalar_lea.sflag [#allocation7], %s4872_s29  ;;  %s3474_s26 = sshll.u32 %s4553_s9, 4 }
  0x73   : > { %3789 = dma.hbm_to_vmem [thread:$0]  (%p4807_p3), %s4878_s21, 128, %s821_s12, %s5900_s0  }
  0x74   : > { %s5901_s22 = sld [smem:[#allocation60_spill]]  ;;  %s848_s28 = scalar_lea.vmem [#allocation9], %s4863_s23 }
  0x75   : > { %s855_s4 = sshll.u32 %s848_s28, 4  ;;  %s4911_s3 = sand.u32 1, %s4529_s7   ;;  %s4908_s4 = int_to_ptr.vmem [resolvable:$true] %s855_s4 }
  0x76   : > { %s5828_s1 = scalar_lea.sflag [#allocation10], %s4872_s29 }
  0x7a   : > { %s4905_s5 = scalar_lea.hbm %s5901_s22, %s3474_s26  ;;  %s4019_s0 = scalar_lea.hbm %s5901_s22, 32 }
  0x7b   : > { %s4015_s6 = scalar_lea.hbm %s4905_s5, 16  ;;  %p4020_p5 = scmp.lt.u32.totalorder %s4905_s5, %s5901_s22 }
  0x7c   : > { %p4016_p8 = scmp.ne.s32.totalorder %s4905_s5, %s4015_s6  ;;  %p4021_p7 = scmp.lt.u32.totalorder %s4019_s0, %s4015_s6 }
  0x7d   : > { %p4023_p11 = scmp.lt.u32.totalorder %s4015_s6, %s4905_s5 }
  0x7e   : > { %p4017_p12 = pnand %p4016_p8, %p4807_p3  ;;  %p4022_p10 = por %p4021_p7, %p4020_p5 }
  0x80   : > { %p4018_p13 = pneg %p4017_p12  ;;  %p4024_p0 = por %p4023_p11, %p4022_p10 }
  0x82   : > { %p4025_p4 = pnand %p4024_p0, %p4018_p13 }
  0x84   : > { %4028 = shalt.err (!%p4025_p4)
}
  0x85   : > { %s4029_s25 = scalar_lea.vmem %s4908_s4, 16  ;;  %s4564_s28 = smov [#allocation9]  }
  0x86   : > { %p4030_p2 = scmp.ne.s32.totalorder %s4908_s4, %s4029_s25  ;;  %s4033_s12 = sshll.u32 %s4564_s28, 4  ;;  %s4034_s12 = int_to_ptr.vmem [resolvable:$false] %s4033_s12 }
  0x87   : > { %s4035_s21 = scalar_lea.vmem %s4034_s12, 32  ;;  %p4036_p9 = scmp.lt.s32.totalorder %s4908_s4, %s4034_s12 }
  0x88   : > { %p4031_p1 = pnand %p4030_p2, %p4807_p3  ;;  %p4037_p8 = scmp.lt.s32.totalorder %s4035_s21, %s4029_s25 }
  0x8a   : > { %p4032_p6 = pneg %p4031_p1  ;;  %p4038_p12 = por %p4037_p8, %p4036_p9 }
  0x8c   : > { %p4039_p5 = pnand %p4038_p12, %p4032_p6 }
  0x8e   : > { %4042 = shalt.err (!%p4039_p5)
}
  0x8f   : > { %3791 = dma.hbm_to_vmem [thread:$0]  (%p4807_p3), %s4905_s5, 16, %s4908_s4, %s5828_s1  }
  0x90   : > { %s4938_s6 = sshll.u32 %s4557_s30, 4  ;;  %s5902_s19 = sld [smem:[#allocation64_spill]] }
  0x91   : > { %s898_s28 = scalar_lea.vmem [#allocation12], %s4911_s3  ;;  %p5903_p7 = scmp.ne.s32.totalorder %s5891_s20, 0 }
  0x92   : > { %s905_s12 = sshll.u32 %s898_s28, 4  ;;  %s906_s12 = int_to_ptr.vmem [resolvable:$true] %s905_s12 }
  0x96   : > { %s4944_s25 = scalar_lea.hbm %s5902_s19, %s4938_s6  ;;  %s4047_s1 = scalar_lea.hbm %s5902_s19, 32 }
  0x97   : > { %s4043_s22 = scalar_lea.hbm %s4944_s25, 16  ;;  %p4048_p0 = scmp.lt.u32.totalorder %s4944_s25, %s5902_s19 }
  0x98   : > { %p4044_p13 = scmp.ne.s32.totalorder %s4944_s25, %s4043_s22  ;;  %p4049_p4 = scmp.lt.u32.totalorder %s4047_s1, %s4043_s22 }
  0x99   : > { %p4051_p1 = scmp.lt.u32.totalorder %s4043_s22, %s4944_s25 }
  0x9a   : > { %p4045_p10 = pnand %p4044_p13, %p5903_p7  ;;  %p4050_p2 = por %p4049_p4, %p4048_p0 }
  0x9c   : > { %p4046_p11 = pneg %p4045_p10  ;;  %p4052_p6 = por %p4051_p1, %p4050_p2 }
  0x9e   : > { %p4053_p9 = pnand %p4052_p6, %p4046_p11 }
  0xa0   : > { %4056 = shalt.err (!%p4053_p9)
}
  0xa1   : > { %s4057_s28 = scalar_lea.vmem %s906_s12, 16  ;;  %s4565_s21 = smov [#allocation12]  }
  0xa2   : > { %p4058_p8 = scmp.ne.s32.totalorder %s906_s12, %s4057_s28  ;;  %s4061_s9 = sshll.u32 %s4565_s21, 4  ;;  %s4062_s9 = int_to_ptr.vmem [resolvable:$false] %s4061_s9 }
  0xa3   : > { %s4063_s5 = scalar_lea.vmem %s4062_s9, 32  ;;  %p4064_p13 = scmp.lt.s32.totalorder %s906_s12, %s4062_s9 }
  0xa4   : > { %p4059_p12 = pnand %p4058_p8, %p5903_p7  ;;  %p4065_p10 = scmp.lt.s32.totalorder %s4063_s5, %s4057_s28 }
  0xa6   : > { %p4060_p5 = pneg %p4059_p12  ;;  %p4066_p3 = por %p4065_p10, %p4064_p13 }
  0xa8   : > { %p4067_p0 = pnand %p4066_p3, %p4060_p5 }
  0xaa   : > { %4070 = shalt.err (!%p4067_p0)
}
  0xab   : > { %s5904_s1 = scalar_lea.sflag [#allocation13], %s4872_s29  ;;  %s5905_s21 = sld [smem:[#allocation66_spill]] }
  0xac   : > { %3793 = dma.hbm_to_vmem [thread:$0]  (%p5903_p7), %s4944_s25, 16, %s906_s12, %s5904_s1  }
  0xad   : > { %s932_s9 = scalar_lea.vmem [#allocation15], %s4911_s3 }
  0xae   : > { %s939_s26 = sshll.u32 %s932_s9, 4  ;;  %s940_s26 = int_to_ptr.vmem [resolvable:$true] %s939_s26 }
  0xb1   : > { %s4971_s0 = scalar_lea.hbm %s5905_s21, %s4938_s6  ;;  %s4075_s12 = scalar_lea.hbm %s5905_s21, 32 }
  0xb2   : > { %s4071_s5 = scalar_lea.hbm %s4971_s0, 16  ;;  %p4076_p2 = scmp.lt.u32.totalorder %s4971_s0, %s5905_s21 }
  0xb3   : > { %p4072_p3 = scmp.ne.s32.totalorder %s4971_s0, %s4071_s5  ;;  %p4077_p1 = scmp.lt.u32.totalorder %s4075_s12, %s4071_s5 }
  0xb4   : > { %p4079_p9 = scmp.lt.u32.totalorder %s4071_s5, %s4971_s0 }
  0xb5   : > { %p4073_p11 = pnand %p4072_p3, %p5903_p7  ;;  %p4078_p6 = por %p4077_p1, %p4076_p2 }
  0xb7   : > { %p4074_p4 = pneg %p4073_p11  ;;  %p4080_p8 = por %p4079_p9, %p4078_p6 }
  0xb9   : > { %p4081_p12 = pnand %p4080_p8, %p4074_p4 }
  0xbb   : > { %4084 = shalt.err (!%p4081_p12)
}
  0xbc   : > { %s4085_s4 = scalar_lea.vmem %s940_s26, 16  ;;  %s4566_s9 = smov [#allocation15]  }
  0xbd   : > { %p4086_p5 = scmp.ne.s32.totalorder %s940_s26, %s4085_s4  ;;  %s4089_s28 = sshll.u32 %s4566_s9, 4  ;;  %s4090_s28 = int_to_ptr.vmem [resolvable:$false] %s4089_s28 }
  0xbe   : > { %s4091_s19 = scalar_lea.vmem %s4090_s28, 32  ;;  %p4092_p0 = scmp.lt.s32.totalorder %s940_s26, %s4090_s28 }
  0xbf   : > { %p4087_p13 = pnand %p4086_p5, %p5903_p7  ;;  %p4093_p3 = scmp.lt.s32.totalorder %s4091_s19, %s4085_s4 }
  0xc1   : > { %p4088_p10 = pneg %p4087_p13  ;;  %p4094_p11 = por %p4093_p3, %p4092_p0 }
  0xc3   : > { %p4095_p1 = pnand %p4094_p11, %p4088_p10 }
  0xc5   : > { %4098 = shalt.err (!%p4095_p1)
}
  0xc6   : > { %s5906_s5 = scalar_lea.sflag [#allocation16], %s4872_s29  ;;  %s5907_s13 = sld [smem:[#allocation70_spill]] }
  0xc7   : > { %3795 = dma.hbm_to_vmem [thread:$0]  (%p5903_p7), %s4971_s0, 16, %s940_s26, %s5906_s5  }
  0xc8   : > { %s982_s28 = scalar_lea.vmem [#allocation18], %s4911_s3 }
  0xc9   : > { %s989_s22 = sshll.u32 %s982_s28, 4  ;;  %s990_s22 = int_to_ptr.vmem [resolvable:$true] %s989_s22 }
  0xcc   : > { %s4998_s1 = scalar_lea.hbm %s5907_s13, %s4938_s6  ;;  %s4103_s26 = scalar_lea.hbm %s5907_s13, 32 }
  0xcd   : > { %s4099_s9 = scalar_lea.hbm %s4998_s1, 16  ;;  %p4104_p9 = scmp.lt.u32.totalorder %s4998_s1, %s5907_s13 }
  0xce   : > { %p4100_p4 = scmp.ne.s32.totalorder %s4998_s1, %s4099_s9  ;;  %p4105_p8 = scmp.lt.u32.totalorder %s4103_s26, %s4099_s9 }
  0xcf   : > { %p4107_p5 = scmp.lt.u32.totalorder %s4099_s9, %s4998_s1 }
  0xd0   : > { %p4101_p2 = pnand %p4100_p4, %p5903_p7  ;;  %p4106_p12 = por %p4105_p8, %p4104_p9 }
  0xd2   : > { %p4102_p6 = pneg %p4101_p2  ;;  %p4108_p13 = por %p4107_p5, %p4106_p12 }
  0xd4   : > { %p4109_p10 = pnand %p4108_p13, %p4102_p6 }
  0xd6   : > { %4112 = shalt.err (!%p4109_p10)
}
  0xd7   : > { %s4113_s12 = scalar_lea.vmem %s990_s22, 16  ;;  %s4567_s28 = smov [#allocation18]  }
  0xd8   : > { %p4114_p0 = scmp.ne.s32.totalorder %s990_s22, %s4113_s12  ;;  %s4117_s4 = sshll.u32 %s4567_s28, 4  ;;  %s4118_s4 = int_to_ptr.vmem [resolvable:$false] %s4117_s4 }
  0xd9   : > { %s4119_s19 = scalar_lea.vmem %s4118_s4, 32  ;;  %p4120_p1 = scmp.lt.s32.totalorder %s990_s22, %s4118_s4 }
  0xda   : > { %p4115_p3 = pnand %p4114_p0, %p5903_p7  ;;  %p4121_p4 = scmp.lt.s32.totalorder %s4119_s19, %s4113_s12 }
  0xdc   : > { %p4116_p11 = pneg %p4115_p3  ;;  %p4122_p2 = por %p4121_p4, %p4120_p1 }
  0xde   : > { %p4123_p8 = pnand %p4122_p2, %p4116_p11 }
  0xe0   : > { %4126 = shalt.err (!%p4123_p8)
}
  0xe1   : > { %s5908_s9 = scalar_lea.sflag [#allocation19], %s4872_s29  ;;  %s5909_s15 = sld [smem:[#allocation72_spill]] }
  0xe2   : > { %3797 = dma.hbm_to_vmem [thread:$0]  (%p5903_p7), %s4998_s1, 16, %s990_s22, %s5908_s9  }
  0xe3   : > { %s1020_s4 = scalar_lea.vmem [#allocation21], %s4911_s3 }
  0xe4   : > { %s1027_s25 = sshll.u32 %s1020_s4, 4  ;;  %s1028_s25 = int_to_ptr.vmem [resolvable:$true] %s1027_s25 }
  0xe7   : > { %s5025_s5 = scalar_lea.hbm %s5909_s15, %s4938_s6  ;;  %s4131_s22 = scalar_lea.hbm %s5909_s15, 32 }
  0xe8   : > { %s4127_s28 = scalar_lea.hbm %s5025_s5, 16  ;;  %p4132_p5 = scmp.lt.u32.totalorder %s5025_s5, %s5909_s15 }
  0xe9   : > { %p4128_p6 = scmp.ne.s32.totalorder %s5025_s5, %s4127_s28  ;;  %p4133_p13 = scmp.lt.u32.totalorder %s4131_s22, %s4127_s28 }
  0xea   : > { %p4135_p0 = scmp.lt.u32.totalorder %s4127_s28, %s5025_s5 }
  0xeb   : > { %p4129_p9 = pnand %p4128_p6, %p5903_p7  ;;  %p4134_p10 = por %p4133_p13, %p4132_p5 }
  0xed   : > { %p4130_p12 = pneg %p4129_p9  ;;  %p4136_p3 = por %p4135_p0, %p4134_p10 }
  0xef   : > { %p4137_p11 = pnand %p4136_p3, %p4130_p12 }
  0xf1   : > { %4140 = shalt.err (!%p4137_p11)
}
  0xf2   : > { %s4141_s26 = scalar_lea.vmem %s1028_s25, 16  ;;  %s4568_s4 = smov [#allocation21]  }
  0xf3   : > { %p4142_p1 = scmp.ne.s32.totalorder %s1028_s25, %s4141_s26  ;;  %s4145_s12 = sshll.u32 %s4568_s4, 4  ;;  %s4146_s12 = int_to_ptr.vmem [resolvable:$false] %s4145_s12 }
  0xf4   : > { %s4147_s19 = scalar_lea.vmem %s4146_s12, 32  ;;  %p4148_p8 = scmp.lt.s32.totalorder %s1028_s25, %s4146_s12 }
  0xf5   : > { %p4143_p4 = pnand %p4142_p1, %p5903_p7  ;;  %p4149_p6 = scmp.lt.s32.totalorder %s4147_s19, %s4141_s26 }
  0xf7   : > { %p4144_p2 = pneg %p4143_p4  ;;  %p4150_p9 = por %p4149_p6, %p4148_p8 }
  0xf9   : > { %p4151_p5 = pnand %p4150_p9, %p4144_p2 }
  0xfb   : > { %4154 = shalt.err (!%p4151_p5)
}
  0xfc   : > { %s5910_s28 = scalar_lea.sflag [#allocation22], %s4872_s29  ;;  %s5911_s17 = sld [smem:[#allocation74_spill]] }
  0xfd   : > { %3799 = dma.hbm_to_vmem [thread:$0]  (%p5903_p7), %s5025_s5, 16, %s1028_s25, %s5910_s28  }
  0xfe   : > { %s1054_s12 = scalar_lea.vmem [#allocation24], %s4911_s3 }
  0xff   : > { %s1061_s0 = sshll.u32 %s1054_s12, 4  ;;  %s1062_s0 = int_to_ptr.vmem [resolvable:$true] %s1061_s0 }
 0x102   : > { %s5052_s9 = scalar_lea.hbm %s5911_s17, %s4938_s6  ;;  %s4159_s25 = scalar_lea.hbm %s5911_s17, 32 }
 0x103   : > { %s4155_s4 = scalar_lea.hbm %s5052_s9, 16  ;;  %p4160_p0 = scmp.lt.u32.totalorder %s5052_s9, %s5911_s17 }
 0x104   : > { %p4156_p12 = scmp.ne.s32.totalorder %s5052_s9, %s4155_s4  ;;  %p4161_p3 = scmp.lt.u32.totalorder %s4159_s25, %s4155_s4 }
 0x105   : > { %p4163_p1 = scmp.lt.u32.totalorder %s4155_s4, %s5052_s9 }
 0x106   : > { %p4157_p13 = pnand %p4156_p12, %p5903_p7  ;;  %p4162_p11 = por %p4161_p3, %p4160_p0 }
 0x108   : > { %p4158_p10 = pneg %p4157_p13  ;;  %p4164_p4 = por %p4163_p1, %p4162_p11 }
 0x10a   : > { %p4165_p2 = pnand %p4164_p4, %p4158_p10 }
 0x10c   : > { %4168 = shalt.err (!%p4165_p2)
}
 0x10d   : > { %s4169_s22 = scalar_lea.vmem %s1062_s0, 16  ;;  %s4569_s12 = smov [#allocation24]  }
 0x10e   : > { %p4170_p8 = scmp.ne.s32.totalorder %s1062_s0, %s4169_s22  ;;  %s4173_s26 = sshll.u32 %s4569_s12, 4  ;;  %s4174_s26 = int_to_ptr.vmem [resolvable:$false] %s4173_s26 }
 0x10f   : > { %s4175_s19 = scalar_lea.vmem %s4174_s26, 32  ;;  %p4176_p5 = scmp.lt.s32.totalorder %s1062_s0, %s4174_s26 }
 0x110   : > { %p4171_p6 = pnand %p4170_p8, %p5903_p7  ;;  %p4177_p12 = scmp.lt.s32.totalorder %s4175_s19, %s4169_s22 }
 0x112   : > { %p4172_p9 = pneg %p4171_p6  ;;  %p4178_p13 = por %p4177_p12, %p4176_p5 }
 0x114   : > { %p4179_p0 = pnand %p4178_p13, %p4172_p9 }
 0x116   : > { %4182 = shalt.err (!%p4179_p0)
}
 0x117   : > { %s5912_s4 = scalar_lea.sflag [#allocation25], %s4872_s29  ;;  %s5913_s28 = sld [smem:[#allocation57_spill]] }
 0x118   : > { %3801 = dma.hbm_to_vmem [thread:$0]  (%p5903_p7), %s5052_s9, 16, %s1062_s0, %s5912_s4  }
 0x119   : > { %s795_s26 = scalar_lea.vmem [#allocation3], %s4869_s10  ;;  %s792_s19 = scalar_lea.sflag [#allocation4], %s4863_s23 }
 0x11a   : > { %s802_s22 = sshll.u32 %s795_s26, 4  ;;  %p5915_p3 = scmp.ne.s32.totalorder %s5885_s24, 0  ;;  %s803_s22 = int_to_ptr.vmem [resolvable:$true] %s802_s22 }
 0x11d   : > { %s5914_s1 = smov %s5913_s28  ;;  %s5079_s12 = scalar_lea.hbm %s5913_s28, %s4866_s27 }
 0x11e   : > { %s4183_s13 = scalar_lea.hbm %s5079_s12, 128  ;;  %s4187_s0 = scalar_lea.hbm %s5914_s1, 256 }
 0x11f   : > { %p4184_p10 = scmp.ne.s32.totalorder %s5079_s12, %s4183_s13  ;;  %p4188_p4 = scmp.lt.u32.totalorder %s5079_s12, %s5914_s1 }
 0x120   : > { %p4189_p2 = scmp.lt.u32.totalorder %s4187_s0, %s4183_s13  ;;  %p4191_p6 = scmp.lt.u32.totalorder %s4183_s13, %s5079_s12 }
 0x121   : > { %p4185_p11 = pnand %p4184_p10, %p5915_p3 }
 0x122   : > { %p4190_p8 = por %p4189_p2, %p4188_p4 }
 0x123   : > { %p4186_p1 = pneg %p4185_p11 }
 0x124   : > { %p4192_p9 = por %p4191_p6, %p4190_p8 }
 0x126   : > { %p4193_p5 = pnand %p4192_p9, %p4186_p1 }
 0x128   : > { %4196 = shalt.err (!%p4193_p5)
}
 0x129   : > { %s4197_s23 = scalar_lea.vmem %s803_s22, 128  ;;  %s4570_s25 = smov [#allocation3]  }
 0x12a   : > { %p4198_p12 = scmp.ne.s32.totalorder %s803_s22, %s4197_s23  ;;  %s4201_s28 = sshll.u32 %s4570_s25, 4  ;;  %s4202_s28 = int_to_ptr.vmem [resolvable:$false] %s4201_s28 }
 0x12b   : > { %s4203_s15 = scalar_lea.vmem %s4202_s28, 256  ;;  %p4204_p10 = scmp.lt.s32.totalorder %s803_s22, %s4202_s28 }
 0x12c   : > { %p4199_p13 = pnand %p4198_p12, %p5915_p3  ;;  %p4205_p11 = scmp.lt.s32.totalorder %s4203_s15, %s4197_s23 }
 0x12e   : > { %p4200_p0 = pneg %p4199_p13  ;;  %p4206_p7 = por %p4205_p11, %p4204_p10 }
 0x130   : > { %p4207_p2 = pnand %p4206_p7, %p4200_p0 }
 0x132   : > { %4210 = shalt.err (!%p4207_p2)
}
 0x133   : > { %3788 = dma.hbm_to_vmem [thread:$0]  (%p5915_p3), %s5079_s12, 128, %s803_s22, %s792_s19  }
 0x134   : > { %s5916_s9 = sld [smem:[#allocation59_spill]]  ;;  %s831_s4 = scalar_lea.vmem [#allocation8], %s4869_s10 }
 0x135   : > { %s838_s23 = sshll.u32 %s831_s4, 4  ;;  %s839_s23 = int_to_ptr.vmem [resolvable:$true] %s838_s23 }
 0x13a   : > { %s5917_s5 = smov %s5916_s9  ;;  %s5104_s0 = scalar_lea.hbm %s5916_s9, %s4866_s27 }
 0x13b   : > { %s4211_s25 = scalar_lea.hbm %s5104_s0, 128  ;;  %s4215_s12 = scalar_lea.hbm %s5917_s5, 256 }
 0x13c   : > { %p4212_p7 = scmp.ne.s32.totalorder %s5104_s0, %s4211_s25  ;;  %p4216_p8 = scmp.lt.u32.totalorder %s5104_s0, %s5917_s5 }
 0x13d   : > { %p4217_p6 = scmp.lt.u32.totalorder %s4215_s12, %s4211_s25  ;;  %p4219_p5 = scmp.lt.u32.totalorder %s4211_s25, %s5104_s0 }
 0x13e   : > { %p4213_p1 = pnand %p4212_p7, %p5915_p3 }
 0x13f   : > { %p4218_p9 = por %p4217_p6, %p4216_p8 }
 0x140   : > { %p4214_p4 = pneg %p4213_p1 }
 0x141   : > { %p4220_p12 = por %p4219_p5, %p4218_p9 }
 0x143   : > { %p4221_p13 = pnand %p4220_p12, %p4214_p4 }
 0x145   : > { %4224 = shalt.err (!%p4221_p13)
}
 0x146   : > { %s4225_s27 = scalar_lea.vmem %s839_s23, 128  ;;  %s4571_s10 = smov [#allocation8]  }
 0x147   : > { %p4226_p0 = scmp.ne.s32.totalorder %s839_s23, %s4225_s27  ;;  %s4229_s13 = sshll.u32 %s4571_s10, 4  ;;  %s4230_s13 = int_to_ptr.vmem [resolvable:$false] %s4229_s13 }
 0x148   : > { %s4231_s26 = scalar_lea.vmem %s4230_s13, 256  ;;  %p4232_p2 = scmp.lt.s32.totalorder %s839_s23, %s4230_s13 }
 0x149   : > { %p4227_p10 = pnand %p4226_p0, %p5915_p3  ;;  %p4233_p7 = scmp.lt.s32.totalorder %s4231_s26, %s4225_s27 }
 0x14b   : > { %p4228_p11 = pneg %p4227_p10  ;;  %p4234_p1 = por %p4233_p7, %p4232_p2 }
 0x14d   : > { %p4235_p6 = pnand %p4234_p1, %p4228_p11 }
 0x14f   : > { %4238 = shalt.err (!%p4235_p6)
}
 0x150   : > { %s5918_s9 = scalar_lea.sflag [#allocation7], %s4872_s29  ;;  %s5919_s28 = sld [smem:[#allocation62_spill]] }
 0x151   : > { %3790 = dma.hbm_to_vmem [thread:$0]  (%p5915_p3), %s5104_s0, 128, %s839_s23, %s5918_s9  }
 0x152   : > { %s873_s22 = scalar_lea.vmem [#allocation11], %s4911_s3  ;;  %p5921_p8 = scmp.ne.s32.totalorder %s5891_s20, 0 }
 0x153   : > { %s880_s19 = sshll.u32 %s873_s22, 4  ;;  %s881_s19 = int_to_ptr.vmem [resolvable:$true] %s880_s19 }
 0x156   : > { %s5920_s15 = smov %s5919_s28  ;;  %s5130_s12 = scalar_lea.hbm %s5919_s28, %s4938_s6 }
 0x157   : > { %s4239_s24 = scalar_lea.hbm %s5130_s12, 16  ;;  %s4243_s0 = scalar_lea.hbm %s5920_s15, 32 }
 0x158   : > { %p4240_p4 = scmp.ne.s32.totalorder %s5130_s12, %s4239_s24  ;;  %p4244_p3 = scmp.lt.u32.totalorder %s5130_s12, %s5920_s15 }
 0x159   : > { %p4245_p12 = scmp.lt.u32.totalorder %s4243_s0, %s4239_s24  ;;  %p4247_p0 = scmp.lt.u32.totalorder %s4239_s24, %s5130_s12 }
 0x15a   : > { %p4241_p9 = pnand %p4240_p4, %p5921_p8 }
 0x15b   : > { %p4246_p13 = por %p4245_p12, %p4244_p3 }
 0x15c   : > { %p4242_p5 = pneg %p4241_p9 }
 0x15d   : > { %p4248_p10 = por %p4247_p0, %p4246_p13 }
 0x15f   : > { %p4249_p11 = pnand %p4248_p10, %p4242_p5 }
 0x161   : > { %4252 = shalt.err (!%p4249_p11)
}
 0x162   : > { %s4253_s26 = scalar_lea.vmem %s881_s19, 16  ;;  %s4572_s9 = smov [#allocation11]  }
 0x163   : > { %p4254_p2 = scmp.ne.s32.totalorder %s881_s19, %s4253_s26  ;;  %s4257_s4 = sshll.u32 %s4572_s9, 4  ;;  %s4258_s4 = int_to_ptr.vmem [resolvable:$false] %s4257_s4 }
 0x164   : > { %s4259_s25 = scalar_lea.vmem %s4258_s4, 32  ;;  %p4260_p6 = scmp.lt.s32.totalorder %s881_s19, %s4258_s4 }
 0x165   : > { %p4255_p7 = pnand %p4254_p2, %p5921_p8  ;;  %p4261_p4 = scmp.lt.s32.totalorder %s4259_s25, %s4253_s26 }
 0x167   : > { %p4256_p1 = pneg %p4255_p7  ;;  %p4262_p9 = por %p4261_p4, %p4260_p6 }
 0x169   : > { %p4263_p3 = pnand %p4262_p9, %p4256_p1 }
 0x16b   : > { %4266 = shalt.err (!%p4263_p3)
}
 0x16c   : > { %s5922_s28 = scalar_lea.sflag [#allocation10], %s4872_s29  ;;  %s5923_s27 = sld [smem:[#allocation65_spill]] }
 0x16d   : > { %3792 = dma.hbm_to_vmem [thread:$0]  (%p5921_p8), %s5130_s12, 16, %s881_s19, %s5922_s28  }
 0x16e   : > { %s915_s23 = scalar_lea.vmem [#allocation14], %s4911_s3 }
 0x16f   : > { %s922_s13 = sshll.u32 %s915_s23, 4  ;;  %s923_s13 = int_to_ptr.vmem [resolvable:$true] %s922_s13 }
 0x172   : > { %s5924_s10 = smov %s5923_s27  ;;  %s5156_s0 = scalar_lea.hbm %s5923_s27, %s4938_s6 }
 0x173   : > { %s4267_s26 = scalar_lea.hbm %s5156_s0, 16  ;;  %s4271_s12 = scalar_lea.hbm %s5924_s10, 32 }
 0x174   : > { %p4268_p5 = scmp.ne.s32.totalorder %s5156_s0, %s4267_s26  ;;  %p4272_p0 = scmp.lt.u32.totalorder %s5156_s0, %s5924_s10 }
 0x175   : > { %p4273_p10 = scmp.lt.u32.totalorder %s4271_s12, %s4267_s26  ;;  %p4275_p2 = scmp.lt.u32.totalorder %s4267_s26, %s5156_s0 }
 0x176   : > { %p4269_p12 = pnand %p4268_p5, %p5921_p8 }
 0x177   : > { %p4274_p11 = por %p4273_p10, %p4272_p0 }
 0x178   : > { %p4270_p13 = pneg %p4269_p12 }
 0x179   : > { %p4276_p7 = por %p4275_p2, %p4274_p11 }
 0x17b   : > { %p4277_p1 = pnand %p4276_p7, %p4270_p13 }
 0x17d   : > { %4280 = shalt.err (!%p4277_p1)
}
 0x17e   : > { %s4281_s28 = scalar_lea.vmem %s923_s13, 16  ;;  %s4573_s22 = smov [#allocation14]  }
 0x17f   : > { %p4282_p6 = scmp.ne.s32.totalorder %s923_s13, %s4281_s28  ;;  %s4285_s24 = sshll.u32 %s4573_s22, 4  ;;  %s4286_s24 = int_to_ptr.vmem [resolvable:$false] %s4285_s24 }
 0x180   : > { %s4287_s27 = scalar_lea.vmem %s4286_s24, 32  ;;  %p4288_p3 = scmp.lt.s32.totalorder %s923_s13, %s4286_s24 }
 0x181   : > { %p4283_p4 = pnand %p4282_p6, %p5921_p8  ;;  %p4289_p5 = scmp.lt.s32.totalorder %s4287_s27, %s4281_s28 }
 0x183   : > { %p4284_p9 = pneg %p4283_p4  ;;  %p4290_p12 = por %p4289_p5, %p4288_p3 }
 0x185   : > { %p4291_p0 = pnand %p4290_p12, %p4284_p9 }
 0x187   : > { %4294 = shalt.err (!%p4291_p0)
}
 0x188   : > { %s5925_s23 = scalar_lea.sflag [#allocation13], %s4872_s29  ;;  %s5926_s11 = sld [smem:[#allocation68_spill]] }
 0x189   : > { %3794 = dma.hbm_to_vmem [thread:$0]  (%p5921_p8), %s5156_s0, 16, %s923_s13, %s5925_s23  }
 0x18a   : > { %s957_s12 = scalar_lea.vmem [#allocation17], %s4911_s3  ;;  %s5834_s25 = sshll.u32 %s4911_s3, 4 }
 0x18b   : > { %s964_s19 = sshll.u32 %s957_s12, 4  ;;  %s965_s19 = int_to_ptr.vmem [resolvable:$true] %s964_s19 }
 0x18e   : > { %s5182_s4 = scalar_lea.hbm %s5926_s11, %s4938_s6  ;;  %s4299_s13 = scalar_lea.hbm %s5926_s11, 32 }
 0x18f   : > { %s4295_s28 = scalar_lea.hbm %s5182_s4, 16  ;;  %p4300_p2 = scmp.lt.u32.totalorder %s5182_s4, %s5926_s11 }
 0x190   : > { %p4296_p13 = scmp.ne.s32.totalorder %s5182_s4, %s4295_s28  ;;  %p4301_p7 = scmp.lt.u32.totalorder %s4299_s13, %s4295_s28 }
 0x191   : > { %p4303_p6 = scmp.lt.u32.totalorder %s4295_s28, %s5182_s4 }
 0x192   : > { %p4297_p10 = pnand %p4296_p13, %p5921_p8  ;;  %p4302_p1 = por %p4301_p7, %p4300_p2 }
 0x194   : > { %p4298_p11 = pneg %p4297_p10  ;;  %p4304_p4 = por %p4303_p6, %p4302_p1 }
 0x196   : > { %p4305_p9 = pnand %p4304_p4, %p4298_p11 }
 0x198   : > { %4308 = shalt.err (!%p4305_p9)
}
 0x199   : > { %s4309_s23 = scalar_lea.vmem %s965_s19, 16  ;;  %s4574_s26 = smov [#allocation17]  }
 0x19a   : > { %p4310_p3 = scmp.ne.s32.totalorder %s965_s19, %s4309_s23  ;;  %s4313_s9 = sshll.u32 %s4574_s26, 4  ;;  %s4314_s9 = int_to_ptr.vmem [resolvable:$false] %s4313_s9 }
 0x19b   : > { %s4315_s12 = scalar_lea.vmem %s4314_s9, 32  ;;  %p4316_p0 = scmp.lt.s32.totalorder %s965_s19, %s4314_s9 }
 0x19c   : > { %p4311_p5 = pnand %p4310_p3, %p5921_p8  ;;  %p4317_p13 = scmp.lt.s32.totalorder %s4315_s12, %s4309_s23 }
 0x19e   : > { %p4312_p12 = pneg %p4311_p5  ;;  %p4318_p10 = por %p4317_p13, %p4316_p0 }
 0x1a0   : > { %p4319_p2 = pnand %p4318_p10, %p4312_p12 }
 0x1a2   : > { %4322 = shalt.err (!%p4319_p2)
}
 0x1a3   : > { %s5927_s28 = scalar_lea.sflag [#allocation16], %s4872_s29  ;;  %s5835_s22 = sshll.u32 %s4557_s30, 8 }
 0x1a4   : > { %3796 = dma.hbm_to_vmem [thread:$0]  (%p5921_p8), %s5182_s4, 16, %s965_s19, %s5927_s28  }
 0x1a5   : > { %s5928_s14 = sld [smem:[#allocation71_spill]]  ;;  %s1000_s27 = scalar_lea.vmem [#allocation20], %s5834_s25 }
 0x1a6   : > { %s1007_s23 = sshll.u32 %s1000_s27, 4  ;;  %s5215_s23 = int_to_ptr.vmem [resolvable:$true] %s1007_s23 }
 0x1ab   : > { %s5211_s24 = scalar_lea.hbm %s5928_s14, %s5835_s22  ;;  %s4327_s9 = scalar_lea.hbm %s5928_s14, 512 }
 0x1ac   : > { %s4323_s26 = scalar_lea.hbm %s5211_s24, 256  ;;  %p4328_p6 = scmp.lt.u32.totalorder %s5211_s24, %s5928_s14 }
 0x1ad   : > { %p4324_p11 = scmp.ne.s32.totalorder %s5211_s24, %s4323_s26  ;;  %p4329_p4 = scmp.lt.u32.totalorder %s4327_s9, %s4323_s26 }
 0x1ae   : > { %p4331_p3 = scmp.lt.u32.totalorder %s4323_s26, %s5211_s24 }
 0x1af   : > { %p4325_p7 = pnand %p4324_p11, %p5921_p8  ;;  %p4330_p9 = por %p4329_p4, %p4328_p6 }
 0x1b1   : > { %p4326_p1 = pneg %p4325_p7  ;;  %p4332_p5 = por %p4331_p3, %p4330_p9 }
 0x1b3   : > { %p4333_p12 = pnand %p4332_p5, %p4326_p1 }
 0x1b5   : > { %4336 = shalt.err (!%p4333_p12)
}
 0x1b6   : > { %s4337_s0 = scalar_lea.vmem %s5215_s23, 256  ;;  %s4575_s13 = smov [#allocation20]  }
 0x1b7   : > { %p4338_p0 = scmp.ne.s32.totalorder %s5215_s23, %s4337_s0  ;;  %s4341_s27 = sshll.u32 %s4575_s13, 4  ;;  %s4342_s27 = int_to_ptr.vmem [resolvable:$false] %s4341_s27 }
 0x1b8   : > { %s4343_s4 = scalar_lea.vmem %s4342_s27, 512  ;;  %p4344_p2 = scmp.lt.s32.totalorder %s5215_s23, %s4342_s27 }
 0x1b9   : > { %p4339_p13 = pnand %p4338_p0, %p5921_p8  ;;  %p4345_p11 = scmp.lt.s32.totalorder %s4343_s4, %s4337_s0 }
 0x1bb   : > { %p4340_p10 = pneg %p4339_p13  ;;  %p4346_p7 = por %p4345_p11, %p4344_p2 }
 0x1bd   : > { %p4347_p6 = pnand %p4346_p7, %p4340_p10 }
 0x1bf   : > { %4350 = shalt.err (!%p4347_p6)
}
 0x1c0   : > { %s4576_s26 = smov 64   ;;  %s4577_s19 = smov 4  }
 0x1c1   : > { %s5929_s9 = scalar_lea.sflag [#allocation19], %s4872_s29  ;;  %s5930_s16 = sld [smem:[#allocation73_spill]] }
 0x1c2   : > { %3798 = dma.hbm_to_vmem [thread:$0]  (%p5921_p8), %s5211_s24, 256, %s5215_s23, %s5929_s9, %s4576_s26, %s4576_s26, %s4577_s19  }
 0x1c3   : > { %s1037_s13 = scalar_lea.vmem [#allocation23], %s4911_s3 }
 0x1c4   : > { %s1044_s27 = sshll.u32 %s1037_s13, 4  ;;  %s1045_s27 = int_to_ptr.vmem [resolvable:$true] %s1044_s27 }
 0x1c7   : > { %s5247_s0 = scalar_lea.hbm %s5930_s16, %s4938_s6  ;;  %s4355_s24 = scalar_lea.hbm %s5930_s16, 32 }
 0x1c8   : > { %s4351_s4 = scalar_lea.hbm %s5247_s0, 16  ;;  %p4356_p3 = scmp.lt.u32.totalorder %s5247_s0, %s5930_s16 }
 0x1c9   : > { %p4352_p1 = scmp.ne.s32.totalorder %s5247_s0, %s4351_s4  ;;  %p4357_p5 = scmp.lt.u32.totalorder %s4355_s24, %s4351_s4 }
 0x1ca   : > { %p4359_p0 = scmp.lt.u32.totalorder %s4351_s4, %s5247_s0 }
 0x1cb   : > { %p4353_p4 = pnand %p4352_p1, %p5921_p8  ;;  %p4358_p12 = por %p4357_p5, %p4356_p3 }
 0x1cd   : > { %p4354_p9 = pneg %p4353_p4  ;;  %p4360_p13 = por %p4359_p0, %p4358_p12 }
 0x1cf   : > { %p4361_p10 = pnand %p4360_p13, %p4354_p9 }
 0x1d1   : > { %4364 = shalt.err (!%p4361_p10)
}
 0x1d2   : > { %s4365_s6 = scalar_lea.vmem %s1045_s27, 16  ;;  %s4578_s12 = smov [#allocation23]  }
 0x1d3   : > { %p4366_p2 = scmp.ne.s32.totalorder %s1045_s27, %s4365_s6  ;;  %s4369_s28 = sshll.u32 %s4578_s12, 4  ;;  %s4370_s28 = int_to_ptr.vmem [resolvable:$false] %s4369_s28 }
 0x1d4   : > { %s4371_s25 = scalar_lea.vmem %s4370_s28, 32  ;;  %p4372_p6 = scmp.lt.s32.totalorder %s1045_s27, %s4370_s28 }
 0x1d5   : > { %p4367_p11 = pnand %p4366_p2, %p5921_p8  ;;  %p4373_p1 = scmp.lt.s32.totalorder %s4371_s25, %s4365_s6 }
 0x1d7   : > { %p4368_p7 = pneg %p4367_p11  ;;  %p4374_p4 = por %p4373_p1, %p4372_p6 }
 0x1d9   : > { %p4375_p3 = pnand %p4374_p4, %p4368_p7 }
 0x1db   : > { %4378 = shalt.err (!%p4375_p3)
}
 0x1dc   : > { %s5931_s22 = scalar_lea.sflag [#allocation22], %s4872_s29  ;;  %s5932_s13 = sshll.u32 %s4557_s30, 8 }
 0x1dd   : > { %3800 = dma.hbm_to_vmem [thread:$0]  (%p5921_p8), %s5247_s0, 16, %s1045_s27, %s5931_s22  }
 0x1de   : > { %s5933_s18 = sld [smem:[#allocation75_spill]]  ;;  %s5934_s9 = sshll.u32 %s4911_s3, 4 }
 0x1df   : > { %s1072_s6 = scalar_lea.vmem [#allocation26], %s5934_s9 }
 0x1e0   : > { %s1079_s12 = sshll.u32 %s1072_s6, 4  ;;  %s5278_s12 = int_to_ptr.vmem [resolvable:$true] %s1079_s12 }
 0x1e4   : > { %s5274_s23 = scalar_lea.hbm %s5933_s18, %s5932_s13  ;;  %s4383_s25 = scalar_lea.hbm %s5933_s18, 512 }
 0x1e5   : > { %s4379_s28 = scalar_lea.hbm %s5274_s23, 256  ;;  %p4384_p0 = scmp.lt.u32.totalorder %s5274_s23, %s5933_s18 }
 0x1e6   : > { %p4380_p9 = scmp.ne.s32.totalorder %s5274_s23, %s4379_s28  ;;  %p4385_p13 = scmp.lt.u32.totalorder %s4383_s25, %s4379_s28 }
 0x1e7   : > { %p4387_p2 = scmp.lt.u32.totalorder %s4379_s28, %s5274_s23 }
 0x1e8   : > { %p4381_p5 = pnand %p4380_p9, %p5921_p8  ;;  %p4386_p10 = por %p4385_p13, %p4384_p0 }
 0x1ea   : > { %p4382_p12 = pneg %p4381_p5  ;;  %p4388_p11 = por %p4387_p2, %p4386_p10 }
 0x1ec   : > { %p4389_p7 = pnand %p4388_p11, %p4382_p12 }
 0x1ee   : > { %4392 = shalt.err (!%p4389_p7)
}
 0x1ef   : > { %s4393_s3 = scalar_lea.vmem %s5278_s12, 256  ;;  %s4579_s4 = smov [#allocation26]  }
 0x1f0   : > { %p4394_p6 = scmp.ne.s32.totalorder %s5278_s12, %s4393_s3  ;;  %s4397_s24 = sshll.u32 %s4579_s4, 4  ;;  %s4398_s24 = int_to_ptr.vmem [resolvable:$false] %s4397_s24 }
 0x1f1   : > { %s4399_s9 = scalar_lea.vmem %s4398_s24, 512  ;;  %p4400_p3 = scmp.lt.s32.totalorder %s5278_s12, %s4398_s24 }
 0x1f2   : > { %p4395_p1 = pnand %p4394_p6, %p5921_p8  ;;  %p4401_p9 = scmp.lt.s32.totalorder %s4399_s9, %s4393_s3 }
 0x1f4   : > { %p4396_p4 = pneg %p4395_p1  ;;  %p4402_p5 = por %p4401_p9, %p4400_p3 }
 0x1f6   : > { %p4403_p0 = pnand %p4402_p5, %p4396_p4 }
 0x1f8   : > { %4406 = shalt.err (!%p4403_p0)
}
 0x1f9   : > { %s5935_s6 = scalar_lea.sflag [#allocation25], %s4872_s29 }
 0x1fa   : > { %3802 = dma.hbm_to_vmem [thread:$0]  (%p5921_p8), %s5274_s23, 256, %s5278_s12, %s5935_s6, %s4576_s26, %s4576_s26, %s4577_s19  }
 0x1fb PF: > { %p3490_p12 = scmp.ge.s32.totalorder %s4561_s2, 1  ;;  %p1119_p13 = scmp.lt.s32.totalorder %s4561_s2, 5 }
 0x1fd   : > { %p1120_p10 = pnand %p3490_p12, %p1119_p13 }
 0x1fe   : > { %s5936_s28 = sld [smem:[#allocation52_spill]] (!%p1120_p10)  ;;  %s5309_s0 = sand.u32 (!%p1120_p10), 1, %s4537_s8  }
 0x1ff   : > { %1123 = sbr.rel (%p1120_p10) target bundleno = 5208 (0x1458), region = 124  ;;  %s5312_s20 = sshll.u32 (!%p1120_p10), %s5309_s0, 3 }
 0x200   : > { %s1126_s29 = scalar_lea.sflag (!%p1120_p10), [#allocation4], %s5309_s0 }
 0x204   : > { %p5937_p2 = scmp.ne.s32.totalorder (!%p1120_p10), %s5936_s28, 0 }
 0x206   : > { %4480 = dma.done.wait (%p5937_p2), %s1126_s29, 128  }
 0x207   : > { %4482 = vsyncadd (%p5937_p2), %s1126_s29, 4294967168  ;;  %s5938_s26 = sld [smem:[#allocation48_spill]] }
 0x20d   : > { %s5321_s19 = sand.u32 1, %s5938_s26  }
 0x20e   : > { %s1135_s23 = scalar_lea.sflag [#allocation7], %s5321_s19 }
 0x20f   : > { %4484 = dma.done.wait (%p5937_p2), %s1135_s23, 256  }
 0x210   : > { %4486 = vsyncadd (%p5937_p2), %s1135_s23, 4294967040  ;;  %s1153_s22 = scalar_lea.sflag [#allocation10], %s5321_s19 }
 0x211   : > { %4488 = dma.done.wait (%p5937_p2), %s1153_s22, 16  }
 0x212   : > { %4490 = vsyncadd (%p5937_p2), %s1153_s22, 4294967280  ;;  %s5939_s3 = sld [smem:[#allocation38_spill]] }
 0x213   : > { %s5940_s4 = sld [smem:[#allocation54_spill]] }
 0x218   : > { %s5337_s24 = sand.u32 1, %s5939_s3  }
 0x219   : > { %p5941_p8 = scmp.ne.s32.totalorder %s5940_s4, 0 }
 0x21b   : > { %4492 = dma.done.wait (%p5941_p8), %s1153_s22, 16  }
 0x21c   : > { %4494 = vsyncadd (%p5941_p8), %s1153_s22, 4294967280  ;;  %s1169_s6 = scalar_lea.sflag [#allocation13], %s5321_s19 }
 0x21d   : > { %4496 = dma.done.wait (%p5941_p8), %s1169_s6, 32  }
 0x21e   : > { %4498 = vsyncadd (%p5941_p8), %s1169_s6, 4294967264  ;;  %s1185_s26 = scalar_lea.sflag [#allocation16], %s5321_s19 }
 0x21f   : > { %4500 = dma.done.wait (%p5941_p8), %s1185_s26, 32  }
 0x220   : > { %4502 = vsyncadd (%p5941_p8), %s1185_s26, 4294967264  ;;  %s1201_s3 = scalar_lea.sflag [#allocation19], %s5321_s19 }
 0x221   : > { %4504 = dma.done.wait (%p5941_p8), %s1201_s3, 272  }
 0x222   : > { %4506 = vsyncadd (%p5941_p8), %s1201_s3, 4294967024  ;;  %s3494_s6 = sshll.u32 %s5337_s24, 4  ;;  %s1218_s26 = scalar_lea.sflag [#allocation22], %s5321_s19 }
 0x223   : > { %s5365_s23 = scalar_lea.vmem [#allocation20], %s3494_s6 }
 0x224   : > { %4508 = dma.done.wait (%p5941_p8), %s1218_s26, 32  }
 0x225   : > { %4510 = vsyncadd (%p5941_p8), %s1218_s26, 4294967264  ;;  %s1234_s3 = scalar_lea.sflag [#allocation25], %s5321_s19 }
 0x226   : > { %4512 = dma.done.wait (%p5941_p8), %s1234_s3, 272  }
 0x227   : > { %4514 = vsyncadd (%p5941_p8), %s1234_s3, 4294967024  ;;  %s5942_s12 = sld [smem:[#allocation44_spill]]  ;;  %s5944_s3 = sld [smem:[#allocation61_spill]] }
 0x228   : > { %s5945_s5 = sld [smem:[#allocation63_spill]]  ;;  %s5946_s15 = sld [smem:[#allocation67_spill]] }
 0x229   : > { %s5947_s21 = sld [smem:[#allocation69_spill]]  ;;  %s5948_s25 = sld [smem:[#allocation78_spill]] }
 0x22a   : > { %s5949_s1 = sld [smem:[#allocation77_spill]]  ;;  %s5950_s11 = sld [smem:[#allocation79_spill]] }
 0x22b   : > { %s5951_s2 = sld [smem:[#allocation80_spill]]  ;;  %s5425_s18 = scalar_lea.vmem [#allocation26], %s3494_s6 }
 0x22d   : > { %p1411_p11 = scmp.lt.s32.totalorder %s5942_s12, 1  ;;  %p3507_p7 = scmp.ne.s32.totalorder %s5942_s12, 0 }
 0x22e   : > { %s5953_s22 = sld [smem:[#allocation43_spill]] (!%p3507_p7)  ;;  %vm1456_vm0 = vcmask (!%p3507_p7), 261120  }
 0x22f   : > { %s5382_s28 = scalar_select %p1411_p11, %s5942_s12, 1 }
 0x230   : > { %1452 = sbr.rel (%p3507_p7) target bundleno = 570 (0x23a), region = 188 }
 0x231   : > { %s3572_s26 = sshll.u32 %s5382_s28, 4  ;;  %s3576_s13 = sshll.u32 %s5382_s28, 5 }
 0x232   : > { %s1415_s9 = scalar_lea.vmem %s5944_s3, %s3572_s26  ;;  %s5395_s10 = scalar_lea.vmem %s5945_s5, %s3572_s26 }
 0x233   : > { %s5400_s16 = scalar_lea.vmem %s5946_s15, %s3572_s26  ;;  %s5405_s30 = scalar_lea.vmem %s5947_s21, %s3572_s26 }
 0x234   : > { %s1441_s4 = scalar_lea.vmem %s5948_s25, %s5382_s28  ;;  %s5415_s5 = scalar_lea.vmem %s5949_s1, %s3576_s13 }
 0x235   : > { %s1444_s14 = scalar_lea.vmem %s5950_s11, %s5382_s28  ;;  %s1447_s17 = scalar_lea.vmem %s5951_s2, %s5382_s28 }
 0x236   : > { %s1410_s21 = scalar_lea.vmem [#allocation27], %s5312_s20  ;;  %s5952_s26 = scalar_lea.vmem (!%p3507_p7), [#allocation3], %s5312_s20 }
 0x237   : > { %v1453_v0 = vld [vmem:[%s5952_s26] sm:$0xff]  ;;  %s3508_s29 = sshll.u32 %s5953_s22, 3 }
 0x238   : > { %s1455_s13 = scalar_lea.vmem [#allocation2], %s3508_s29 }
 0x239   : > { %1457 = vst.msk [vmem:[%s1455_s13] sm:$0xff] %vm1456_vm0, %v1453_v0 }
 0x23a PF: > { %v3931_v1 = vld [vmem:[%s1415_s9] sm:$0xff]   ;;  %s5954_s8 = sld [smem:[#allocation43_spill]]  ;;  %v4580_v2 = vmov 0.0   ;;  %v3932_v3 = vld [vmem:[%s1415_s9 + $0x8] sm:$0xff]   ;;  %vm4581_vm1 = vmmov 0   ;;  %vm1487_vm2 = vcmask 261120  }
 0x23b   : > { %3632 = vmatprep.subr.bf16.mxu1 %v4580_v2  ;;  %3646 = vmatprep.subr.bf16.mxu0 %v4580_v2  ;;  %s5955_s12 = scalar_lea.vmem [#allocation11], %s5337_s24  ;;  %s4582_s9 = smov 120   ;;  %vm1536_vm3 = vcmask 64512   ;;  %vm1600_vm4 = vcmask 1043456   ;;  %vm1987_vm5 = vcmask 130048   ;;  %vm1989_vm6 = vcmask 195584  }
 0x23c   : > { %3633 = vmatpush3.bf16.msra.mxu1 %v3931_v1  ;;  %3636 = vmatprep.mubr.msk.bf16.mxu1 %vm4581_vm1, %v4580_v2  ;;  %v3510_v6 = vld [vmem:[%s5955_s12] ss:$0 sm:$0xff]  ;;  %s4583_s6 = smov 96   ;;  %s4584_s19 = smov 80   ;;  %vm2889_vm7 = vcmask 523264  }
 0x23d   : > { %3634 = vmatprep.subr.bf16.mxu1 %v4580_v2  ;;  %3648 = vmatprep.mubr.msk.bf16.mxu0 %vm4581_vm1, %v4580_v2  ;;  %s4585_s25 = smov 88   ;;  %s4586_s3 = smov 72  }
 0x23e   : > { %s4587_s1 = smov 112   ;;  %s4588_s27 = smov 104  }
 0x23f   : > { %s5956_s11 = scalar_lea.vmem [#allocation8], %s5312_s20  ;;  %s4589_s15 = smov 56  }
 0x240   : > { %s3509_s7 = sshll.u32 %s5954_s8, 3  ;;  %3635 = vmatpush3.bf16.msra.mxu1 %v3932_v3  ;;  %v1531_v24 = vld [vmem:[%s5956_s11] sm:$0xff]  ;;  %s4590_s26 = smov 64  }
 0x241   : > { %s5440_s2 = scalar_lea.vmem [#allocation2], %s3509_s7  ;;  %3640 = vmatprep.subr.bf16.mxu1 %v4580_v2  ;;  %s4591_s22 = smov 40  }
 0x242   : > { %v5443_v4 = vld [vmem:[%s5440_s2] sm:$0xff]  ;;  %s4592_s29 = smov 48   ;;  %s4593_s13 = smov 8  }
 0x243   : > { %v1463_v5 = vpack.c.bf16 %v5443_v4, %v5443_v4  ;;  %s4594_s8 = smov 16   ;;  %s4595_s7 = smov 24  }
 0x244   : > { %s5958_s12 = scalar_lea.vmem [#allocation6], %s5312_s20  ;;  %s5960_s11 = scalar_lea.vmem [#allocation15], %s5337_s24 }
 0x245   : > { %3637 = vmatmul.mubr.msk.bf16.vlgmr.msra.gmra.mrb[0].mxu1 %vm1487_vm2, %v1463_v5 }
 0x246   : > { %3642 = vmatprep.mubr.msk.bf16.mxu1 %vm4581_vm1, %v4580_v2 }
 0x318   : > { %v1525_v7 = vpop.f32.mrb[0].mxu1 }
 0x319   : > { %v1526_v8 = vadd.f32 %v3510_v6, %v1525_v7  ;;  %v3638_v9 = vpop.f32.mrb[1].mxu1 }
 0x31a   : > { %v1528_v10 = vpop.f32.mrb[2].mxu1 }
 0x31b   : > { %v5453_v11 = vpack.c.bf16 %v1526_v8, %v1526_v8  ;;  %v3639_v12 = vpop.f32.mrb[3].mxu1 }
 0x31d   : > { %1644 = vrot.lane.b32.xlu1 %v5453_v11, %s4582_s9  ;;  %1534 = vrot.lane.b32.xlu0 %v5453_v11, %s4583_s6 }
 0x321   : > { %1756 = vrot.lane.b32.xlu1 %v5453_v11, %s4584_s19  ;;  %1646 = vrot.lane.b32.xlu0 %v5453_v11, %s4585_s25 }
 0x325   : > { %1866 = vrot.lane.b32.xlu1 %v5453_v11, %s4586_s3  ;;  %1754 = vrot.lane.b32.xlu0 %v5453_v11, %s4587_s1 }
 0x329   : > { %1864 = vrot.lane.b32.xlu0 %v5453_v11, %s4588_s27 }
 0x38f   : > { %v1535_v13 = vpop.permute.xlu0 %1534  ;;  %v1645_v16 = vpop.permute.xlu1 %1644 }
 0x390   : > { %v1541_v14 = vsel %vm1536_vm3, %v1535_v13, 0 }
 0x391   : > { %3641 = vmatpush3.bf16.xpose.msra.mxu1 %v1541_v14 }
 0x392   : > { %3652 = vmatprep.subr.bf16.mxu1 %v4580_v2 }
 0x393   : > { %v1647_v15 = vpop.permute.xlu0 %1646  ;;  %v1757_v18 = vpop.permute.xlu1 %1756 }
 0x394   : > { %v1652_v17 = vsel %vm1536_vm3, %v1647_v15, 0  ;;  %v1762_v19 = vsel %vm1536_vm3, %v1757_v18, 0 }
 0x397   : > { %v1867_v20 = vpop.permute.xlu1 %1866  ;;  %v1755_v21 = vpop.permute.xlu0 %1754 }
 0x398   : > { %3643 = vmatmul.mubr.msk.bf16.vlgmr.msra.gmra.mrb[4].mxu1 %vm1536_vm3, %v5453_v11  ;;  %v1872_v22 = vsel %vm1536_vm3, %v1867_v20, 0 }
 0x399   : > { %3653 = vmatpush3.bf16.xpose.msra.mxu1 %v1652_v17  ;;  %3654 = vmatprep.mubr.msk.bf16.mxu1 %vm4581_vm1, %v4580_v2 }
 0x39a   : > { %3664 = vmatprep.subr.bf16.mxu1 %v4580_v2 }
 0x39b   : > { %v1865_v23 = vpop.permute.xlu0 %1864 }
 0x3a0   : > { %3655 = vmatmul.mubr.msk.bf16.vlgmr.msra.gmra.mrb[8].mxu1 %vm1536_vm3, %v1645_v16 }
 0x3a1   : > { %3665 = vmatpush3.bf16.xpose.msra.mxu1 %v1762_v19  ;;  %3666 = vmatprep.mubr.msk.bf16.mxu1 %vm4581_vm1, %v4580_v2 }
 0x3a2   : > { %3676 = vmatprep.subr.bf16.mxu1 %v4580_v2 }
 0x3a8   : > { %3667 = vmatmul.mubr.msk.bf16.vlgmr.msra.gmra.mrb[12].mxu1 %vm1536_vm3, %v1755_v21 }
 0x3a9   : > { %3677 = vmatpush3.bf16.xpose.msra.mxu1 %v1872_v22  ;;  %3678 = vmatprep.mubr.msk.bf16.mxu1 %vm4581_vm1, %v4580_v2 }
 0x3aa   : > { %3688 = vmatprep.subr.bf16.mxu1 %v4580_v2 }
 0x3b0   : > { %3679 = vmatmul.mubr.msk.bf16.vlgmr.msra.gmra.mrb[16].mxu1 %vm1536_vm3, %v1865_v23 }
 0x3b1   : > { %3692 = vmatprep.mubr.msk.bf16.mxu1 %vm4581_vm1, %v4580_v2 }
 0x46b   : > { %v1577_v25 = vpop.f32.mrb[4].mxu1 }
 0x46c   : > { %v1578_v26 = vadd.f32 %v1577_v25, %v1531_v24  ;;  %v3644_v27 = vpop.f32.mrb[5].mxu1 }
 0x46d   : > { %v1580_v28 = vpop.f32.mrb[6].mxu1 }
 0x46e   : > { %v3645_v29 = vpop.f32.mrb[7].mxu1  ;;  %v1583_v30 = vsel %vm1536_vm3, %v1578_v26, -inf }
 0x46f   : > { %1584 = vmax.xlane.f32.xlu1 %v1583_v30 }
 0x473   : > { %v1688_v31 = vpop.f32.mrb[8].mxu1 }
 0x474   : > { %v1689_v32 = vadd.f32 %v1688_v31, %v1531_v24  ;;  %v3656_v33 = vpop.f32.mrb[9].mxu1 }
 0x475   : > { %v1691_v34 = vpop.f32.mrb[10].mxu1 }
 0x476   : > { %v3657_v35 = vpop.f32.mrb[11].mxu1  ;;  %v1694_v36 = vsel %vm1536_vm3, %v1689_v32, -inf }
 0x477   : > { %1695 = vmax.xlane.f32.xlu0 %v1694_v36 }
 0x47b   : > { %v1798_v37 = vpop.f32.mrb[12].mxu1 }
 0x47c   : > { %v1799_v38 = vadd.f32 %v1798_v37, %v1531_v24  ;;  %v3668_v39 = vpop.f32.mrb[13].mxu1 }
 0x47d   : > { %v1801_v40 = vpop.f32.mrb[14].mxu1  ;;  %v3933_v39 = vld [vmem:[%s5395_s10] sm:$0xff]  }
 0x47e   : > { %v3669_v41 = vpop.f32.mrb[15].mxu1  ;;  %v1804_v42 = vsel %vm1536_vm3, %v1799_v38, -inf  ;;  %3689 = vmatpush3.bf16.msra.mxu1 %v3933_v39  ;;  %v3934_v40 = vld [vmem:[%s5395_s10 + $0x8] sm:$0xff]   ;;  %s5957_s10 = scalar_lea.vmem [#allocation12], %s5337_s24 }
 0x47f   : > { %1805 = vmax.xlane.f32.xlu0 %v1804_v42  ;;  %3690 = vmatprep.subr.bf16.mxu1 %v4580_v2 }
 0x482   : > { %3691 = vmatpush3.bf16.msra.mxu1 %v3934_v40 }
 0x483   : > { %v1908_v43 = vpop.f32.mrb[16].mxu1  ;;  %3704 = vmatprep.subr.bf16.mxu1 %v4580_v2 }
 0x484   : > { %v1909_v44 = vadd.f32 %v1908_v43, %v1531_v24  ;;  %v3680_v45 = vpop.f32.mrb[17].mxu1 }
 0x485   : > { %v1911_v46 = vpop.f32.mrb[18].mxu1 }
 0x486   : > { %v3681_v47 = vpop.f32.mrb[19].mxu1  ;;  %v1914_v48 = vsel %vm1536_vm3, %v1909_v44, -inf }
 0x487   : > { %1915 = vmax.xlane.f32.xlu1 %v1914_v48 }
 0x4fc   : > { %v1585_v49 = vpop.xlane.xlu1 %1584 }
 0x4fd   : > { %v1586_v50 = vsub.f32 %v1578_v26, %v1585_v49 }
 0x4ff   : > { %v1587_v51 = vmul.f32 1.442695, %v1586_v50 }
 0x501   : > { %3947 = vpow2.f32 %v1587_v51 }
 0x504   : > { %v1696_v52 = vpop.xlane.xlu0 %1695 }
 0x505   : > { %v1697_v53 = vsub.f32 %v1689_v32, %v1696_v52 }
 0x507   : > { %v1698_v54 = vmul.f32 1.442695, %v1697_v53 }
 0x509   : > { %3949 = vpow2.f32 %v1698_v54 }
 0x50b   : > { %v3948_v55 = vpop.eup %3947 }
 0x50c   : > { %v1806_v56 = vpop.xlane.xlu0 %1805  ;;  %v1589_v57 = vsel %vm1536_vm3, %v3948_v55, 0.0 }
 0x50d   : > { %v1807_v58 = vsub.f32 %v1799_v38, %v1806_v56  ;;  %1590 = vadd.xlane.f32.xlu0 %v1589_v57  ;;  %v3522_v56 = vld [vmem:[%s5957_s10] ss:$0 sm:$0xff] }
 0x50f   : > { %v1808_v59 = vmul.f32 1.442695, %v1807_v58 }
 0x511   : > { %3951 = vpow2.f32 %v1808_v59 }
 0x513   : > { %v3950_v60 = vpop.eup %3949 }
 0x514   : > { %v1700_v61 = vsel %vm1536_vm3, %v3950_v60, 0.0  ;;  %v1916_v0 = vpop.xlane.xlu1 %1915 }
 0x515   : > { %1701 = vadd.xlane.f32.xlu1 %v1700_v61  ;;  %v1917_v1 = vsub.f32 %v1909_v44, %v1916_v0 }
 0x517   : > { %v1918_v3 = vmul.f32 1.442695, %v1917_v1 }
 0x519   : > { %3953 = vpow2.f32 %v1918_v3 }
 0x51b   : > { %v3952_v62 = vpop.eup %3951 }
 0x51c   : > { %v1810_v63 = vsel %vm1536_vm3, %v3952_v62, 0.0 }
 0x51d   : > { %1811 = vadd.xlane.f32.xlu0 %v1810_v63 }
 0x523   : > { %v3954_v5 = vpop.eup %3953 }
 0x524   : > { %v1920_v6 = vsel %vm1536_vm3, %v3954_v5, 0.0 }
 0x526   : > { %1706 = vrot.lane.b32.xlu1 %v5453_v11, %s4589_s15  ;;  %s5962_s15 = scalar_lea.vmem [#allocation17], %s5337_s24 }
 0x533   : > { %1595 = vrot.lane.b32.xlu0 %v5453_v11, %s4590_s26 }
 0x537   : > { %1926 = vrot.lane.b32.xlu0 %v5453_v11, %s4591_s22 }
 0x54a   : > { %1921 = vadd.xlane.f32.xlu1 %v1920_v6 }
 0x55b   : > { %1816 = vrot.lane.b32.xlu1 %v5453_v11, %s4592_s29 }
 0x59a   : > { %v1591_v7 = vpop.xlane.xlu0 %1590 }
 0x59b   : > { %3955 = vrcp.f32 %v1591_v7  ;;  %v3935_v7 = vld [vmem:[%s5405_s30] sm:$0xff]  }
 0x5a2   : > { %v1702_v8 = vpop.xlane.xlu1 %1701 }
 0x5a3   : > { %3957 = vrcp.f32 %v1702_v8  ;;  %v3936_v8 = vld [vmem:[%s5405_s30 + $0x8] sm:$0xff]   ;;  %s5959_s30 = scalar_lea.vmem [#allocation14], %s5337_s24 }
 0x5a5   : > { %v3956_v9 = vpop.eup %3955 }
 0x5a6   : > { %v1593_v12 = vmul.f32 %v3956_v9, %v3948_v55  ;;  %v1707_v15 = vpop.permute.xlu1 %1706 }
 0x5a7   : > { %v1712_v18 = vsel %vm1600_vm4, %v1707_v15, 0 }
 0x5a8   : > { %v1594_v16 = vpack.c.bf16 %v1593_v12, %v1593_v12  ;;  %v3938_v12 = vld [vmem:[%s5400_s16 + $0x8] sm:$0xff]  }
 0x5aa   : > { %v1812_v10 = vpop.xlane.xlu0 %1811 }
 0x5ab   : > { %3959 = vrcp.f32 %v1812_v10  ;;  %v3937_v10 = vld [vmem:[%s5400_s16] sm:$0xff]   ;;  %s5961_s16 = scalar_lea.vmem [#allocation18], %s5337_s24 }
 0x5ad   : > { %v3958_v17 = vpop.eup %3957 }
 0x5ae   : > { %v1596_v13 = vpop.permute.xlu0 %1595  ;;  %v1704_v11 = vmul.f32 %v3958_v17, %v3950_v60  ;;  %v3526_v17 = vld [vmem:[%s5959_s30] ss:$0 sm:$0xff] }
 0x5af   : > { %v1602_v14 = vsel %vm1600_vm4, %v1596_v13, 0 }
 0x5b0   : > { %3647 = vmatpush3.bf16.msra.mxu0 %v1602_v14  ;;  %v1705_v19 = vpack.c.bf16 %v1704_v11, %v1704_v11  ;;  %v3527_v11 = vld [vmem:[%s5960_s11] ss:$0 sm:$0xff] }
 0x5b1   : > { %3658 = vmatprep.subr.bf16.mxu0 %v4580_v2 }
 0x5b2   : > { %v1927_v25 = vpop.permute.xlu0 %1926 }
 0x5b3   : > { %3649 = vmatmul.mubr.msk.bf16.vlgmr.msra.gmra.mrb[0].mxu0 %vm1536_vm3, %v1594_v16  ;;  %v1932_v27 = vsel %vm1600_vm4, %v1927_v25, 0 }
 0x5b4   : > { %3659 = vmatpush3.bf16.msra.mxu0 %v1712_v18  ;;  %3660 = vmatprep.mubr.msk.bf16.mxu0 %vm4581_vm1, %v4580_v2 }
 0x5b5   : > { %3670 = vmatprep.subr.bf16.mxu0 %v4580_v2  ;;  %v3960_v20 = vpop.eup %3959 }
 0x5b6   : > { %v1814_v22 = vmul.f32 %v3960_v20, %v3952_v62 }
 0x5b8   : > { %v1815_v26 = vpack.c.bf16 %v1814_v22, %v1814_v22  ;;  %v3532_v22 = vld [vmem:[%s5961_s16] ss:$0 sm:$0xff] }
 0x5bb   : > { %3661 = vmatmul.mubr.msk.bf16.vlgmr.msra.gmra.mrb[4].mxu0 %vm1536_vm3, %v1705_v19 }
 0x5bc   : > { %3672 = vmatprep.mubr.msk.bf16.mxu0 %vm4581_vm1, %v4580_v2 }
 0x5d7   : > { %v1922_v21 = vpop.xlane.xlu1 %1921 }
 0x5d8   : > { %3961 = vrcp.f32 %v1922_v21 }
 0x5db   : > { %v1817_v23 = vpop.permute.xlu1 %1816 }
 0x5dc   : > { %v1822_v24 = vsel %vm1600_vm4, %v1817_v23, 0 }
 0x5dd   : > { %3671 = vmatpush3.bf16.msra.mxu0 %v1822_v24 }
 0x5de   : > { %3682 = vmatprep.subr.bf16.mxu0 %v4580_v2 }
 0x5e0   : > { %3673 = vmatmul.mubr.msk.bf16.vlgmr.msra.gmra.mrb[8].mxu0 %vm1536_vm3, %v1815_v26 }
 0x5e1   : > { %3683 = vmatpush3.bf16.msra.mxu0 %v1932_v27  ;;  %3684 = vmatprep.mubr.msk.bf16.mxu0 %vm4581_vm1, %v4580_v2 }
 0x5e2   : > { %v3962_v28 = vpop.eup %3961  ;;  %3696 = vmatprep.subr.bf16.mxu0 %v4580_v2 }
 0x5e3   : > { %v1924_v29 = vmul.f32 %v3962_v28, %v3954_v5 }
 0x5e5   : > { %v1925_v30 = vpack.c.bf16 %v1924_v29, %v1924_v29 }
 0x5e8   : > { %3685 = vmatmul.mubr.msk.bf16.vlgmr.msra.gmra.mrb[12].mxu0 %vm1536_vm3, %v1925_v30  ;;  %v3528_v30 = vld [vmem:[%s5962_s15] ss:$0 sm:$0xff] }
 0x5e9   : > { %3700 = vmatprep.mubr.msk.bf16.mxu0 %vm4581_vm1, %v4580_v2  ;;  %3697 = vmatpush3.bf16.msra.mxu0 %v3937_v10 }
 0x5ea   : > { %3698 = vmatprep.subr.bf16.mxu0 %v4580_v2 }
 0x5ed   : > { %3699 = vmatpush3.bf16.msra.mxu0 %v3938_v12 }
 0x5ee   : > { %3712 = vmatprep.subr.bf16.mxu0 %v4580_v2 }
 0x686   : > { %v1638_v31 = vpop.f32.mrb[0].mxu0 }
 0x687   : > { %v3650_v32 = vpop.f32.mrb[1].mxu0 }
 0x688   : > { %v1641_v33 = vpop.f32.mrb[2].mxu0 }
 0x689   : > { %v3651_v34 = vpop.f32.mrb[3].mxu0 }
 0x68e   : > { %v1748_v35 = vpop.f32.mrb[4].mxu0 }
 0x68f   : > { %1975 = vrot.lane.b32.xlu1 %v1748_v35, %s4593_s13  ;;  %v3662_v36 = vpop.f32.mrb[5].mxu0 }
 0x690   : > { %v1751_v37 = vpop.f32.mrb[6].mxu0 }
 0x691   : > { %v3663_v38 = vpop.f32.mrb[7].mxu0 }
 0x6b3   : > { %v1858_v41 = vpop.f32.mrb[8].mxu0 }
 0x6b4   : > { %1979 = vrot.lane.b32.xlu0 %v1858_v41, %s4594_s8  ;;  %v3674_v42 = vpop.f32.mrb[9].mxu0 }
 0x6b5   : > { %v1861_v43 = vpop.f32.mrb[10].mxu0 }
 0x6b6   : > { %v3675_v44 = vpop.f32.mrb[11].mxu0 }
 0x6bb   : > { %v1968_v45 = vpop.f32.mrb[12].mxu0 }
 0x6bc   : > { %1983 = vrot.lane.b32.xlu1 %v1968_v45, %s4595_s7  ;;  %v3686_v46 = vpop.f32.mrb[13].mxu0 }
 0x6bd   : > { %v1971_v47 = vpop.f32.mrb[14].mxu0 }
 0x6be   : > { %v3687_v48 = vpop.f32.mrb[15].mxu0 }
 0x701   : > { %v1976_v49 = vpop.permute.xlu1 %1975 }
 0x702   : > { %v1986_v51 = vsel %vm1536_vm3, %v1638_v31, %v1976_v49 }
 0x726   : > { %v1980_v50 = vpop.permute.xlu0 %1979 }
 0x727   : > { %v1988_v52 = vsel %vm1987_vm5, %v1986_v51, %v1980_v50 }
 0x72e   : > { %v1984_v53 = vpop.permute.xlu1 %1983 }
 0x72f   : > { %v1990_v54 = vsel %vm1989_vm6, %v1988_v52, %v1984_v53 }
 0x730   : > { %v1991_v55 = vpack.c.bf16 %v1990_v54, %v1990_v54 }
 0x732   : > { %3693 = vmatmul.mubr.msk.bf16.vlgmr.msra.gmra.mrb[20].mxu1 %vm1487_vm2, %v1991_v55 }
 0x733   : > { %3708 = vmatprep.mubr.msk.bf16.mxu1 %vm4581_vm1, %v4580_v2  ;;  %3705 = vmatpush3.bf16.msra.mxu1 %v3935_v7 }
 0x734   : > { %3706 = vmatprep.subr.bf16.mxu1 %v4580_v2 }
 0x737   : > { %3707 = vmatpush3.bf16.msra.mxu1 %v3936_v8 }
 0x738   : > { %3718 = vmatprep.subr.bf16.mxu1 %v4580_v2 }
 0x805   : > { %v2052_v57 = vpop.f32.mrb[20].mxu1 }
 0x806   : > { %v2053_v58 = vadd.f32 %v3522_v56, %v2052_v57  ;;  %v3694_v59 = vpop.f32.mrb[21].mxu1 }
 0x807   : > { %v2055_v60 = vpop.f32.mrb[22].mxu1 }
 0x808   : > { %v3695_v61 = vpop.f32.mrb[23].mxu1  ;;  %v2058_v62 = vadd.f32 %v2053_v58, %v5443_v4  ;;  %v1461_v4 = vld [vmem:[%s5958_s12] sm:$0xff] }
 0x809   : > { %v1462_v9 = vpack.c.bf16 %v1461_v4, %v1461_v4 }
 0x80a   : > { %v2059_v63 = vsel %vm1487_vm2, %v2058_v62, 0.0 }
 0x80b   : > { %2060 = vadd.xlane.f32.xlu0 %v2059_v63  ;;  %3709 = vmatmul.mubr.msk.bf16.vlgmr.msra.gmra.mrb[24].mxu1 %vm1487_vm2, %v1462_v9 }
 0x80c   : > { %3720 = vmatprep.mubr.msk.bf16.mxu1 %vm4581_vm1, %v4580_v2 }
 0x898   : > { %v2061_v0 = vpop.xlane.xlu0 %2060 }
 0x899   : > { %v2063_v1 = vmul.f32 0.03125, %v2061_v0 }
 0x89b   : > { %v2064_v3 = vsub.f32 %v2058_v62, %v2063_v1 }
 0x89d   : > { %v2065_v5 = vmul.f32 %v2064_v3, %v2064_v3 }
 0x89f   : > { %v2066_v6 = vsel %vm1487_vm2, %v2065_v5, 0.0 }
 0x8a0   : > { %2067 = vadd.xlane.f32.xlu1 %v2066_v6 }
 0x8de   : > { %v2216_v23 = vpop.f32.mrb[24].mxu1 }
 0x8df   : > { %v2217_v24 = vadd.f32 %v3532_v22, %v2216_v23  ;;  %v3710_v25 = vpop.f32.mrb[25].mxu1 }
 0x8e0   : > { %v2219_v26 = vpop.f32.mrb[26].mxu1 }
 0x8e1   : > { %v5568_v27 = vpack.c.bf16 %v2217_v24, %v2217_v24  ;;  %v3711_v28 = vpop.f32.mrb[27].mxu1 }
 0x8e3   : > { %2341 = vrot.lane.b32.xlu0 %v5568_v27, %s4582_s9  ;;  %v2235_v29 = vsel %vm1536_vm3, %v5568_v27, 0 }
 0x8e7   : > { %2451 = vrot.lane.b32.xlu0 %v5568_v27, %s4587_s1 }
 0x8eb   : > { %2561 = vrot.lane.b32.xlu0 %v5568_v27, %s4588_s27 }
 0x92d   : > { %v2068_v13 = vpop.xlane.xlu1 %2067 }
 0x92e   : > { %v2069_v14 = vmul.f32 0.03125, %v2068_v13 }
 0x930   : > { %v2070_v15 = vadd.f32 1e-05, %v2069_v14 }
 0x932   : > { %3963 = vrsqrt.f32 %v2070_v15 }
 0x93c   : > { %v3964_v16 = vpop.eup %3963 }
 0x93d   : > { %v2072_v18 = vmul.f32 %v3964_v16, %v2064_v3 }
 0x93f   : > { %v2080_v19 = vmul.f32 %v3526_v17, %v2072_v18 }
 0x941   : > { %v5559_v20 = vadd.f32 %v3527_v11, %v2080_v19 }
 0x943   : > { %v2089_v21 = vpack.c.bf16 %v5559_v20, %v5559_v20 }
 0x945   : > { %3701 = vmatmul.mubr.msk.bf16.vlgmr.msra.gmra.mrb[16].mxu0 %vm1487_vm2, %v2089_v21 }
 0x946   : > { %3714 = vmatprep.mubr.msk.bf16.mxu0 %vm4581_vm1, %v4580_v2  ;;  %3713 = vmatpush3.bf16.xpose.msra.mxu0 %v2235_v29 }
 0x947   : > { %3724 = vmatprep.subr.bf16.mxu0 %v4580_v2 }
 0x955   : > { %v2342_v35 = vpop.permute.xlu0 %2341 }
 0x956   : > { %v2347_v38 = vsel %vm1536_vm3, %v2342_v35, 0 }
 0x959   : > { %v2452_v39 = vpop.permute.xlu0 %2451 }
 0x95a   : > { %v2457_v41 = vsel %vm1536_vm3, %v2452_v39, 0 }
 0x95d   : > { %v2562_v42 = vpop.permute.xlu0 %2561 }
 0x95e   : > { %v2567_v44 = vsel %vm1536_vm3, %v2562_v42, 0 }
 0xa18   : > { %v2150_v31 = vpop.f32.mrb[16].mxu0 }
 0xa19   : > { %v2151_v32 = vadd.f32 %v3528_v30, %v2150_v31  ;;  %v3702_v33 = vpop.f32.mrb[17].mxu0 }
 0xa1a   : > { %v2153_v34 = vpop.f32.mrb[18].mxu0 }
 0xa1b   : > { %v2223_v36 = vpack.c.bf16 %v2151_v32, %v2151_v32  ;;  %v3703_v37 = vpop.f32.mrb[19].mxu0 }
 0xa1d   : > { %2339 = vrot.lane.b32.xlu1 %v2223_v36, %s4582_s9  ;;  %3715 = vmatmul.mubr.msk.bf16.vlgmr.msra.gmra.mrb[20].mxu0 %vm1536_vm3, %v2223_v36  ;;  %s5963_s9 = scalar_lea.vmem [#allocation9], %s5309_s0 }
 0xa1e   : > { %3725 = vmatpush3.bf16.xpose.msra.mxu0 %v2347_v38  ;;  %3726 = vmatprep.mubr.msk.bf16.mxu0 %vm4581_vm1, %v4580_v2  ;;  %v3536_v46 = vld [vmem:[%s5963_s9] ss:$0 sm:$0xff] }
 0xa1f   : > { %3736 = vmatprep.subr.bf16.mxu0 %v4580_v2 }
 0xa21   : > { %2449 = vrot.lane.b32.xlu1 %v2223_v36, %s4587_s1 }
 0xa25   : > { %2559 = vrot.lane.b32.xlu1 %v2223_v36, %s4588_s27 }
 0xa8f   : > { %v2340_v40 = vpop.permute.xlu1 %2339 }
 0xa90   : > { %3727 = vmatmul.mubr.msk.bf16.vlgmr.msra.gmra.mrb[24].mxu0 %vm1536_vm3, %v2340_v40 }
 0xa91   : > { %3737 = vmatpush3.bf16.xpose.msra.mxu0 %v2457_v41  ;;  %3738 = vmatprep.mubr.msk.bf16.mxu0 %vm4581_vm1, %v4580_v2 }
 0xa92   : > { %3748 = vmatprep.subr.bf16.mxu0 %v4580_v2 }
 0xa93   : > { %v2450_v43 = vpop.permute.xlu1 %2449 }
 0xa97   : > { %v2560_v45 = vpop.permute.xlu1 %2559 }
 0xa98   : > { %3739 = vmatmul.mubr.msk.bf16.vlgmr.msra.gmra.mrb[28].mxu0 %vm1536_vm3, %v2450_v43 }
 0xa99   : > { %3749 = vmatpush3.bf16.xpose.msra.mxu0 %v2567_v44  ;;  %3750 = vmatprep.mubr.msk.bf16.mxu0 %vm4581_vm1, %v4580_v2 }
 0xa9a   : > { %3760 = vmatprep.subr.bf16.mxu0 %v4580_v2 }
 0xaa0   : > { %3751 = vmatmul.mubr.msk.bf16.vlgmr.msra.gmra.mrb[32].mxu0 %vm1536_vm3, %v2560_v45 }
 0xaa1   : > { %3764 = vmatprep.mubr.msk.bf16.mxu0 %vm4581_vm1, %v4580_v2 }
 0xaf0   : > { %v2271_v47 = vpop.f32.mrb[20].mxu0 }
 0xaf1   : > { %v2272_v48 = vadd.f32 %v3536_v46, %v2271_v47  ;;  %v3716_v49 = vpop.f32.mrb[21].mxu0 }
 0xaf2   : > { %v2274_v50 = vpop.f32.mrb[22].mxu0 }
 0xaf3   : > { %v3717_v51 = vpop.f32.mrb[23].mxu0  ;;  %v2277_v52 = vsel %vm1536_vm3, %v2272_v48, -inf }
 0xaf4   : > { %2278 = vmax.xlane.f32.xlu0 %v2277_v52 }
 0xb63   : > { %v2383_v53 = vpop.f32.mrb[24].mxu0 }
 0xb64   : > { %v2384_v54 = vadd.f32 %v3536_v46, %v2383_v53  ;;  %v3728_v55 = vpop.f32.mrb[25].mxu0 }
 0xb65   : > { %v2386_v56 = vpop.f32.mrb[26].mxu0 }
 0xb66   : > { %v3729_v57 = vpop.f32.mrb[27].mxu0  ;;  %v2389_v58 = vsel %vm1536_vm3, %v2384_v54, -inf }
 0xb67   : > { %2390 = vmax.xlane.f32.xlu1 %v2389_v58  ;;  %v3939_v57 = vld [vmem:[%s5365_s23] sm:$0xff]  }
 0xb68   : > { %3761 = vmatpush3.bf16.msra.mxu0 %v3939_v57 }
 0xb69   : > { %3762 = vmatprep.subr.bf16.mxu0 %v4580_v2 }
 0xb6b   : > { %v2493_v59 = vpop.f32.mrb[28].mxu0 }
 0xb6c   : > { %v2494_v60 = vadd.f32 %v3536_v46, %v2493_v59  ;;  %v3740_v61 = vpop.f32.mrb[29].mxu0 }
 0xb6d   : > { %v2496_v62 = vpop.f32.mrb[30].mxu0 }
 0xb6e   : > { %v3741_v63 = vpop.f32.mrb[31].mxu0  ;;  %v2499_v0 = vsel %vm1536_vm3, %v2494_v60, -inf  ;;  %v3940_v62 = vld [vmem:[%s5365_s23 + $0x8] sm:$0xff]   ;;  %s5964_s23 = scalar_lea.vmem [#allocation21], %s5337_s24 }
 0xb6f   : > { %2500 = vmax.xlane.f32.xlu0 %v2499_v0  ;;  %3763 = vmatpush3.bf16.msra.mxu0 %v3940_v62 }
 0xb70   : > { %3776 = vmatprep.subr.bf16.mxu0 %v4580_v2 }
 0xb73   : > { %v2603_v1 = vpop.f32.mrb[32].mxu0 }
 0xb74   : > { %v2604_v3 = vadd.f32 %v3536_v46, %v2603_v1  ;;  %v3752_v5 = vpop.f32.mrb[33].mxu0 }
 0xb75   : > { %v2606_v6 = vpop.f32.mrb[34].mxu0 }
 0xb76   : > { %v3753_v7 = vpop.f32.mrb[35].mxu0  ;;  %v2609_v8 = vsel %vm1536_vm3, %v2604_v3, -inf }
 0xb77   : > { %2610 = vmax.xlane.f32.xlu0 %v2609_v8 }
 0xb81   : > { %v2279_v4 = vpop.xlane.xlu0 %2278 }
 0xb82   : > { %v2280_v9 = vsub.f32 %v2272_v48, %v2279_v4 }
 0xb84   : > { %v2281_v10 = vmul.f32 1.442695, %v2280_v9 }
 0xb86   : > { %3965 = vpow2.f32 %v2281_v10 }
 0xb90   : > { %v3966_v12 = vpop.eup %3965 }
 0xb91   : > { %v2283_v13 = vsel %vm1536_vm3, %v3966_v12, 0.0 }
 0xb92   : > { %2284 = vadd.xlane.f32.xlu1 %v2283_v13 }
 0xba3   : > { %2290 = vrot.lane.b32.xlu1 %v5568_v27, %s4583_s6  ;;  %s5966_s6 = scalar_lea.vmem [#allocation24], %s5337_s24 }
 0xbf4   : > { %v2391_v14 = vpop.xlane.xlu1 %2390 }
 0xbf5   : > { %v2392_v15 = vsub.f32 %v2384_v54, %v2391_v14 }
 0xbf7   : > { %v2393_v16 = vmul.f32 1.442695, %v2392_v15 }
 0xbf9   : > { %3967 = vpow2.f32 %v2393_v16  ;;  %v3545_v16 = vld [vmem:[%s5964_s23] ss:$0 sm:$0xff] }
 0xbfc   : > { %v2501_v17 = vpop.xlane.xlu0 %2500 }
 0xbfd   : > { %v2502_v18 = vsub.f32 %v2494_v60, %v2501_v17 }
 0xbff   : > { %v2503_v11 = vmul.f32 1.442695, %v2502_v18 }
 0xc01   : > { %3969 = vpow2.f32 %v2503_v11 }
 0xc03   : > { %v3968_v19 = vpop.eup %3967 }
 0xc04   : > { %v2611_v21 = vpop.xlane.xlu0 %2610  ;;  %v2395_v22 = vsel %vm1536_vm3, %v3968_v19, 0.0 }
 0xc05   : > { %v2612_v23 = vsub.f32 %v2604_v3, %v2611_v21  ;;  %2396 = vadd.xlane.f32.xlu0 %v2395_v22 }
 0xc07   : > { %v2613_v24 = vmul.f32 1.442695, %v2612_v23 }
 0xc09   : > { %3971 = vpow2.f32 %v2613_v24 }
 0xc0b   : > { %v3970_v25 = vpop.eup %3969 }
 0xc0c   : > { %v2505_v26 = vsel %vm1536_vm3, %v3970_v25, 0.0 }
 0xc0d   : > { %2506 = vadd.xlane.f32.xlu1 %v2505_v26 }
 0xc13   : > { %v3972_v28 = vpop.eup %3971 }
 0xc14   : > { %v2615_v29 = vsel %vm1536_vm3, %v3972_v28, 0.0 }
 0xc15   : > { %2616 = vadd.xlane.f32.xlu0 %v2615_v29 }
 0xc1e   : > { %2511 = vrot.lane.b32.xlu1 %v5568_v27, %s4584_s19 }
 0xc1f   : > { %v2285_v30 = vpop.xlane.xlu1 %2284 }
 0xc20   : > { %3973 = vrcp.f32 %v2285_v30  ;;  %v3941_v30 = vld [vmem:[%s5425_s18] sm:$0xff]  }
 0xc22   : > { %2621 = vrot.lane.b32.xlu1 %v5568_v27, %s4586_s3  ;;  %s5967_s3 = sld [smem:[#allocation76_spill]] }
 0xc23   : > { %v2291_v31 = vpop.permute.xlu1 %2290 }
 0xc24   : > { %v2296_v32 = vsel %vm1600_vm4, %v2291_v31, 0  ;;  %v3942_v31 = vld [vmem:[%s5425_s18 + $0x8] sm:$0xff]   ;;  %s5965_s18 = scalar_lea.vmem [#allocation23], %s5337_s24 }
 0xc25   : > { %3719 = vmatpush3.bf16.msra.mxu1 %v2296_v32  ;;  %v3944_v32 = vld [vmem:[%s5415_s5 + $0x8] sm:$0xff]  }
 0xc26   : > { %3730 = vmatprep.subr.bf16.mxu1 %v4580_v2 }
 0xc28   : > { %s5968_s1 = scalar_lea.vmem %s5967_s3, %s5382_s28 }
 0xc2a   : > { %v3974_v33 = vpop.eup %3973 }
 0xc2b   : > { %v2287_v34 = vmul.f32 %v3974_v33, %v3966_v12  ;;  %2401 = vrot.lane.b32.xlu0 %v5568_v27, %s4585_s25 }
 0xc2d   : > { %v2288_v35 = vpack.c.bf16 %v2287_v34, %v2287_v34 }
 0xc2f   : > { %3721 = vmatmul.mubr.msk.bf16.vlgmr.msra.gmra.mrb[28].mxu1 %vm1536_vm3, %v2288_v35 }
 0xc30   : > { %3732 = vmatprep.mubr.msk.bf16.mxu1 %vm4581_vm1, %v4580_v2 }
 0xc92   : > { %v2397_v36 = vpop.xlane.xlu0 %2396 }
 0xc93   : > { %3975 = vrcp.f32 %v2397_v36 }
 0xc9a   : > { %v2507_v37 = vpop.xlane.xlu1 %2506 }
 0xc9b   : > { %3977 = vrcp.f32 %v2507_v37  ;;  %v3549_v37 = vld [vmem:[%s5965_s18] ss:$0 sm:$0xff] }
 0xc9d   : > { %v3976_v38 = vpop.eup %3975 }
 0xc9e   : > { %v2399_v40 = vmul.f32 %v3976_v38, %v3968_v19  ;;  %v2512_v43 = vpop.permute.xlu1 %2511 }
 0xc9f   : > { %v2517_v45 = vsel %vm1600_vm4, %v2512_v43, 0  ;;  %v3945_v43 = vld [vmem:[%s5415_s5 + $0x10] sm:$0xff]  }
 0xca0   : > { %v2400_v27 = vpack.c.bf16 %v2399_v40, %v2399_v40 }
 0xca2   : > { %v2617_v39 = vpop.xlane.xlu0 %2616  ;;  %v2622_v47 = vpop.permute.xlu1 %2621 }
 0xca3   : > { %3979 = vrcp.f32 %v2617_v39  ;;  %v2627_v50 = vsel %vm1600_vm4, %v2622_v47, 0  ;;  %v3550_v39 = vld [vmem:[%s5966_s6] ss:$0 sm:$0xff] }
 0xca5   : > { %v3978_v44 = vpop.eup %3977 }
 0xca6   : > { %v2402_v41 = vpop.permute.xlu0 %2401  ;;  %v2509_v46 = vmul.f32 %v3978_v44, %v3970_v25  ;;  %v3551_v44 = vld [vmem:[%s5968_s1] ss:$0 sm:$0xff] }
 0xca7   : > { %v2407_v42 = vsel %vm1600_vm4, %v2402_v41, 0 }
 0xca8   : > { %3731 = vmatpush3.bf16.msra.mxu1 %v2407_v42  ;;  %v2510_v48 = vpack.c.bf16 %v2509_v46, %v2509_v46 }
 0xca9   : > { %3742 = vmatprep.subr.bf16.mxu1 %v4580_v2 }
 0xcab   : > { %3733 = vmatmul.mubr.msk.bf16.vlgmr.msra.gmra.mrb[32].mxu1 %vm1536_vm3, %v2400_v27  ;;  %v3946_v27 = vld [vmem:[%s5415_s5 + $0x18] sm:$0xff]  }
 0xcac   : > { %3743 = vmatpush3.bf16.msra.mxu1 %v2517_v45  ;;  %3744 = vmatprep.mubr.msk.bf16.mxu1 %vm4581_vm1, %v4580_v2 }
 0xcad   : > { %3754 = vmatprep.subr.bf16.mxu1 %v4580_v2  ;;  %v3980_v49 = vpop.eup %3979 }
 0xcae   : > { %v2619_v51 = vmul.f32 %v3980_v49, %v3972_v28 }
 0xcb0   : > { %v2620_v52 = vpack.c.bf16 %v2619_v51, %v2619_v51 }
 0xcb3   : > { %3745 = vmatmul.mubr.msk.bf16.vlgmr.msra.gmra.mrb[36].mxu1 %vm1536_vm3, %v2510_v48 }
 0xcb4   : > { %3755 = vmatpush3.bf16.msra.mxu1 %v2627_v50  ;;  %3756 = vmatprep.mubr.msk.bf16.mxu1 %vm4581_vm1, %v4580_v2 }
 0xcb5   : > { %3768 = vmatprep.subr.bf16.mxu1 %v4580_v2 }
 0xcbb   : > { %3757 = vmatmul.mubr.msk.bf16.vlgmr.msra.gmra.mrb[40].mxu1 %vm1536_vm3, %v2620_v52 }
 0xcbc   : > { %3772 = vmatprep.mubr.msk.bf16.mxu1 %vm4581_vm1, %v4580_v2  ;;  %3769 = vmatpush3.bf16.msra.mxu1 %v3941_v30 }
 0xcbd   : > { %3770 = vmatprep.subr.bf16.mxu1 %v4580_v2 }
 0xcc0   : > { %3771 = vmatpush3.bf16.msra.mxu1 %v3942_v31 }
 0xd02   : > { %v2332_v53 = vpop.f32.mrb[28].mxu1 }
 0xd03   : > { %v3722_v54 = vpop.f32.mrb[29].mxu1 }
 0xd04   : > { %v2335_v55 = vpop.f32.mrb[30].mxu1 }
 0xd05   : > { %v3723_v56 = vpop.f32.mrb[31].mxu1 }
 0xd7e   : > { %v2443_v58 = vpop.f32.mrb[32].mxu1 }
 0xd7f   : > { %2670 = vrot.lane.b32.xlu0 %v2443_v58, %s4593_s13  ;;  %v3734_v59 = vpop.f32.mrb[33].mxu1 }
 0xd80   : > { %v2446_v60 = vpop.f32.mrb[34].mxu1 }
 0xd81   : > { %v3735_v61 = vpop.f32.mrb[35].mxu1 }
 0xd86   : > { %v2553_v63 = vpop.f32.mrb[36].mxu1 }
 0xd87   : > { %2674 = vrot.lane.b32.xlu1 %v2553_v63, %s4594_s8  ;;  %v3746_v0 = vpop.f32.mrb[37].mxu1 }
 0xd88   : > { %v2556_v1 = vpop.f32.mrb[38].mxu1 }
 0xd89   : > { %v3747_v3 = vpop.f32.mrb[39].mxu1 }
 0xd8e   : > { %v2663_v5 = vpop.f32.mrb[40].mxu1 }
 0xd8f   : > { %2678 = vrot.lane.b32.xlu0 %v2663_v5, %s4595_s7  ;;  %v3758_v6 = vpop.f32.mrb[41].mxu1  ;;  %s5972_s7 = sld [smem:[#allocation44_spill]] }
 0xd90   : > { %v2666_v7 = vpop.f32.mrb[42].mxu1  ;;  %v3561_v6 = vld [vmem:[%s1444_s14] ss:$0 sm:$0xff] }
 0xd91   : > { %v3759_v8 = vpop.f32.mrb[43].mxu1 }
 0xd92   : > { %v3562_v8 = vld [vmem:[%s1447_s17] ss:$0 sm:$0xff] }
 0xd95   : > { %p3563_p6 = scmp.ne.s32.totalorder %s5972_s7, 1 }
 0xd96   : > { %s5973_s17 = sld [smem:[#allocation81_spill]] (!%p3563_p6)  ;;  %s5974_s12 = sld [smem:[#allocation82_spill]] (!%p3563_p6) }
 0xdf1   : > { %v2671_v4 = vpop.permute.xlu0 %2670 }
 0xdf2   : > { %v2681_v10 = vsel %vm1536_vm3, %v2332_v53, %v2671_v4 }
 0xdf9   : > { %v2675_v9 = vpop.permute.xlu1 %2674 }
 0xdfa   : > { %v2682_v12 = vsel %vm1987_vm5, %v2681_v10, %v2675_v9 }
 0xe01   : > { %v2679_v13 = vpop.permute.xlu0 %2678 }
 0xe02   : > { %v2683_v14 = vsel %vm1989_vm6, %v2682_v12, %v2679_v13 }
 0xe03   : > { %v2684_v15 = vpack.c.bf16 %v2683_v14, %v2683_v14 }
 0xe05   : > { %3765 = vmatmul.mubr.msk.bf16.vlgmr.msra.gmra.mrb[36].mxu0 %vm1487_vm2, %v2684_v15 }
 0xe06   : > { %3784 = vmatprep.mubr.msk.bf16.mxu0 %vm4581_vm1, %v4580_v2 }
 0xed8   : > { %v2745_v17 = vpop.f32.mrb[36].mxu0 }
 0xed9   : > { %v2746_v18 = vadd.f32 %v3545_v16, %v2745_v17  ;;  %v3766_v11 = vpop.f32.mrb[37].mxu0 }
 0xeda   : > { %v2748_v19 = vpop.f32.mrb[38].mxu0 }
 0xedb   : > { %v3767_v21 = vpop.f32.mrb[39].mxu0  ;;  %v2751_v22 = vadd.f32 %v2746_v18, %v5559_v20  ;;  %v3943_v20 = vld [vmem:[%s5415_s5] sm:$0xff]  }
 0xedc   : > { %3777 = vmatpush3.bf16.msra.mxu0 %v3943_v20  ;;  %v3564_v21 = vld [vmem:[%s5973_s17] ss:$0 sm:$0xff] (!%p3563_p6) }
 0xedd   : > { %v2752_v23 = vsel %vm1487_vm2, %v2751_v22, 0.0  ;;  %3778 = vmatprep.subr.bf16.mxu0 %v4580_v2 }
 0xede   : > { %2753 = vadd.xlane.f32.xlu1 %v2752_v23  ;;  %v3565_v23 = vld [vmem:[%s5974_s12] ss:$0 sm:$0xff] (!%p3563_p6) }
 0xee0   : > { %3779 = vmatpush3.bf16.msra.mxu0 %v3944_v32 }
 0xee1   : > { %3780 = vmatprep.subr.bf16.mxu0 %v4580_v2 }
 0xee4   : > { %3781 = vmatpush3.bf16.msra.mxu0 %v3945_v43 }
 0xee5   : > { %3782 = vmatprep.subr.bf16.mxu0 %v4580_v2  ;;  %v3555_v2 = vld [vmem:[%s1441_s4] ss:$0 sm:$0xff] }
 0xee8   : > { %3783 = vmatpush3.bf16.msra.mxu0 %v3946_v27 }
 0xf6b   : > { %v2754_v24 = vpop.xlane.xlu1 %2753 }
 0xf6c   : > { %v2755_v25 = vmul.f32 0.03125, %v2754_v24 }
 0xf6e   : > { %v2756_v26 = vsub.f32 %v2751_v22, %v2755_v25 }
 0xf70   : > { %v2757_v28 = vmul.f32 %v2756_v26, %v2756_v26 }
 0xf72   : > { %v2758_v29 = vsel %vm1487_vm2, %v2757_v28, 0.0 }
 0xf73   : > { %2759 = vadd.xlane.f32.xlu0 %v2758_v29 }
0x1000   : > { %v2760_v33 = vpop.xlane.xlu0 %2759 }
0x1001   : > { %v2761_v34 = vmul.f32 0.03125, %v2760_v33 }
0x1003   : > { %v2762_v35 = vadd.f32 1e-05, %v2761_v34 }
0x1005   : > { %3981 = vrsqrt.f32 %v2762_v35 }
0x100f   : > { %v3982_v36 = vpop.eup %3981 }
0x1010   : > { %v2764_v38 = vmul.f32 %v3982_v36, %v2756_v26 }
0x1012   : > { %v2772_v40 = vmul.f32 %v3549_v37, %v2764_v38 }
0x1014   : > { %v2780_v41 = vadd.f32 %v3550_v39, %v2772_v40 }
0x1016   : > { %v2781_v42 = vpack.c.bf16 %v2780_v41, %v2780_v41 }
0x1018   : > { %3773 = vmatmul.mubr.msk.bf16.vlgmr.msra.gmra.mrb[44].mxu1 %vm1487_vm2, %v2781_v42 }
0x10eb   : > { %v2842_v45 = vpop.f32.mrb[44].mxu1 }
0x10ec   : > { %v2843_v46 = vadd.f32 %v3551_v44, %v2842_v45  ;;  %v3774_v47 = vpop.f32.mrb[45].mxu1 }
0x10ed   : > { %v2845_v48 = vpop.f32.mrb[46].mxu1 }
0x10ee   : > { %v2848_v49 = vmax.f32 %v2843_v46, 0.0  ;;  %v3775_v50 = vpop.f32.mrb[47].mxu1 }
0x10f0   : > { %v2849_v51 = vpack.c.bf16 %v2848_v49, %v2848_v49 }
0x10f2   : > { %3785 = vmatmul.mubr.msk.bf16.vlgmr.msra.gmra.mrb[40].mxu0 %vm2889_vm7, %v2849_v51 }
0x11c5   : > { %v2927_v52 = vpop.f32.mrb[40].mxu0 }
0x11c6   : > { %v2928_v53 = vadd.f32 %v3555_v2, %v2927_v52  ;;  %v3786_v54 = vpop.f32.mrb[41].mxu0 }
0x11c7   : > { %v2930_v55 = vpop.f32.mrb[42].mxu0 }
0x11c8   : > { %v3787_v56 = vpop.f32.mrb[43].mxu0  ;;  %v2933_v57 = vadd.f32 %v2928_v53, %v2780_v41 }
0x11ca   : > { %v2934_v58 = vsel %vm1487_vm2, %v2933_v57, 0.0 }
0x11cb   : > { %2935 = vadd.xlane.f32.xlu0 %v2934_v58 }
0x1258   : > { %v2936_v59 = vpop.xlane.xlu0 %2935 }
0x1259   : > { %v2937_v60 = vmul.f32 0.03125, %v2936_v59 }
0x125b   : > { %v2938_v61 = vsub.f32 %v2933_v57, %v2937_v60 }
0x125d   : > { %v2939_v62 = vmul.f32 %v2938_v61, %v2938_v61 }
0x125f   : > { %v2940_v63 = vsel %vm1487_vm2, %v2939_v62, 0.0 }
0x1260   : > { %2941 = vadd.xlane.f32.xlu1 %v2940_v63 }
0x12ed   : > { %v2942_v0 = vpop.xlane.xlu1 %2941 }
0x12ee   : > { %v2943_v1 = vmul.f32 0.03125, %v2942_v0 }
0x12f0   : > { %v2944_v3 = vadd.f32 1e-05, %v2943_v1 }
0x12f2   : > { %3983 = vrsqrt.f32 %v2944_v3 }
0x12fc   : > { %v3984_v5 = vpop.eup %3983 }
0x12fd   : > { %v2946_v7 = vmul.f32 %v3984_v5, %v2938_v61  ;;  %2967 = sbr.rel (%p3563_p6) target bundleno = 5181 (0x143d), region = 192 }
0x12ff   : > { %v2954_v4 = vmul.f32 %v3561_v6, %v2946_v7 }
0x1301   : > { %v2962_v9 = vadd.f32 %v3562_v8, %v2954_v4 }
0x1303   : > { %2963 = vst.msk [vmem:[%s5440_s2] sm:$0xff] %vm1487_vm2, %v2962_v9  ;;  %v2968_v10 = vsel (!%p3563_p6), %vm1487_vm2, %v2962_v9, 0.0 }
0x1304   : > { %2969 = vadd.xlane.f32.xlu0 %v2968_v10 }
0x1391   : > { %v2970_v12 = vpop.xlane.xlu0 %2969 }
0x1392   : > { %v2971_v13 = vmul.f32 0.03125, %v2970_v12 }
0x1394   : > { %v2972_v14 = vsub.f32 %v2962_v9, %v2971_v13 }
0x1396   : > { %v2973_v15 = vmul.f32 %v2972_v14, %v2972_v14 }
0x1398   : > { %v2974_v16 = vsel %vm1487_vm2, %v2973_v15, 0.0 }
0x1399   : > { %2975 = vadd.xlane.f32.xlu0 %v2974_v16 }
0x1426   : > { %v2976_v17 = vpop.xlane.xlu0 %2975 }
0x1427   : > { %v2977_v18 = vmul.f32 0.03125, %v2976_v17 }
0x1429   : > { %v2978_v11 = vadd.f32 1e-05, %v2977_v18 }
0x142b   : > { %3985 = vrsqrt.f32 %v2978_v11 }
0x1435   : > { %v3986_v19 = vpop.eup %3985 }
0x1436   : > { %v2980_v22 = vmul.f32 %v3986_v19, %v2972_v14 }
0x1438   : > { %v2988_v24 = vmul.f32 %v3564_v21, %v2980_v22 }
0x143a   : > { %v2996_v25 = vadd.f32 %v3565_v23, %v2988_v24 }
0x143c   : > { %2997 = vst.msk [vmem:[%s1410_s21] sm:$0xff] %vm1487_vm2, %v2996_v25 }
0x143d PF: > { %s5975_s30 = sld [smem:[#allocation43_spill]]  ;;  %s5976_s11 = sld [smem:[#allocation55_spill]] }
0x143e   : > { %s5977_s23 = sld [smem:[#allocation83_spill]]  ;;  %s3012_s6 = sshll.u32 %s1410_s21, 4  ;;  %s3013_s6 = int_to_ptr.vmem [resolvable:$true] %s3012_s6 }
0x143f   : > { %s2999_s19 = scalar_lea.sflag [#allocation5], %s5309_s0  ;;  %s4407_s25 = scalar_lea.vmem %s3013_s6, 128 }
0x1440   : > { %p4408_p1 = scmp.ne.s32.totalorder %s3013_s6, %s4407_s25  ;;  %s4596_s3 = smov [#allocation27]  }
0x1441   : > { %s4411_s1 = sshll.u32 %s4596_s3, 4  ;;  %s4412_s1 = int_to_ptr.vmem [resolvable:$false] %s4411_s1 }
0x1442   : > { %s4413_s24 = scalar_lea.vmem %s4412_s1, 256  ;;  %p4414_p5 = scmp.lt.s32.totalorder %s3013_s6, %s4412_s1 }
0x1443   : > { %s3567_s16 = sshll.u32 %s5975_s30, 7  ;;  %p5978_p4 = scmp.ne.s32.totalorder %s5976_s11, 0 }
0x1444   : > { %s5713_s18 = scalar_lea.hbm %s5977_s23, %s3567_s16  ;;  %p4415_p0 = scmp.lt.s32.totalorder %s4413_s24, %s4407_s25 }
0x1445   : > { %p4409_p3 = pnand %p4408_p1, %p5978_p4 }
0x1446   : > { %p4416_p12 = por %p4415_p0, %p4414_p5 }
0x1447   : > { %p4410_p9 = pneg %p4409_p3 }
0x1449   : > { %p4417_p13 = pnand %p4416_p12, %p4410_p9 }
0x144b   : > { %4420 = shalt.err (!%p4417_p13)
}
0x144c   : > { %s4421_s0 = scalar_lea.hbm %s5713_s18, 128  ;;  %s4425_s27 = scalar_lea.hbm %s5977_s23, 256 }
0x144d   : > { %p4422_p10 = scmp.ne.s32.totalorder %s5713_s18, %s4421_s0  ;;  %p4426_p11 = scmp.lt.u32.totalorder %s5713_s18, %s5977_s23 }
0x144e   : > { %p4427_p7 = scmp.lt.u32.totalorder %s4425_s27, %s4421_s0  ;;  %p4429_p1 = scmp.lt.u32.totalorder %s4421_s0, %s5713_s18 }
0x144f   : > { %p4423_p2 = pnand %p4422_p10, %p5978_p4 }
0x1450   : > { %p4428_p6 = por %p4427_p7, %p4426_p11 }
0x1451   : > { %p4424_p8 = pneg %p4423_p2 }
0x1452   : > { %p4430_p3 = por %p4429_p1, %p4428_p6 }
0x1454   : > { %p4431_p9 = pnand %p4430_p3, %p4424_p8 }
0x1456   : > { %4434 = shalt.err (!%p4431_p9)
}
0x1457   : > { %3818 = dma.vmem_to_hbm [thread:$0]  (%p5978_p4), %s3013_s6, 128, %s5713_s18, %s2999_s19  }
0x1458 PF: > { %s5979_s5 = sld [smem:[#allocation47_spill]]  ;;  %s5980_s22 = sld [smem:[#allocation40_spill]] }
0x1459   : > { %s5981_s29 = sld [smem:[#allocation56_spill]] }
0x145e   : > { %p3824_p5 = scmp.ge.s32.totalorder %s5979_s5, 2  ;;  %s3024_s13 = sand.u32 1, %s5980_s22  }
0x145f   : > { %p5982_p0 = scmp.ne.s32.totalorder %s5981_s29, 0  ;;  %s3025_s8 = scalar_lea.sflag [#allocation5], %s3024_s13 }
0x1461   : > { %p3821_p12 = pnand %p3824_p5, %p5982_p0 }
0x1463   : > { %4516 = dma.done.wait (!%p3821_p12), %s3025_s8, 128  }
0x1464   : > { %4518 = vsyncadd (!%p3821_p12), %s3025_s8, 4294967168  ;;  %s63_s2 = sadd.s32 1, %s5979_s5   ;;  %s5983_s27 = sld [smem:[#allocation38_spill]] }
0x1465   : > { %p60_p13 = scmp.ge.s32.totalorder %s63_s2, 6   ;;  %s5984_s3 = sld [smem:[#allocation39_spill]] }
0x1466   : > { %s5985_s7 = sld [smem:[#allocation53_spill]]  ;;  %s5986_s28 = sld [smem:[#allocation41_spill]] }
0x1467   : > { %s5987_s8 = sld [smem:[#allocation42_spill]]  ;;  %s5988_s4 = sld [smem:[#allocation51_spill]] }
0x1468   : > { %s5989_s29 = sld [smem:[#allocation45_spill]]  ;;  %s5990_s0 = sld [smem:[#allocation46_spill]] }
0x1469   : > { %s5991_s9 = sld [smem:[#allocation49_spill]]  ;;  %s5992_s30 = sld [smem:[#allocation50_spill]] }
0x146a   :  { %62 = sbr.rel (!%p60_p13) target bundleno = 51 (0x33), region = 374 }
0x1471   :  { %3030 = vsyncpa [#allocation4], 1 }
0x1472   :  { %3032 = vsyncpa [#allocation4 + $0x1], 1 }
0x1473   :  { %3033 = vsyncpa [#allocation7], 1 }
0x1474   :  { %3035 = vsyncpa [#allocation7 + $0x1], 1 }
0x1475   :  { %3036 = vsyncpa [#allocation10], 1 }
0x1476   :  { %3038 = vsyncpa [#allocation10 + $0x1], 1 }
0x1477   :  { %3039 = vsyncpa [#allocation13], 1 }
0x1478   :  { %3041 = vsyncpa [#allocation13 + $0x1], 1 }
0x1479   :  { %3042 = vsyncpa [#allocation16], 1 }
0x147a   :  { %3044 = vsyncpa [#allocation16 + $0x1], 1 }
0x147b   :  { %3045 = vsyncpa [#allocation19], 1 }
0x147c   :  { %3047 = vsyncpa [#allocation19 + $0x1], 1 }
0x147d   :  { %3048 = vsyncpa [#allocation22], 1 }
0x147e   :  { %3050 = vsyncpa [#allocation22 + $0x1], 1 }
0x147f   :  { %3051 = vsyncpa [#allocation25], 1 }
0x1480   :  { %3053 = vsyncpa [#allocation25 + $0x1], 1 }
0x1481   :  { %3054 = vsyncpa [#allocation5], 1 }
0x1482   :  { %3056 = vsyncpa [#allocation5 + $0x1], 1 }

</bundles_post_ra>
